<compile_context>
chip_gen: v7x
topology: tpu7x:2x2x1
jax: 0.10.0
libtpu: 0.0.40
codegen_flags: <defaults>
</compile_context>

<pallas_src>
import functools

import jax
import jax.numpy as jnp
from jax.experimental import pallas as pl
from jax.experimental.pallas import tpu as pltpu


def _spatial_attention_kernel(x_ref, w_ref, out_ref,
                              sum_acc, max_acc, pad_avg, pad_max,
                              *, inv_c, ksize, sub, c_chunk, c_total, hh, ww):
    c_step = pl.program_id(1)
    n_c = pl.num_programs(1)
    n_sub = c_chunk // sub
    hw = hh * ww
    ragged = (c_total % c_chunk) != 0          # static: last chunk is partial

    @pl.when(c_step == 0)
    def _init():
        sum_acc[...] = jnp.zeros_like(sum_acc)
        max_acc[...] = jnp.full_like(max_acc, -jnp.inf)

    # ---- streamed channel reduction: one pass over `sub`-channel slices -----
    if ragged:
        # In-chunk channel index of every accumulator row (hoisted out of loop).
        row_ch = jax.lax.broadcasted_iota(jnp.int32, (sub, hw), 0)
        rem = c_total - c_step * c_chunk       # valid channels in this chunk

    def body(i, carry):
        start = pl.multiple_of(i * sub, sub)
        xs = x_ref[0, pl.ds(start, sub), :]    # (sub, HW), native dtype
        if ragged:
            valid = (row_ch + i * sub) < rem
            xs_max = jnp.where(valid, xs, jnp.full_like(xs, -jnp.inf))
            xs_sum = jnp.where(valid, xs.astype(jnp.float32), 0.0)
        else:
            xs_max = xs
            xs_sum = xs.astype(jnp.float32)
        max_acc[...] = jnp.maximum(max_acc[...], xs_max)   # native-dtype max
        sum_acc[...] = sum_acc[...] + xs_sum               # f32 sum
        return carry

    jax.lax.fori_loop(0, n_sub, body, 0, unroll=(n_sub <= 8))

    # ---- finalize: 7x7 "same" conv over [mean, max] planes + sigmoid --------
    @pl.when(c_step == n_c - 1)
    def _finalize():
        pad = ksize // 2
        mean_row = jnp.sum(sum_acc[...], axis=0, keepdims=True) * inv_c  # (1,HW)
        max_row = jnp.max(max_acc[...], axis=0, keepdims=True)           # (1,HW)
        sum_acc[0:1, :] = mean_row             # stash reduced rows so we can
        max_acc[0:1, :] = max_row              # re-read W-lane windows below

        # Zero-padded planes for Conv2d's zero padding; fill the interiors with
        # W-lane row copies from the flat reduced rows (no in-kernel reshape).
        pad_avg[...] = jnp.zeros_like(pad_avg)
        pad_max[...] = jnp.zeros_like(pad_max)
        for h in range(hh):
            s = h * ww
            pad_avg[pad + h, pad:pad + ww] = sum_acc[0, s:s + ww]
            pad_max[pad + h, pad:pad + ww] = max_acc[0, s:s + ww].astype(jnp.float32)

        pa = pad_avg[...]
        pm = pad_max[...]
        acc = jnp.zeros((hh, ww), jnp.float32)
        for dy in range(ksize):                # static 7x7 unroll: 98 taps
            for dx in range(ksize):
                w_a = w_ref[dy * ksize + dx]                   # avg-channel tap
                w_m = w_ref[ksize * ksize + dy * ksize + dx]   # max-channel tap
                acc = (acc
                       + w_a * pa[dy:dy + hh, dx:dx + ww]
                       + w_m * pm[dy:dy + hh, dx:dx + ww])

        out_ref[0, 0] = jax.nn.sigmoid(acc).astype(out_ref.dtype)


def _round_up(v, m):
    return ((v + m - 1) // m) * m


def _pick_c_chunk(C, hw, itemsize, sub, target_bytes):
    """Channels per grid step, chosen by an input-buffer bytes budget."""
    if C <= sub:
        return C
    c_cap = (C // sub) * sub                       # largest multiple of sub <= C
    bytes_per_ch = max(1, _round_up(hw, 128) * itemsize)
    c_budget = max(sub, (target_bytes // bytes_per_ch) // sub * sub)
    return int(min(c_cap, c_budget))


def get_attention_map_cbam(x_nchw, conv_weight, *, kernel_size=7, c_chunk=None,
                           target_chunk_bytes=4 << 20):
    """x_nchw: (B, C, H, W) in its native dtype.
    conv_weight: PyTorch Conv2d(2, 1, k, k, bias=False).weight, shape (1,2,k,k)."""
    B, C, H, W = x_nchw.shape
    k = kernel_size
    pad = k // 2
    hw = H * W
    itemsize = jnp.dtype(x_nchw.dtype).itemsize

    sub = min(8, C)                                # channels folded per loop iter
    if c_chunk is None:
        c_chunk = _pick_c_chunk(C, hw, itemsize, sub, target_chunk_bytes)
    if C <= sub:
        assert c_chunk == C
    else:
        assert c_chunk % sub == 0 and sub <= c_chunk <= C, \
            "c_chunk must be a multiple of 8 and no larger than C"
    n_c = pl.cdiv(C, c_chunk)

    # Lane-dense view of x: the full H*W sits on the 128-lane axis (free reshape).
    x_flat = x_nchw.reshape(B, C, hw)
    w_flat = jnp.asarray(conv_weight, jnp.float32).reshape(2 * k * k)

    kernel = functools.partial(
        _spatial_attention_kernel,
        inv_c=1.0 / C, ksize=k, sub=sub, c_chunk=c_chunk, c_total=C, hh=H, ww=W)

    # Explicit VMEM budget: double-buffered input tile + scratch + output blocks.
    lanes = _round_up(hw, 128)
    in_buf = _round_up(c_chunk, 8) * lanes * itemsize
    pad_plane = _round_up(H + 2 * pad, 8) * _round_up(W + 2 * pad, 128) * 4
    scratch = sub * lanes * 4 + sub * lanes * itemsize + 2 * pad_plane
    out_buf = _round_up(H, 8) * _round_up(W, 128) * itemsize
    need = 2 * in_buf + scratch + 2 * out_buf
    vmem_limit = int(min(max(16 << 20, int(need * 1.5) + (2 << 20)), 96 << 20))

    cost = pl.CostEstimate(
        flops=2 * B * C * hw + 4 * B * hw * k * k,
        transcendentals=B * hw,
        bytes_accessed=B * C * hw * itemsize + B * hw * itemsize + 2 * k * k * 4,
    )

    return pl.pallas_call(
        kernel,
        out_shape=jax.ShapeDtypeStruct((B, 1, H, W), x_nchw.dtype),
        grid_spec=pltpu.PrefetchScalarGridSpec(
            num_scalar_prefetch=0,
            grid=(B, n_c),
            in_specs=[
                pl.BlockSpec((1, c_chunk, hw), lambda b, c: (b, c, 0)),
                pl.BlockSpec(memory_space=pltpu.MemorySpace.SMEM),  # 98 conv taps
            ],
            out_specs=pl.BlockSpec((1, 1, H, W), lambda b, c: (b, 0, 0, 0)),
            scratch_shapes=[
                pltpu.VMEM((sub, hw), jnp.float32),        # running sum (f32)
                pltpu.VMEM((sub, hw), x_nchw.dtype),       # running max (native)
                pltpu.VMEM((H + 2 * pad, W + 2 * pad), jnp.float32),  # padded avg
                pltpu.VMEM((H + 2 * pad, W + 2 * pad), jnp.float32),  # padded max
            ],
        ),
        compiler_params=pltpu.CompilerParams(
            dimension_semantics=("parallel", "arbitrary"),
            vmem_limit_bytes=vmem_limit,
        ),
        cost_estimate=cost,
    )(x_flat, w_flat)


def get_attention_map_cbam_ref(x, conv_weight, kernel_size=7):
    # Pure-JAX reference matching the PyTorch module.
    avg = jnp.mean(x, axis=1, keepdims=True)
    mx = jnp.max(x, axis=1, keepdims=True)
    cat = jnp.concatenate([avg, mx], axis=1).astype(jnp.float32)
    w = jnp.asarray(conv_weight, jnp.float32).reshape(1, 2, kernel_size, kernel_size)
    y = jax.lax.conv_general_dilated(
        cat, w, window_strides=(1, 1), padding="SAME",
        dimension_numbers=("NCHW", "OIHW", "NCHW"))
    return jax.nn.sigmoid(y).astype(x.dtype)


if __name__ == "__main__":
    K = 7
    key = jax.random.PRNGKey(0)
    kx1, kx2, kw = jax.random.split(key, 3)

    # Conv2d(2, 1, 7, padding=3, bias=False).weight
    w = jax.random.normal(kw, (1, 2, K, K), dtype=jnp.float32) * 0.1

    # Case 1: even channel split — 2 streaming chunks x 2 fori_loop sub-slices.
    B, C, H, W = 2, 32, 16, 16
    x1 = jax.random.normal(kx1, (B, C, H, W), dtype=jnp.float32)
    out1 = jax.block_until_ready(get_attention_map_cbam(x1, w, kernel_size=K,
                                                        c_chunk=16))
    ref1 = get_attention_map_cbam_ref(x1, w, kernel_size=K)
    assert out1.shape == (B, 1, H, W)
    assert jnp.allclose(out1, ref1, atol=1e-5, rtol=1e-5), \
        float(jnp.max(jnp.abs(out1 - ref1)))

    # Case 2: ragged channel count (C=20) with auto bytes-budgeted c_chunk —
    # exercises the masked partial last chunk.
    x2 = jax.random.normal(kx2, (2, 20, H, W), dtype=jnp.float32)
    out2 = jax.block_until_ready(get_attention_map_cbam(x2, w, kernel_size=K))
    ref2 = get_attention_map_cbam_ref(x2, w, kernel_size=K)
    assert out2.shape == (2, 1, H, W)
    assert jnp.allclose(out2, ref2, atol=1e-5, rtol=1e-5), \
        float(jnp.max(jnp.abs(out2 - ref2)))

    print("KERNEL_OK")
</pallas_src>

<mosaic_0001>
module attributes {stable_mosaic.version = 11 : i64} {
  func.func @_spatial_attention_kernel(%arg0: i32, %arg1: i32, %arg2: memref<1x16x256xf32, #tpu.memory_space<vmem>>, %arg3: memref<98xf32, #tpu.memory_space<smem>>, %arg4: memref<1x1x16x16xf32, #tpu.memory_space<vmem>>, %arg5: memref<8x256xf32, #tpu.memory_space<vmem>>, %arg6: memref<8x256xf32, #tpu.memory_space<vmem>>, %arg7: memref<22x22xf32, #tpu.memory_space<vmem>>, %arg8: memref<22x22xf32, #tpu.memory_space<vmem>>) attributes {dimension_semantics = [#tpu.dimension_semantics<parallel>, #tpu.dimension_semantics<arbitrary>], iteration_bounds = array<i64: 2, 2>, scalar_prefetch = 0 : i64, scratch_operands = 4 : i64, tpu.core_type = #tpu.core_type<tc>, window_params = [{transform_indices = @transform_0, window_bounds = array<i64: 1, 16, 256>}, {transform_indices = @transform_1, window_bounds = array<i64: 98>}, {transform_indices = @transform_2, window_bounds = array<i64: 1, 1, 16, 16>}]} {
    %c0_i32 = arith.constant 0 : i32
    %0 = arith.cmpi eq, %arg1, %c0_i32 : i32
    %1 = arith.extui %0 : i1 to i32
    %c0_i32_0 = arith.constant 0 : i32
    %2 = arith.cmpi ne, %1, %c0_i32_0 : i32
    scf.if %2 {
      %cst = arith.constant 0.000000e+00 : f32
      %28 = vector.broadcast %cst : f32 to vector<8x256xf32>
      %c0_24 = arith.constant 0 : index
      %c0_25 = arith.constant 0 : index
      %29 = vector.load %arg5[%c0_24, %c0_25] : memref<8x256xf32, #tpu.memory_space<vmem>>, vector<8x256xf32>
      tpu.vector_store %arg5[%c0_24, %c0_25], %28 {strides = array<i32>} : memref<8x256xf32, #tpu.memory_space<vmem>>, vector<8x256xf32>,
      %cst_26 = arith.constant 0xFF800000 : f32
      %30 = vector.broadcast %cst_26 : f32 to vector<8x256xf32>
      %c0_27 = arith.constant 0 : index
      %c0_28 = arith.constant 0 : index
      %31 = vector.load %arg6[%c0_27, %c0_28] : memref<8x256xf32, #tpu.memory_space<vmem>>, vector<8x256xf32>
      tpu.vector_store %arg6[%c0_27, %c0_28], %30 {strides = array<i32>} : memref<8x256xf32, #tpu.memory_space<vmem>>, vector<8x256xf32>,
    } else {
    }
    %c0_i32_1 = arith.constant 0 : i32
    %c8_i32 = arith.constant 8 : i32
    %3 = arith.muli %c0_i32_1, %c8_i32 : i32
    %4 = tpu.assume_multiple %3, 8 : i32
    %c0 = arith.constant 0 : index
    %5 = arith.index_cast %4 : i32 to index
    %c0_2 = arith.constant 0 : index
    %6 = vector.load %arg2[%c0, %5, %c0_2] : memref<1x16x256xf32, #tpu.memory_space<vmem>>, vector<1x8x256xf32>
    %7 = vector.shape_cast %6 : vector<1x8x256xf32> to vector<8x256xf32>
    %c0_3 = arith.constant 0 : index
    %c0_4 = arith.constant 0 : index
    %8 = vector.load %arg6[%c0_3, %c0_4] : memref<8x256xf32, #tpu.memory_space<vmem>>, vector<8x256xf32>
    %9 = arith.maximumf %8, %7 : vector<8x256xf32>
    %c0_5 = arith.constant 0 : index
    %c0_6 = arith.constant 0 : index
    %10 = vector.load %arg6[%c0_5, %c0_6] : memref<8x256xf32, #tpu.memory_space<vmem>>, vector<8x256xf32>
    tpu.vector_store %arg6[%c0_5, %c0_6], %9 {strides = array<i32>} : memref<8x256xf32, #tpu.memory_space<vmem>>, vector<8x256xf32>,
    %c0_7 = arith.constant 0 : index
    %c0_8 = arith.constant 0 : index
    %11 = vector.load %arg5[%c0_7, %c0_8] : memref<8x256xf32, #tpu.memory_space<vmem>>, vector<8x256xf32>
    %12 = arith.addf %11, %7 : vector<8x256xf32>
    %c0_9 = arith.constant 0 : index
    %c0_10 = arith.constant 0 : index
    %13 = vector.load %arg5[%c0_9, %c0_10] : memref<8x256xf32, #tpu.memory_space<vmem>>, vector<8x256xf32>
    tpu.vector_store %arg5[%c0_9, %c0_10], %12 {strides = array<i32>} : memref<8x256xf32, #tpu.memory_space<vmem>>, vector<8x256xf32>,
    %c1_i32 = arith.constant 1 : i32
    %c8_i32_11 = arith.constant 8 : i32
    %14 = arith.muli %c1_i32, %c8_i32_11 : i32
    %15 = tpu.assume_multiple %14, 8 : i32
    %c0_12 = arith.constant 0 : index
    %16 = arith.index_cast %15 : i32 to index
    %c0_13 = arith.constant 0 : index
    %17 = vector.load %arg2[%c0_12, %16, %c0_13] : memref<1x16x256xf32, #tpu.memory_space<vmem>>, vector<1x8x256xf32>
    %18 = vector.shape_cast %17 : vector<1x8x256xf32> to vector<8x256xf32>
    %c0_14 = arith.constant 0 : index
    %c0_15 = arith.constant 0 : index
    %19 = vector.load %arg6[%c0_14, %c0_15] : memref<8x256xf32, #tpu.memory_space<vmem>>, vector<8x256xf32>
    %20 = arith.maximumf %19, %18 : vector<8x256xf32>
    %c0_16 = arith.constant 0 : index
    %c0_17 = arith.constant 0 : index
    %21 = vector.load %arg6[%c0_16, %c0_17] : memref<8x256xf32, #tpu.memory_space<vmem>>, vector<8x256xf32>
    tpu.vector_store %arg6[%c0_16, %c0_17], %20 {strides = array<i32>} : memref<8x256xf32, #tpu.memory_space<vmem>>, vector<8x256xf32>,
    %c0_18 = arith.constant 0 : index
    %c0_19 = arith.constant 0 : index
    %22 = vector.load %arg5[%c0_18, %c0_19] : memref<8x256xf32, #tpu.memory_space<vmem>>, vector<8x256xf32>
    %23 = arith.addf %22, %18 : vector<8x256xf32>
    %c0_20 = arith.constant 0 : index
    %c0_21 = arith.constant 0 : index
    %24 = vector.load %arg5[%c0_20, %c0_21] : memref<8x256xf32, #tpu.memory_space<vmem>>, vector<8x256xf32>
    tpu.vector_store %arg5[%c0_20, %c0_21], %23 {strides = array<i32>} : memref<8x256xf32, #tpu.memory_space<vmem>>, vector<8x256xf32>,
    %c2_i32 = arith.constant 2 : i32
    %c1_i32_22 = arith.constant 1 : i32
    %25 = arith.cmpi eq, %arg1, %c1_i32_22 : i32
    %26 = arith.extui %25 : i1 to i32
    %c0_i32_23 = arith.constant 0 : i32
    %27 = arith.cmpi ne, %26, %c0_i32_23 : i32
    scf.if %27 {
      %c0_24 = arith.constant 0 : index
      %c0_25 = arith.constant 0 : index
      %28 = vector.load %arg5[%c0_24, %c0_25] : memref<8x256xf32, #tpu.memory_space<vmem>>, vector<8x256xf32>
      %cst = arith.constant dense<0.000000e+00> : vector<256xf32>
      %29 = vector.multi_reduction <add>, %28, %cst [0] : vector<8x256xf32> to vector<256xf32>
      %30 = vector.shape_cast %29 : vector<256xf32> to vector<1x256xf32>
      %cst_26 = arith.constant 3.125000e-02 : f32
      %31 = vector.broadcast %cst_26 : f32 to vector<1x256xf32>
      %32 = arith.mulf %30, %31 : vector<1x256xf32>
      %c0_27 = arith.constant 0 : index
      %c0_28 = arith.constant 0 : index
      %33 = vector.load %arg6[%c0_27, %c0_28] : memref<8x256xf32, #tpu.memory_space<vmem>>, vector<8x256xf32>
      %cst_29 = arith.constant dense<0xFF800000> : vector<256xf32>
      %34 = vector.multi_reduction <maximumf>, %33, %cst_29 [0] : vector<8x256xf32> to vector<256xf32>
      %35 = vector.shape_cast %34 : vector<256xf32> to vector<1x256xf32>
      %c0_30 = arith.constant 0 : index
      %c0_31 = arith.constant 0 : index
      %36 = vector.load %arg5[%c0_30, %c0_31] : memref<8x256xf32, #tpu.memory_space<vmem>>, vector<1x256xf32>
      tpu.vector_store %arg5[%c0_30, %c0_31], %32 {strides = array<i32>} : memref<8x256xf32, #tpu.memory_space<vmem>>, vector<1x256xf32>,
      %c0_32 = arith.constant 0 : index
      %c0_33 = arith.constant 0 : index
      %37 = vector.load %arg6[%c0_32, %c0_33] : memref<8x256xf32, #tpu.memory_space<vmem>>, vector<1x256xf32>
      tpu.vector_store %arg6[%c0_32, %c0_33], %35 {strides = array<i32>} : memref<8x256xf32, #tpu.memory_space<vmem>>, vector<1x256xf32>,
      %cst_34 = arith.constant 0.000000e+00 : f32
      %38 = vector.broadcast %cst_34 : f32 to vector<22x22xf32>
      %c0_35 = arith.constant 0 : index
      %c0_36 = arith.constant 0 : index
      %39 = vector.load %arg7[%c0_35, %c0_36] : memref<22x22xf32, #tpu.memory_space<vmem>>, vector<22x22xf32>
      tpu.vector_store %arg7[%c0_35, %c0_36], %38 {strides = array<i32>} : memref<22x22xf32, #tpu.memory_space<vmem>>, vector<22x22xf32>,
      %cst_37 = arith.constant 0.000000e+00 : f32
      %40 = vector.broadcast %cst_37 : f32 to vector<22x22xf32>
      %c0_38 = arith.constant 0 : index
      %c0_39 = arith.constant 0 : index
      %41 = vector.load %arg8[%c0_38, %c0_39] : memref<22x22xf32, #tpu.memory_space<vmem>>, vector<22x22xf32>
      tpu.vector_store %arg8[%c0_38, %c0_39], %40 {strides = array<i32>} : memref<22x22xf32, #tpu.memory_space<vmem>>, vector<22x22xf32>,
      %c0_40 = arith.constant 0 : index
      %c0_41 = arith.constant 0 : index
      %42 = vector.load %arg5[%c0_40, %c0_41] : memref<8x256xf32, #tpu.memory_space<vmem>>, vector<1x16xf32>
      %43 = vector.shape_cast %42 : vector<1x16xf32> to vector<16xf32>
      %c3 = arith.constant 3 : index
      %c3_42 = arith.constant 3 : index
      %44 = vector.load %arg7[%c3, %c3_42] : memref<22x22xf32, #tpu.memory_space<vmem>>, vector<1x16xf32>
      %45 = vector.shape_cast %44 : vector<1x16xf32> to vector<16xf32>
      %46 = vector.shape_cast %43 : vector<16xf32> to vector<1x16xf32>
      tpu.vector_store %arg7[%c3, %c3_42], %46 {strides = array<i32>} : memref<22x22xf32, #tpu.memory_space<vmem>>, vector<1x16xf32>,
      %c0_43 = arith.constant 0 : index
      %c0_44 = arith.constant 0 : index
      %47 = vector.load %arg6[%c0_43, %c0_44] : memref<8x256xf32, #tpu.memory_space<vmem>>, vector<1x16xf32>
      %48 = vector.shape_cast %47 : vector<1x16xf32> to vector<16xf32>
      %c3_45 = arith.constant 3 : index
      %c3_46 = arith.constant 3 : index
      %49 = vector.load %arg8[%c3_45, %c3_46] : memref<22x22xf32, #tpu.memory_space<vmem>>, vector<1x16xf32>
      %50 = vector.shape_cast %49 : vector<1x16xf32> to vector<16xf32>
      %51 = vector.shape_cast %48 : vector<16xf32> to vector<1x16xf32>
      tpu.vector_store %arg8[%c3_45, %c3_46], %51 {strides = array<i32>} : memref<22x22xf32, #tpu.memory_space<vmem>>, vector<1x16xf32>,
      %c0_47 = arith.constant 0 : index
      %c16 = arith.constant 16 : index
      %52 = vector.load %arg5[%c0_47, %c16] : memref<8x256xf32, #tpu.memory_space<vmem>>, vector<1x16xf32>
      %53 = vector.shape_cast %52 : vector<1x16xf32> to vector<16xf32>
      %c4 = arith.constant 4 : index
      %c3_48 = arith.constant 3 : index
      %54 = vector.load %arg7[%c4, %c3_48] : memref<22x22xf32, #tpu.memory_space<vmem>>, vector<1x16xf32>
      %55 = vector.shape_cast %54 : vector<1x16xf32> to vector<16xf32>
      %56 = vector.shape_cast %53 : vector<16xf32> to vector<1x16xf32>
      tpu.vector_store %arg7[%c4, %c3_48], %56 {strides = array<i32>} : memref<22x22xf32, #tpu.memory_space<vmem>>, vector<1x16xf32>,
      %c0_49 = arith.constant 0 : index
      %c16_50 = arith.constant 16 : index
      %57 = vector.load %arg6[%c0_49, %c16_50] : memref<8x256xf32, #tpu.memory_space<vmem>>, vector<1x16xf32>
      %58 = vector.shape_cast %57 : vector<1x16xf32> to vector<16xf32>
      %c4_51 = arith.constant 4 : index
      %c3_52 = arith.constant 3 : index
      %59 = vector.load %arg8[%c4_51, %c3_52] : memref<22x22xf32, #tpu.memory_space<vmem>>, vector<1x16xf32>
      %60 = vector.shape_cast %59 : vector<1x16xf32> to vector<16xf32>
      %61 = vector.shape_cast %58 : vector<16xf32> to vector<1x16xf32>
      tpu.vector_store %arg8[%c4_51, %c3_52], %61 {strides = array<i32>} : memref<22x22xf32, #tpu.memory_space<vmem>>, vector<1x16xf32>,
      %c0_53 = arith.constant 0 : index
      %c32 = arith.constant 32 : index
      %62 = vector.load %arg5[%c0_53, %c32] : memref<8x256xf32, #tpu.memory_space<vmem>>, vector<1x16xf32>
      %63 = vector.shape_cast %62 : vector<1x16xf32> to vector<16xf32>
      %c5 = arith.constant 5 : index
      %c3_54 = arith.constant 3 : index
      %64 = vector.load %arg7[%c5, %c3_54] : memref<22x22xf32, #tpu.memory_space<vmem>>, vector<1x16xf32>
      %65 = vector.shape_cast %64 : vector<1x16xf32> to vector<16xf32>
      %66 = vector.shape_cast %63 : vector<16xf32> to vector<1x16xf32>
      tpu.vector_store %arg7[%c5, %c3_54], %66 {strides = array<i32>} : memref<22x22xf32, #tpu.memory_space<vmem>>, vector<1x16xf32>,
      %c0_55 = arith.constant 0 : index
      %c32_56 = arith.constant 32 : index
      %67 = vector.load %arg6[%c0_55, %c32_56] : memref<8x256xf32, #tpu.memory_space<vmem>>, vector<1x16xf32>
      %68 = vector.shape_cast %67 : vector<1x16xf32> to vector<16xf32>
      %c5_57 = arith.constant 5 : index
      %c3_58 = arith.constant 3 : index
      %69 = vector.load %arg8[%c5_57, %c3_58] : memref<22x22xf32, #tpu.memory_space<vmem>>, vector<1x16xf32>
      %70 = vector.shape_cast %69 : vector<1x16xf32> to vector<16xf32>
      %71 = vector.shape_cast %68 : vector<16xf32> to vector<1x16xf32>
      tpu.vector_store %arg8[%c5_57, %c3_58], %71 {strides = array<i32>} : memref<22x22xf32, #tpu.memory_space<vmem>>, vector<1x16xf32>,
      %c0_59 = arith.constant 0 : index
      %c48 = arith.constant 48 : index
      %72 = vector.load %arg5[%c0_59, %c48] : memref<8x256xf32, #tpu.memory_space<vmem>>, vector<1x16xf32>
      %73 = vector.shape_cast %72 : vector<1x16xf32> to vector<16xf32>
      %c6 = arith.constant 6 : index
      %c3_60 = arith.constant 3 : index
      %74 = vector.load %arg7[%c6, %c3_60] : memref<22x22xf32, #tpu.memory_space<vmem>>, vector<1x16xf32>
      %75 = vector.shape_cast %74 : vector<1x16xf32> to vector<16xf32>
      %76 = vector.shape_cast %73 : vector<16xf32> to vector<1x16xf32>
      tpu.vector_store %arg7[%c6, %c3_60], %76 {strides = array<i32>} : memref<22x22xf32, #tpu.memory_space<vmem>>, vector<1x16xf32>,
      %c0_61 = arith.constant 0 : index
      %c48_62 = arith.constant 48 : index
      %77 = vector.load %arg6[%c0_61, %c48_62] : memref<8x256xf32, #tpu.memory_space<vmem>>, vector<1x16xf32>
      %78 = vector.shape_cast %77 : vector<1x16xf32> to vector<16xf32>
      %c6_63 = arith.constant 6 : index
      %c3_64 = arith.constant 3 : index
      %79 = vector.load %arg8[%c6_63, %c3_64] : memref<22x22xf32, #tpu.memory_space<vmem>>, vector<1x16xf32>
      %80 = vector.shape_cast %79 : vector<1x16xf32> to vector<16xf32>
      %81 = vector.shape_cast %78 : vector<16xf32> to vector<1x16xf32>
      tpu.vector_store %arg8[%c6_63, %c3_64], %81 {strides = array<i32>} : memref<22x22xf32, #tpu.memory_space<vmem>>, vector<1x16xf32>,
      %c0_65 = arith.constant 0 : index
      %c64 = arith.constant 64 : index
      %82 = vector.load %arg5[%c0_65, %c64] : memref<8x256xf32, #tpu.memory_space<vmem>>, vector<1x16xf32>
      %83 = vector.shape_cast %82 : vector<1x16xf32> to vector<16xf32>
      %c7 = arith.constant 7 : index
      %c3_66 = arith.constant 3 : index
      %84 = vector.load %arg7[%c7, %c3_66] : memref<22x22xf32, #tpu.memory_space<vmem>>, vector<1x16xf32>
      %85 = vector.shape_cast %84 : vector<1x16xf32> to vector<16xf32>
      %86 = vector.shape_cast %83 : vector<16xf32> to vector<1x16xf32>
      tpu.vector_store %arg7[%c7, %c3_66], %86 {strides = array<i32>} : memref<22x22xf32, #tpu.memory_space<vmem>>, vector<1x16xf32>,
      %c0_67 = arith.constant 0 : index
      %c64_68 = arith.constant 64 : index
      %87 = vector.load %arg6[%c0_67, %c64_68] : memref<8x256xf32, #tpu.memory_space<vmem>>, vector<1x16xf32>
      %88 = vector.shape_cast %87 : vector<1x16xf32> to vector<16xf32>
      %c7_69 = arith.constant 7 : index
      %c3_70 = arith.constant 3 : index
      %89 = vector.load %arg8[%c7_69, %c3_70] : memref<22x22xf32, #tpu.memory_space<vmem>>, vector<1x16xf32>
      %90 = vector.shape_cast %89 : vector<1x16xf32> to vector<16xf32>
      %91 = vector.shape_cast %88 : vector<16xf32> to vector<1x16xf32>
      tpu.vector_store %arg8[%c7_69, %c3_70], %91 {strides = array<i32>} : memref<22x22xf32, #tpu.memory_space<vmem>>, vector<1x16xf32>,
      %c0_71 = arith.constant 0 : index
      %c80 = arith.constant 80 : index
      %92 = vector.load %arg5[%c0_71, %c80] : memref<8x256xf32, #tpu.memory_space<vmem>>, vector<1x16xf32>
      %93 = vector.shape_cast %92 : vector<1x16xf32> to vector<16xf32>
      %c8 = arith.constant 8 : index
      %c3_72 = arith.constant 3 : index
      %94 = vector.load %arg7[%c8, %c3_72] : memref<22x22xf32, #tpu.memory_space<vmem>>, vector<1x16xf32>
      %95 = vector.shape_cast %94 : vector<1x16xf32> to vector<16xf32>
      %96 = vector.shape_cast %93 : vector<16xf32> to vector<1x16xf32>
      tpu.vector_store %arg7[%c8, %c3_72], %96 {strides = array<i32>} : memref<22x22xf32, #tpu.memory_space<vmem>>, vector<1x16xf32>,
      %c0_73 = arith.constant 0 : index
      %c80_74 = arith.constant 80 : index
      %97 = vector.load %arg6[%c0_73, %c80_74] : memref<8x256xf32, #tpu.memory_space<vmem>>, vector<1x16xf32>
      %98 = vector.shape_cast %97 : vector<1x16xf32> to vector<16xf32>
      %c8_75 = arith.constant 8 : index
      %c3_76 = arith.constant 3 : index
      %99 = vector.load %arg8[%c8_75, %c3_76] : memref<22x22xf32, #tpu.memory_space<vmem>>, vector<1x16xf32>
      %100 = vector.shape_cast %99 : vector<1x16xf32> to vector<16xf32>
      %101 = vector.shape_cast %98 : vector<16xf32> to vector<1x16xf32>
      tpu.vector_store %arg8[%c8_75, %c3_76], %101 {strides = array<i32>} : memref<22x22xf32, #tpu.memory_space<vmem>>, vector<1x16xf32>,
      %c0_77 = arith.constant 0 : index
      %c96 = arith.constant 96 : index
      %102 = vector.load %arg5[%c0_77, %c96] : memref<8x256xf32, #tpu.memory_space<vmem>>, vector<1x16xf32>
      %103 = vector.shape_cast %102 : vector<1x16xf32> to vector<16xf32>
      %c9 = arith.constant 9 : index
      %c3_78 = arith.constant 3 : index
      %104 = vector.load %arg7[%c9, %c3_78] : memref<22x22xf32, #tpu.memory_space<vmem>>, vector<1x16xf32>
      %105 = vector.shape_cast %104 : vector<1x16xf32> to vector<16xf32>
      %106 = vector.shape_cast %103 : vector<16xf32> to vector<1x16xf32>
      tpu.vector_store %arg7[%c9, %c3_78], %106 {strides = array<i32>} : memref<22x22xf32, #tpu.memory_space<vmem>>, vector<1x16xf32>,
      %c0_79 = arith.constant 0 : index
      %c96_80 = arith.constant 96 : index
      %107 = vector.load %arg6[%c0_79, %c96_80] : memref<8x256xf32, #tpu.memory_space<vmem>>, vector<1x16xf32>
      %108 = vector.shape_cast %107 : vector<1x16xf32> to vector<16xf32>
      %c9_81 = arith.constant 9 : index
      %c3_82 = arith.constant 3 : index
      %109 = vector.load %arg8[%c9_81, %c3_82] : memref<22x22xf32, #tpu.memory_space<vmem>>, vector<1x16xf32>
      %110 = vector.shape_cast %109 : vector<1x16xf32> to vector<16xf32>
      %111 = vector.shape_cast %108 : vector<16xf32> to vector<1x16xf32>
      tpu.vector_store %arg8[%c9_81, %c3_82], %111 {strides = array<i32>} : memref<22x22xf32, #tpu.memory_space<vmem>>, vector<1x16xf32>,
      %c0_83 = arith.constant 0 : index
      %c112 = arith.constant 112 : index
      %112 = vector.load %arg5[%c0_83, %c112] : memref<8x256xf32, #tpu.memory_space<vmem>>, vector<1x16xf32>
      %113 = vector.shape_cast %112 : vector<1x16xf32> to vector<16xf32>
      %c10 = arith.constant 10 : index
      %c3_84 = arith.constant 3 : index
      %114 = vector.load %arg7[%c10, %c3_84] : memref<22x22xf32, #tpu.memory_space<vmem>>, vector<1x16xf32>
      %115 = vector.shape_cast %114 : vector<1x16xf32> to vector<16xf32>
      %116 = vector.shape_cast %113 : vector<16xf32> to vector<1x16xf32>
      tpu.vector_store %arg7[%c10, %c3_84], %116 {strides = array<i32>} : memref<22x22xf32, #tpu.memory_space<vmem>>, vector<1x16xf32>,
      %c0_85 = arith.constant 0 : index
      %c112_86 = arith.constant 112 : index
      %117 = vector.load %arg6[%c0_85, %c112_86] : memref<8x256xf32, #tpu.memory_space<vmem>>, vector<1x16xf32>
      %118 = vector.shape_cast %117 : vector<1x16xf32> to vector<16xf32>
      %c10_87 = arith.constant 10 : index
      %c3_88 = arith.constant 3 : index
      %119 = vector.load %arg8[%c10_87, %c3_88] : memref<22x22xf32, #tpu.memory_space<vmem>>, vector<1x16xf32>
      %120 = vector.shape_cast %119 : vector<1x16xf32> to vector<16xf32>
      %121 = vector.shape_cast %118 : vector<16xf32> to vector<1x16xf32>
      tpu.vector_store %arg8[%c10_87, %c3_88], %121 {strides = array<i32>} : memref<22x22xf32, #tpu.memory_space<vmem>>, vector<1x16xf32>,
      %c0_89 = arith.constant 0 : index
      %c128 = arith.constant 128 : index
      %122 = vector.load %arg5[%c0_89, %c128] : memref<8x256xf32, #tpu.memory_space<vmem>>, vector<1x16xf32>
      %123 = vector.shape_cast %122 : vector<1x16xf32> to vector<16xf32>
      %c11 = arith.constant 11 : index
      %c3_90 = arith.constant 3 : index
      %124 = vector.load %arg7[%c11, %c3_90] : memref<22x22xf32, #tpu.memory_space<vmem>>, vector<1x16xf32>
      %125 = vector.shape_cast %124 : vector<1x16xf32> to vector<16xf32>
      %126 = vector.shape_cast %123 : vector<16xf32> to vector<1x16xf32>
      tpu.vector_store %arg7[%c11, %c3_90], %126 {strides = array<i32>} : memref<22x22xf32, #tpu.memory_space<vmem>>, vector<1x16xf32>,
      %c0_91 = arith.constant 0 : index
      %c128_92 = arith.constant 128 : index
      %127 = vector.load %arg6[%c0_91, %c128_92] : memref<8x256xf32, #tpu.memory_space<vmem>>, vector<1x16xf32>
      %128 = vector.shape_cast %127 : vector<1x16xf32> to vector<16xf32>
      %c11_93 = arith.constant 11 : index
      %c3_94 = arith.constant 3 : index
      %129 = vector.load %arg8[%c11_93, %c3_94] : memref<22x22xf32, #tpu.memory_space<vmem>>, vector<1x16xf32>
      %130 = vector.shape_cast %129 : vector<1x16xf32> to vector<16xf32>
      %131 = vector.shape_cast %128 : vector<16xf32> to vector<1x16xf32>
      tpu.vector_store %arg8[%c11_93, %c3_94], %131 {strides = array<i32>} : memref<22x22xf32, #tpu.memory_space<vmem>>, vector<1x16xf32>,
      %c0_95 = arith.constant 0 : index
      %c144 = arith.constant 144 : index
      %132 = vector.load %arg5[%c0_95, %c144] : memref<8x256xf32, #tpu.memory_space<vmem>>, vector<1x16xf32>
      %133 = vector.shape_cast %132 : vector<1x16xf32> to vector<16xf32>
      %c12 = arith.constant 12 : index
      %c3_96 = arith.constant 3 : index
      %134 = vector.load %arg7[%c12, %c3_96] : memref<22x22xf32, #tpu.memory_space<vmem>>, vector<1x16xf32>
      %135 = vector.shape_cast %134 : vector<1x16xf32> to vector<16xf32>
      %136 = vector.shape_cast %133 : vector<16xf32> to vector<1x16xf32>
      tpu.vector_store %arg7[%c12, %c3_96], %136 {strides = array<i32>} : memref<22x22xf32, #tpu.memory_space<vmem>>, vector<1x16xf32>,
      %c0_97 = arith.constant 0 : index
      %c144_98 = arith.constant 144 : index
      %137 = vector.load %arg6[%c0_97, %c144_98] : memref<8x256xf32, #tpu.memory_space<vmem>>, vector<1x16xf32>
      %138 = vector.shape_cast %137 : vector<1x16xf32> to vector<16xf32>
      %c12_99 = arith.constant 12 : index
      %c3_100 = arith.constant 3 : index
      %139 = vector.load %arg8[%c12_99, %c3_100] : memref<22x22xf32, #tpu.memory_space<vmem>>, vector<1x16xf32>
      %140 = vector.shape_cast %139 : vector<1x16xf32> to vector<16xf32>
      %141 = vector.shape_cast %138 : vector<16xf32> to vector<1x16xf32>
      tpu.vector_store %arg8[%c12_99, %c3_100], %141 {strides = array<i32>} : memref<22x22xf32, #tpu.memory_space<vmem>>, vector<1x16xf32>,
      %c0_101 = arith.constant 0 : index
      %c160 = arith.constant 160 : index
      %142 = vector.load %arg5[%c0_101, %c160] : memref<8x256xf32, #tpu.memory_space<vmem>>, vector<1x16xf32>
      %143 = vector.shape_cast %142 : vector<1x16xf32> to vector<16xf32>
      %c13 = arith.constant 13 : index
      %c3_102 = arith.constant 3 : index
      %144 = vector.load %arg7[%c13, %c3_102] : memref<22x22xf32, #tpu.memory_space<vmem>>, vector<1x16xf32>
      %145 = vector.shape_cast %144 : vector<1x16xf32> to vector<16xf32>
      %146 = vector.shape_cast %143 : vector<16xf32> to vector<1x16xf32>
      tpu.vector_store %arg7[%c13, %c3_102], %146 {strides = array<i32>} : memref<22x22xf32, #tpu.memory_space<vmem>>, vector<1x16xf32>,
      %c0_103 = arith.constant 0 : index
      %c160_104 = arith.constant 160 : index
      %147 = vector.load %arg6[%c0_103, %c160_104] : memref<8x256xf32, #tpu.memory_space<vmem>>, vector<1x16xf32>
      %148 = vector.shape_cast %147 : vector<1x16xf32> to vector<16xf32>
      %c13_105 = arith.constant 13 : index
      %c3_106 = arith.constant 3 : index
      %149 = vector.load %arg8[%c13_105, %c3_106] : memref<22x22xf32, #tpu.memory_space<vmem>>, vector<1x16xf32>
      %150 = vector.shape_cast %149 : vector<1x16xf32> to vector<16xf32>
      %151 = vector.shape_cast %148 : vector<16xf32> to vector<1x16xf32>
      tpu.vector_store %arg8[%c13_105, %c3_106], %151 {strides = array<i32>} : memref<22x22xf32, #tpu.memory_space<vmem>>, vector<1x16xf32>,
      %c0_107 = arith.constant 0 : index
      %c176 = arith.constant 176 : index
      %152 = vector.load %arg5[%c0_107, %c176] : memref<8x256xf32, #tpu.memory_space<vmem>>, vector<1x16xf32>
      %153 = vector.shape_cast %152 : vector<1x16xf32> to vector<16xf32>
      %c14 = arith.constant 14 : index
      %c3_108 = arith.constant 3 : index
      %154 = vector.load %arg7[%c14, %c3_108] : memref<22x22xf32, #tpu.memory_space<vmem>>, vector<1x16xf32>
      %155 = vector.shape_cast %154 : vector<1x16xf32> to vector<16xf32>
      %156 = vector.shape_cast %153 : vector<16xf32> to vector<1x16xf32>
      tpu.vector_store %arg7[%c14, %c3_108], %156 {strides = array<i32>} : memref<22x22xf32, #tpu.memory_space<vmem>>, vector<1x16xf32>,
      %c0_109 = arith.constant 0 : index
      %c176_110 = arith.constant 176 : index
      %157 = vector.load %arg6[%c0_109, %c176_110] : memref<8x256xf32, #tpu.memory_space<vmem>>, vector<1x16xf32>
      %158 = vector.shape_cast %157 : vector<1x16xf32> to vector<16xf32>
      %c14_111 = arith.constant 14 : index
      %c3_112 = arith.constant 3 : index
      %159 = vector.load %arg8[%c14_111, %c3_112] : memref<22x22xf32, #tpu.memory_space<vmem>>, vector<1x16xf32>
      %160 = vector.shape_cast %159 : vector<1x16xf32> to vector<16xf32>
      %161 = vector.shape_cast %158 : vector<16xf32> to vector<1x16xf32>
      tpu.vector_store %arg8[%c14_111, %c3_112], %161 {strides = array<i32>} : memref<22x22xf32, #tpu.memory_space<vmem>>, vector<1x16xf32>,
      %c0_113 = arith.constant 0 : index
      %c192 = arith.constant 192 : index
      %162 = vector.load %arg5[%c0_113, %c192] : memref<8x256xf32, #tpu.memory_space<vmem>>, vector<1x16xf32>
      %163 = vector.shape_cast %162 : vector<1x16xf32> to vector<16xf32>
      %c15 = arith.constant 15 : index
      %c3_114 = arith.constant 3 : index
      %164 = vector.load %arg7[%c15, %c3_114] : memref<22x22xf32, #tpu.memory_space<vmem>>, vector<1x16xf32>
      %165 = vector.shape_cast %164 : vector<1x16xf32> to vector<16xf32>
      %166 = vector.shape_cast %163 : vector<16xf32> to vector<1x16xf32>
      tpu.vector_store %arg7[%c15, %c3_114], %166 {strides = array<i32>} : memref<22x22xf32, #tpu.memory_space<vmem>>, vector<1x16xf32>,
      %c0_115 = arith.constant 0 : index
      %c192_116 = arith.constant 192 : index
      %167 = vector.load %arg6[%c0_115, %c192_116] : memref<8x256xf32, #tpu.memory_space<vmem>>, vector<1x16xf32>
      %168 = vector.shape_cast %167 : vector<1x16xf32> to vector<16xf32>
      %c15_117 = arith.constant 15 : index
      %c3_118 = arith.constant 3 : index
      %169 = vector.load %arg8[%c15_117, %c3_118] : memref<22x22xf32, #tpu.memory_space<vmem>>, vector<1x16xf32>
      %170 = vector.shape_cast %169 : vector<1x16xf32> to vector<16xf32>
      %171 = vector.shape_cast %168 : vector<16xf32> to vector<1x16xf32>
      tpu.vector_store %arg8[%c15_117, %c3_118], %171 {strides = array<i32>} : memref<22x22xf32, #tpu.memory_space<vmem>>, vector<1x16xf32>,
      %c0_119 = arith.constant 0 : index
      %c208 = arith.constant 208 : index
      %172 = vector.load %arg5[%c0_119, %c208] : memref<8x256xf32, #tpu.memory_space<vmem>>, vector<1x16xf32>
      %173 = vector.shape_cast %172 : vector<1x16xf32> to vector<16xf32>
      %c16_120 = arith.constant 16 : index
      %c3_121 = arith.constant 3 : index
      %174 = vector.load %arg7[%c16_120, %c3_121] : memref<22x22xf32, #tpu.memory_space<vmem>>, vector<1x16xf32>
      %175 = vector.shape_cast %174 : vector<1x16xf32> to vector<16xf32>
      %176 = vector.shape_cast %173 : vector<16xf32> to vector<1x16xf32>
      tpu.vector_store %arg7[%c16_120, %c3_121], %176 {strides = array<i32>} : memref<22x22xf32, #tpu.memory_space<vmem>>, vector<1x16xf32>,
      %c0_122 = arith.constant 0 : index
      %c208_123 = arith.constant 208 : index
      %177 = vector.load %arg6[%c0_122, %c208_123] : memref<8x256xf32, #tpu.memory_space<vmem>>, vector<1x16xf32>
      %178 = vector.shape_cast %177 : vector<1x16xf32> to vector<16xf32>
      %c16_124 = arith.constant 16 : index
      %c3_125 = arith.constant 3 : index
      %179 = vector.load %arg8[%c16_124, %c3_125] : memref<22x22xf32, #tpu.memory_space<vmem>>, vector<1x16xf32>
      %180 = vector.shape_cast %179 : vector<1x16xf32> to vector<16xf32>
      %181 = vector.shape_cast %178 : vector<16xf32> to vector<1x16xf32>
      tpu.vector_store %arg8[%c16_124, %c3_125], %181 {strides = array<i32>} : memref<22x22xf32, #tpu.memory_space<vmem>>, vector<1x16xf32>,
      %c0_126 = arith.constant 0 : index
      %c224 = arith.constant 224 : index
      %182 = vector.load %arg5[%c0_126, %c224] : memref<8x256xf32, #tpu.memory_space<vmem>>, vector<1x16xf32>
      %183 = vector.shape_cast %182 : vector<1x16xf32> to vector<16xf32>
      %c17 = arith.constant 17 : index
      %c3_127 = arith.constant 3 : index
      %184 = vector.load %arg7[%c17, %c3_127] : memref<22x22xf32, #tpu.memory_space<vmem>>, vector<1x16xf32>
      %185 = vector.shape_cast %184 : vector<1x16xf32> to vector<16xf32>
      %186 = vector.shape_cast %183 : vector<16xf32> to vector<1x16xf32>
      tpu.vector_store %arg7[%c17, %c3_127], %186 {strides = array<i32>} : memref<22x22xf32, #tpu.memory_space<vmem>>, vector<1x16xf32>,
      %c0_128 = arith.constant 0 : index
      %c224_129 = arith.constant 224 : index
      %187 = vector.load %arg6[%c0_128, %c224_129] : memref<8x256xf32, #tpu.memory_space<vmem>>, vector<1x16xf32>
      %188 = vector.shape_cast %187 : vector<1x16xf32> to vector<16xf32>
      %c17_130 = arith.constant 17 : index
      %c3_131 = arith.constant 3 : index
      %189 = vector.load %arg8[%c17_130, %c3_131] : memref<22x22xf32, #tpu.memory_space<vmem>>, vector<1x16xf32>
      %190 = vector.shape_cast %189 : vector<1x16xf32> to vector<16xf32>
      %191 = vector.shape_cast %188 : vector<16xf32> to vector<1x16xf32>
      tpu.vector_store %arg8[%c17_130, %c3_131], %191 {strides = array<i32>} : memref<22x22xf32, #tpu.memory_space<vmem>>, vector<1x16xf32>,
      %c0_132 = arith.constant 0 : index
      %c240 = arith.constant 240 : index
      %192 = vector.load %arg5[%c0_132, %c240] : memref<8x256xf32, #tpu.memory_space<vmem>>, vector<1x16xf32>
      %193 = vector.shape_cast %192 : vector<1x16xf32> to vector<16xf32>
      %c18 = arith.constant 18 : index
      %c3_133 = arith.constant 3 : index
      %194 = vector.load %arg7[%c18, %c3_133] : memref<22x22xf32, #tpu.memory_space<vmem>>, vector<1x16xf32>
      %195 = vector.shape_cast %194 : vector<1x16xf32> to vector<16xf32>
      %196 = vector.shape_cast %193 : vector<16xf32> to vector<1x16xf32>
      tpu.vector_store %arg7[%c18, %c3_133], %196 {strides = array<i32>} : memref<22x22xf32, #tpu.memory_space<vmem>>, vector<1x16xf32>,
      %c0_134 = arith.constant 0 : index
      %c240_135 = arith.constant 240 : index
      %197 = vector.load %arg6[%c0_134, %c240_135] : memref<8x256xf32, #tpu.memory_space<vmem>>, vector<1x16xf32>
      %198 = vector.shape_cast %197 : vector<1x16xf32> to vector<16xf32>
      %c18_136 = arith.constant 18 : index
      %c3_137 = arith.constant 3 : index
      %199 = vector.load %arg8[%c18_136, %c3_137] : memref<22x22xf32, #tpu.memory_space<vmem>>, vector<1x16xf32>
      %200 = vector.shape_cast %199 : vector<1x16xf32> to vector<16xf32>
      %201 = vector.shape_cast %198 : vector<16xf32> to vector<1x16xf32>
      tpu.vector_store %arg8[%c18_136, %c3_137], %201 {strides = array<i32>} : memref<22x22xf32, #tpu.memory_space<vmem>>, vector<1x16xf32>,
      %c0_138 = arith.constant 0 : index
      %c0_139 = arith.constant 0 : index
      %202 = vector.load %arg7[%c0_138, %c0_139] : memref<22x22xf32, #tpu.memory_space<vmem>>, vector<22x22xf32>
      %c0_140 = arith.constant 0 : index
      %c0_141 = arith.constant 0 : index
      %203 = vector.load %arg8[%c0_140, %c0_141] : memref<22x22xf32, #tpu.memory_space<vmem>>, vector<22x22xf32>
      %cst_142 = arith.constant 0.000000e+00 : f32
      %204 = vector.broadcast %cst_142 : f32 to vector<16x16xf32>
      %c0_143 = arith.constant 0 : index
      %205 = memref.load %arg3[%c0_143] : memref<98xf32, #tpu.memory_space<smem>>
      %c49 = arith.constant 49 : index
      %206 = memref.load %arg3[%c49] : memref<98xf32, #tpu.memory_space<smem>>
      %207 = vector.extract_strided_slice %202 {offsets = [0, 0], sizes = [16, 16], strides = [1, 1]} : vector<22x22xf32> to vector<16x16xf32>
      %208 = vector.broadcast %205 : f32 to vector<16x16xf32>
      %209 = arith.mulf %208, %207 : vector<16x16xf32>
      %210 = arith.addf %204, %209 : vector<16x16xf32>
      %211 = vector.extract_strided_slice %203 {offsets = [0, 0], sizes = [16, 16], strides = [1, 1]} : vector<22x22xf32> to vector<16x16xf32>
      %212 = vector.broadcast %206 : f32 to vector<16x16xf32>
      %213 = arith.mulf %212, %211 : vector<16x16xf32>
      %214 = arith.addf %210, %213 : vector<16x16xf32>
      %c1 = arith.constant 1 : index
      %215 = memref.load %arg3[%c1] : memref<98xf32, #tpu.memory_space<smem>>
      %c50 = arith.constant 50 : index
      %216 = memref.load %arg3[%c50] : memref<98xf32, #tpu.memory_space<smem>>
      %217 = vector.extract_strided_slice %202 {offsets = [0, 1], sizes = [16, 16], strides = [1, 1]} : vector<22x22xf32> to vector<16x16xf32>
      %218 = vector.broadcast %215 : f32 to vector<16x16xf32>
      %219 = arith.mulf %218, %217 : vector<16x16xf32>
      %220 = arith.addf %214, %219 : vector<16x16xf32>
      %221 = vector.extract_strided_slice %203 {offsets = [0, 1], sizes = [16, 16], strides = [1, 1]} : vector<22x22xf32> to vector<16x16xf32>
      %222 = vector.broadcast %216 : f32 to vector<16x16xf32>
      %223 = arith.mulf %222, %221 : vector<16x16xf32>
      %224 = arith.addf %220, %223 : vector<16x16xf32>
      %c2 = arith.constant 2 : index
      %225 = memref.load %arg3[%c2] : memref<98xf32, #tpu.memory_space<smem>>
      %c51 = arith.constant 51 : index
      %226 = memref.load %arg3[%c51] : memref<98xf32, #tpu.memory_space<smem>>
      %227 = vector.extract_strided_slice %202 {offsets = [0, 2], sizes = [16, 16], strides = [1, 1]} : vector<22x22xf32> to vector<16x16xf32>
      %228 = vector.broadcast %225 : f32 to vector<16x16xf32>
      %229 = arith.mulf %228, %227 : vector<16x16xf32>
      %230 = arith.addf %224, %229 : vector<16x16xf32>
      %231 = vector.extract_strided_slice %203 {offsets = [0, 2], sizes = [16, 16], strides = [1, 1]} : vector<22x22xf32> to vector<16x16xf32>
      %232 = vector.broadcast %226 : f32 to vector<16x16xf32>
      %233 = arith.mulf %232, %231 : vector<16x16xf32>
      %234 = arith.addf %230, %233 : vector<16x16xf32>
      %c3_144 = arith.constant 3 : index
      %235 = memref.load %arg3[%c3_144] : memref<98xf32, #tpu.memory_space<smem>>
      %c52 = arith.constant 52 : index
      %236 = memref.load %arg3[%c52] : memref<98xf32, #tpu.memory_space<smem>>
      %237 = vector.extract_strided_slice %202 {offsets = [0, 3], sizes = [16, 16], strides = [1, 1]} : vector<22x22xf32> to vector<16x16xf32>
      %238 = vector.broadcast %235 : f32 to vector<16x16xf32>
      %239 = arith.mulf %238, %237 : vector<16x16xf32>
      %240 = arith.addf %234, %239 : vector<16x16xf32>
      %241 = vector.extract_strided_slice %203 {offsets = [0, 3], sizes = [16, 16], strides = [1, 1]} : vector<22x22xf32> to vector<16x16xf32>
      %242 = vector.broadcast %236 : f32 to vector<16x16xf32>
      %243 = arith.mulf %242, %241 : vector<16x16xf32>
      %244 = arith.addf %240, %243 : vector<16x16xf32>
      %c4_145 = arith.constant 4 : index
      %245 = memref.load %arg3[%c4_145] : memref<98xf32, #tpu.memory_space<smem>>
      %c53 = arith.constant 53 : index
      %246 = memref.load %arg3[%c53] : memref<98xf32, #tpu.memory_space<smem>>
      %247 = vector.extract_strided_slice %202 {offsets = [0, 4], sizes = [16, 16], strides = [1, 1]} : vector<22x22xf32> to vector<16x16xf32>
      %248 = vector.broadcast %245 : f32 to vector<16x16xf32>
      %249 = arith.mulf %248, %247 : vector<16x16xf32>
      %250 = arith.addf %244, %249 : vector<16x16xf32>
      %251 = vector.extract_strided_slice %203 {offsets = [0, 4], sizes = [16, 16], strides = [1, 1]} : vector<22x22xf32> to vector<16x16xf32>
      %252 = vector.broadcast %246 : f32 to vector<16x16xf32>
      %253 = arith.mulf %252, %251 : vector<16x16xf32>
      %254 = arith.addf %250, %253 : vector<16x16xf32>
      %c5_146 = arith.constant 5 : index
      %255 = memref.load %arg3[%c5_146] : memref<98xf32, #tpu.memory_space<smem>>
      %c54 = arith.constant 54 : index
      %256 = memref.load %arg3[%c54] : memref<98xf32, #tpu.memory_space<smem>>
      %257 = vector.extract_strided_slice %202 {offsets = [0, 5], sizes = [16, 16], strides = [1, 1]} : vector<22x22xf32> to vector<16x16xf32>
      %258 = vector.broadcast %255 : f32 to vector<16x16xf32>
      %259 = arith.mulf %258, %257 : vector<16x16xf32>
      %260 = arith.addf %254, %259 : vector<16x16xf32>
      %261 = vector.extract_strided_slice %203 {offsets = [0, 5], sizes = [16, 16], strides = [1, 1]} : vector<22x22xf32> to vector<16x16xf32>
      %262 = vector.broadcast %256 : f32 to vector<16x16xf32>
      %263 = arith.mulf %262, %261 : vector<16x16xf32>
      %264 = arith.addf %260, %263 : vector<16x16xf32>
      %c6_147 = arith.constant 6 : index
      %265 = memref.load %arg3[%c6_147] : memref<98xf32, #tpu.memory_space<smem>>
      %c55 = arith.constant 55 : index
      %266 = memref.load %arg3[%c55] : memref<98xf32, #tpu.memory_space<smem>>
      %267 = vector.extract_strided_slice %202 {offsets = [0, 6], sizes = [16, 16], strides = [1, 1]} : vector<22x22xf32> to vector<16x16xf32>
      %268 = vector.broadcast %265 : f32 to vector<16x16xf32>
      %269 = arith.mulf %268, %267 : vector<16x16xf32>
      %270 = arith.addf %264, %269 : vector<16x16xf32>
      %271 = vector.extract_strided_slice %203 {offsets = [0, 6], sizes = [16, 16], strides = [1, 1]} : vector<22x22xf32> to vector<16x16xf32>
      %272 = vector.broadcast %266 : f32 to vector<16x16xf32>
      %273 = arith.mulf %272, %271 : vector<16x16xf32>
      %274 = arith.addf %270, %273 : vector<16x16xf32>
      %c7_148 = arith.constant 7 : index
      %275 = memref.load %arg3[%c7_148] : memref<98xf32, #tpu.memory_space<smem>>
      %c56 = arith.constant 56 : index
      %276 = memref.load %arg3[%c56] : memref<98xf32, #tpu.memory_space<smem>>
      %277 = vector.extract_strided_slice %202 {offsets = [1, 0], sizes = [16, 16], strides = [1, 1]} : vector<22x22xf32> to vector<16x16xf32>
      %278 = vector.broadcast %275 : f32 to vector<16x16xf32>
      %279 = arith.mulf %278, %277 : vector<16x16xf32>
      %280 = arith.addf %274, %279 : vector<16x16xf32>
      %281 = vector.extract_strided_slice %203 {offsets = [1, 0], sizes = [16, 16], strides = [1, 1]} : vector<22x22xf32> to vector<16x16xf32>
      %282 = vector.broadcast %276 : f32 to vector<16x16xf32>
      %283 = arith.mulf %282, %281 : vector<16x16xf32>
      %284 = arith.addf %280, %283 : vector<16x16xf32>
      %c8_149 = arith.constant 8 : index
      %285 = memref.load %arg3[%c8_149] : memref<98xf32, #tpu.memory_space<smem>>
      %c57 = arith.constant 57 : index
      %286 = memref.load %arg3[%c57] : memref<98xf32, #tpu.memory_space<smem>>
      %287 = vector.extract_strided_slice %202 {offsets = [1, 1], sizes = [16, 16], strides = [1, 1]} : vector<22x22xf32> to vector<16x16xf32>
      %288 = vector.broadcast %285 : f32 to vector<16x16xf32>
      %289 = arith.mulf %288, %287 : vector<16x16xf32>
      %290 = arith.addf %284, %289 : vector<16x16xf32>
      %291 = vector.extract_strided_slice %203 {offsets = [1, 1], sizes = [16, 16], strides = [1, 1]} : vector<22x22xf32> to vector<16x16xf32>
      %292 = vector.broadcast %286 : f32 to vector<16x16xf32>
      %293 = arith.mulf %292, %291 : vector<16x16xf32>
      %294 = arith.addf %290, %293 : vector<16x16xf32>
      %c9_150 = arith.constant 9 : index
      %295 = memref.load %arg3[%c9_150] : memref<98xf32, #tpu.memory_space<smem>>
      %c58 = arith.constant 58 : index
      %296 = memref.load %arg3[%c58] : memref<98xf32, #tpu.memory_space<smem>>
      %297 = vector.extract_strided_slice %202 {offsets = [1, 2], sizes = [16, 16], strides = [1, 1]} : vector<22x22xf32> to vector<16x16xf32>
      %298 = vector.broadcast %295 : f32 to vector<16x16xf32>
      %299 = arith.mulf %298, %297 : vector<16x16xf32>
      %300 = arith.addf %294, %299 : vector<16x16xf32>
      %301 = vector.extract_strided_slice %203 {offsets = [1, 2], sizes = [16, 16], strides = [1, 1]} : vector<22x22xf32> to vector<16x16xf32>
      %302 = vector.broadcast %296 : f32 to vector<16x16xf32>
      %303 = arith.mulf %302, %301 : vector<16x16xf32>
      %304 = arith.addf %300, %303 : vector<16x16xf32>
      %c10_151 = arith.constant 10 : index
      %305 = memref.load %arg3[%c10_151] : memref<98xf32, #tpu.memory_space<smem>>
      %c59 = arith.constant 59 : index
      %306 = memref.load %arg3[%c59] : memref<98xf32, #tpu.memory_space<smem>>
      %307 = vector.extract_strided_slice %202 {offsets = [1, 3], sizes = [16, 16], strides = [1, 1]} : vector<22x22xf32> to vector<16x16xf32>
      %308 = vector.broadcast %305 : f32 to vector<16x16xf32>
      %309 = arith.mulf %308, %307 : vector<16x16xf32>
      %310 = arith.addf %304, %309 : vector<16x16xf32>
      %311 = vector.extract_strided_slice %203 {offsets = [1, 3], sizes = [16, 16], strides = [1, 1]} : vector<22x22xf32> to vector<16x16xf32>
      %312 = vector.broadcast %306 : f32 to vector<16x16xf32>
      %313 = arith.mulf %312, %311 : vector<16x16xf32>
      %314 = arith.addf %310, %313 : vector<16x16xf32>
      %c11_152 = arith.constant 11 : index
      %315 = memref.load %arg3[%c11_152] : memref<98xf32, #tpu.memory_space<smem>>
      %c60 = arith.constant 60 : index
      %316 = memref.load %arg3[%c60] : memref<98xf32, #tpu.memory_space<smem>>
      %317 = vector.extract_strided_slice %202 {offsets = [1, 4], sizes = [16, 16], strides = [1, 1]} : vector<22x22xf32> to vector<16x16xf32>
      %318 = vector.broadcast %315 : f32 to vector<16x16xf32>
      %319 = arith.mulf %318, %317 : vector<16x16xf32>
      %320 = arith.addf %314, %319 : vector<16x16xf32>
      %321 = vector.extract_strided_slice %203 {offsets = [1, 4], sizes = [16, 16], strides = [1, 1]} : vector<22x22xf32> to vector<16x16xf32>
      %322 = vector.broadcast %316 : f32 to vector<16x16xf32>
      %323 = arith.mulf %322, %321 : vector<16x16xf32>
      %324 = arith.addf %320, %323 : vector<16x16xf32>
      %c12_153 = arith.constant 12 : index
      %325 = memref.load %arg3[%c12_153] : memref<98xf32, #tpu.memory_space<smem>>
      %c61 = arith.constant 61 : index
      %326 = memref.load %arg3[%c61] : memref<98xf32, #tpu.memory_space<smem>>
      %327 = vector.extract_strided_slice %202 {offsets = [1, 5], sizes = [16, 16], strides = [1, 1]} : vector<22x22xf32> to vector<16x16xf32>
      %328 = vector.broadcast %325 : f32 to vector<16x16xf32>
      %329 = arith.mulf %328, %327 : vector<16x16xf32>
      %330 = arith.addf %324, %329 : vector<16x16xf32>
      %331 = vector.extract_strided_slice %203 {offsets = [1, 5], sizes = [16, 16], strides = [1, 1]} : vector<22x22xf32> to vector<16x16xf32>
      %332 = vector.broadcast %326 : f32 to vector<16x16xf32>
      %333 = arith.mulf %332, %331 : vector<16x16xf32>
      %334 = arith.addf %330, %333 : vector<16x16xf32>
      %c13_154 = arith.constant 13 : index
      %335 = memref.load %arg3[%c13_154] : memref<98xf32, #tpu.memory_space<smem>>
      %c62 = arith.constant 62 : index
      %336 = memref.load %arg3[%c62] : memref<98xf32, #tpu.memory_space<smem>>
      %337 = vector.extract_strided_slice %202 {offsets = [1, 6], sizes = [16, 16], strides = [1, 1]} : vector<22x22xf32> to vector<16x16xf32>
      %338 = vector.broadcast %335 : f32 to vector<16x16xf32>
      %339 = arith.mulf %338, %337 : vector<16x16xf32>
      %340 = arith.addf %334, %339 : vector<16x16xf32>
      %341 = vector.extract_strided_slice %203 {offsets = [1, 6], sizes = [16, 16], strides = [1, 1]} : vector<22x22xf32> to vector<16x16xf32>
      %342 = vector.broadcast %336 : f32 to vector<16x16xf32>
      %343 = arith.mulf %342, %341 : vector<16x16xf32>
      %344 = arith.addf %340, %343 : vector<16x16xf32>
      %c14_155 = arith.constant 14 : index
      %345 = memref.load %arg3[%c14_155] : memref<98xf32, #tpu.memory_space<smem>>
      %c63 = arith.constant 63 : index
      %346 = memref.load %arg3[%c63] : memref<98xf32, #tpu.memory_space<smem>>
      %347 = vector.extract_strided_slice %202 {offsets = [2, 0], sizes = [16, 16], strides = [1, 1]} : vector<22x22xf32> to vector<16x16xf32>
      %348 = vector.broadcast %345 : f32 to vector<16x16xf32>
      %349 = arith.mulf %348, %347 : vector<16x16xf32>
      %350 = arith.addf %344, %349 : vector<16x16xf32>
      %351 = vector.extract_strided_slice %203 {offsets = [2, 0], sizes = [16, 16], strides = [1, 1]} : vector<22x22xf32> to vector<16x16xf32>
      %352 = vector.broadcast %346 : f32 to vector<16x16xf32>
      %353 = arith.mulf %352, %351 : vector<16x16xf32>
      %354 = arith.addf %350, %353 : vector<16x16xf32>
      %c15_156 = arith.constant 15 : index
      %355 = memref.load %arg3[%c15_156] : memref<98xf32, #tpu.memory_space<smem>>
      %c64_157 = arith.constant 64 : index
      %356 = memref.load %arg3[%c64_157] : memref<98xf32, #tpu.memory_space<smem>>
      %357 = vector.extract_strided_slice %202 {offsets = [2, 1], sizes = [16, 16], strides = [1, 1]} : vector<22x22xf32> to vector<16x16xf32>
      %358 = vector.broadcast %355 : f32 to vector<16x16xf32>
      %359 = arith.mulf %358, %357 : vector<16x16xf32>
      %360 = arith.addf %354, %359 : vector<16x16xf32>
      %361 = vector.extract_strided_slice %203 {offsets = [2, 1], sizes = [16, 16], strides = [1, 1]} : vector<22x22xf32> to vector<16x16xf32>
      %362 = vector.broadcast %356 : f32 to vector<16x16xf32>
      %363 = arith.mulf %362, %361 : vector<16x16xf32>
      %364 = arith.addf %360, %363 : vector<16x16xf32>
      %c16_158 = arith.constant 16 : index
      %365 = memref.load %arg3[%c16_158] : memref<98xf32, #tpu.memory_space<smem>>
      %c65 = arith.constant 65 : index
      %366 = memref.load %arg3[%c65] : memref<98xf32, #tpu.memory_space<smem>>
      %367 = vector.extract_strided_slice %202 {offsets = [2, 2], sizes = [16, 16], strides = [1, 1]} : vector<22x22xf32> to vector<16x16xf32>
      %368 = vector.broadcast %365 : f32 to vector<16x16xf32>
      %369 = arith.mulf %368, %367 : vector<16x16xf32>
      %370 = arith.addf %364, %369 : vector<16x16xf32>
      %371 = vector.extract_strided_slice %203 {offsets = [2, 2], sizes = [16, 16], strides = [1, 1]} : vector<22x22xf32> to vector<16x16xf32>
      %372 = vector.broadcast %366 : f32 to vector<16x16xf32>
      %373 = arith.mulf %372, %371 : vector<16x16xf32>
      %374 = arith.addf %370, %373 : vector<16x16xf32>
      %c17_159 = arith.constant 17 : index
      %375 = memref.load %arg3[%c17_159] : memref<98xf32, #tpu.memory_space<smem>>
      %c66 = arith.constant 66 : index
      %376 = memref.load %arg3[%c66] : memref<98xf32, #tpu.memory_space<smem>>
      %377 = vector.extract_strided_slice %202 {offsets = [2, 3], sizes = [16, 16], strides = [1, 1]} : vector<22x22xf32> to vector<16x16xf32>
      %378 = vector.broadcast %375 : f32 to vector<16x16xf32>
      %379 = arith.mulf %378, %377 : vector<16x16xf32>
      %380 = arith.addf %374, %379 : vector<16x16xf32>
      %381 = vector.extract_strided_slice %203 {offsets = [2, 3], sizes = [16, 16], strides = [1, 1]} : vector<22x22xf32> to vector<16x16xf32>
      %382 = vector.broadcast %376 : f32 to vector<16x16xf32>
      %383 = arith.mulf %382, %381 : vector<16x16xf32>
      %384 = arith.addf %380, %383 : vector<16x16xf32>
      %c18_160 = arith.constant 18 : index
      %385 = memref.load %arg3[%c18_160] : memref<98xf32, #tpu.memory_space<smem>>
      %c67 = arith.constant 67 : index
      %386 = memref.load %arg3[%c67] : memref<98xf32, #tpu.memory_space<smem>>
      %387 = vector.extract_strided_slice %202 {offsets = [2, 4], sizes = [16, 16], strides = [1, 1]} : vector<22x22xf32> to vector<16x16xf32>
      %388 = vector.broadcast %385 : f32 to vector<16x16xf32>
      %389 = arith.mulf %388, %387 : vector<16x16xf32>
      %390 = arith.addf %384, %389 : vector<16x16xf32>
      %391 = vector.extract_strided_slice %203 {offsets = [2, 4], sizes = [16, 16], strides = [1, 1]} : vector<22x22xf32> to vector<16x16xf32>
      %392 = vector.broadcast %386 : f32 to vector<16x16xf32>
      %393 = arith.mulf %392, %391 : vector<16x16xf32>
      %394 = arith.addf %390, %393 : vector<16x16xf32>
      %c19 = arith.constant 19 : index
      %395 = memref.load %arg3[%c19] : memref<98xf32, #tpu.memory_space<smem>>
      %c68 = arith.constant 68 : index
      %396 = memref.load %arg3[%c68] : memref<98xf32, #tpu.memory_space<smem>>
      %397 = vector.extract_strided_slice %202 {offsets = [2, 5], sizes = [16, 16], strides = [1, 1]} : vector<22x22xf32> to vector<16x16xf32>
      %398 = vector.broadcast %395 : f32 to vector<16x16xf32>
      %399 = arith.mulf %398, %397 : vector<16x16xf32>
      %400 = arith.addf %394, %399 : vector<16x16xf32>
      %401 = vector.extract_strided_slice %203 {offsets = [2, 5], sizes = [16, 16], strides = [1, 1]} : vector<22x22xf32> to vector<16x16xf32>
      %402 = vector.broadcast %396 : f32 to vector<16x16xf32>
      %403 = arith.mulf %402, %401 : vector<16x16xf32>
      %404 = arith.addf %400, %403 : vector<16x16xf32>
      %c20 = arith.constant 20 : index
      %405 = memref.load %arg3[%c20] : memref<98xf32, #tpu.memory_space<smem>>
      %c69 = arith.constant 69 : index
      %406 = memref.load %arg3[%c69] : memref<98xf32, #tpu.memory_space<smem>>
      %407 = vector.extract_strided_slice %202 {offsets = [2, 6], sizes = [16, 16], strides = [1, 1]} : vector<22x22xf32> to vector<16x16xf32>
      %408 = vector.broadcast %405 : f32 to vector<16x16xf32>
      %409 = arith.mulf %408, %407 : vector<16x16xf32>
      %410 = arith.addf %404, %409 : vector<16x16xf32>
      %411 = vector.extract_strided_slice %203 {offsets = [2, 6], sizes = [16, 16], strides = [1, 1]} : vector<22x22xf32> to vector<16x16xf32>
      %412 = vector.broadcast %406 : f32 to vector<16x16xf32>
      %413 = arith.mulf %412, %411 : vector<16x16xf32>
      %414 = arith.addf %410, %413 : vector<16x16xf32>
      %c21 = arith.constant 21 : index
      %415 = memref.load %arg3[%c21] : memref<98xf32, #tpu.memory_space<smem>>
      %c70 = arith.constant 70 : index
      %416 = memref.load %arg3[%c70] : memref<98xf32, #tpu.memory_space<smem>>
      %417 = vector.extract_strided_slice %202 {offsets = [3, 0], sizes = [16, 16], strides = [1, 1]} : vector<22x22xf32> to vector<16x16xf32>
      %418 = vector.broadcast %415 : f32 to vector<16x16xf32>
      %419 = arith.mulf %418, %417 : vector<16x16xf32>
      %420 = arith.addf %414, %419 : vector<16x16xf32>
      %421 = vector.extract_strided_slice %203 {offsets = [3, 0], sizes = [16, 16], strides = [1, 1]} : vector<22x22xf32> to vector<16x16xf32>
      %422 = vector.broadcast %416 : f32 to vector<16x16xf32>
      %423 = arith.mulf %422, %421 : vector<16x16xf32>
      %424 = arith.addf %420, %423 : vector<16x16xf32>
      %c22 = arith.constant 22 : index
      %425 = memref.load %arg3[%c22] : memref<98xf32, #tpu.memory_space<smem>>
      %c71 = arith.constant 71 : index
      %426 = memref.load %arg3[%c71] : memref<98xf32, #tpu.memory_space<smem>>
      %427 = vector.extract_strided_slice %202 {offsets = [3, 1], sizes = [16, 16], strides = [1, 1]} : vector<22x22xf32> to vector<16x16xf32>
      %428 = vector.broadcast %425 : f32 to vector<16x16xf32>
      %429 = arith.mulf %428, %427 : vector<16x16xf32>
      %430 = arith.addf %424, %429 : vector<16x16xf32>
      %431 = vector.extract_strided_slice %203 {offsets = [3, 1], sizes = [16, 16], strides = [1, 1]} : vector<22x22xf32> to vector<16x16xf32>
      %432 = vector.broadcast %426 : f32 to vector<16x16xf32>
      %433 = arith.mulf %432, %431 : vector<16x16xf32>
      %434 = arith.addf %430, %433 : vector<16x16xf32>
      %c23 = arith.constant 23 : index
      %435 = memref.load %arg3[%c23] : memref<98xf32, #tpu.memory_space<smem>>
      %c72 = arith.constant 72 : index
      %436 = memref.load %arg3[%c72] : memref<98xf32, #tpu.memory_space<smem>>
      %437 = vector.extract_strided_slice %202 {offsets = [3, 2], sizes = [16, 16], strides = [1, 1]} : vector<22x22xf32> to vector<16x16xf32>
      %438 = vector.broadcast %435 : f32 to vector<16x16xf32>
      %439 = arith.mulf %438, %437 : vector<16x16xf32>
      %440 = arith.addf %434, %439 : vector<16x16xf32>
      %441 = vector.extract_strided_slice %203 {offsets = [3, 2], sizes = [16, 16], strides = [1, 1]} : vector<22x22xf32> to vector<16x16xf32>
      %442 = vector.broadcast %436 : f32 to vector<16x16xf32>
      %443 = arith.mulf %442, %441 : vector<16x16xf32>
      %444 = arith.addf %440, %443 : vector<16x16xf32>
      %c24 = arith.constant 24 : index
      %445 = memref.load %arg3[%c24] : memref<98xf32, #tpu.memory_space<smem>>
      %c73 = arith.constant 73 : index
      %446 = memref.load %arg3[%c73] : memref<98xf32, #tpu.memory_space<smem>>
      %447 = vector.extract_strided_slice %202 {offsets = [3, 3], sizes = [16, 16], strides = [1, 1]} : vector<22x22xf32> to vector<16x16xf32>
      %448 = vector.broadcast %445 : f32 to vector<16x16xf32>
      %449 = arith.mulf %448, %447 : vector<16x16xf32>
      %450 = arith.addf %444, %449 : vector<16x16xf32>
      %451 = vector.extract_strided_slice %203 {offsets = [3, 3], sizes = [16, 16], strides = [1, 1]} : vector<22x22xf32> to vector<16x16xf32>
      %452 = vector.broadcast %446 : f32 to vector<16x16xf32>
      %453 = arith.mulf %452, %451 : vector<16x16xf32>
      %454 = arith.addf %450, %453 : vector<16x16xf32>
      %c25 = arith.constant 25 : index
      %455 = memref.load %arg3[%c25] : memref<98xf32, #tpu.memory_space<smem>>
      %c74 = arith.constant 74 : index
      %456 = memref.load %arg3[%c74] : memref<98xf32, #tpu.memory_space<smem>>
      %457 = vector.extract_strided_slice %202 {offsets = [3, 4], sizes = [16, 16], strides = [1, 1]} : vector<22x22xf32> to vector<16x16xf32>
      %458 = vector.broadcast %455 : f32 to vector<16x16xf32>
      %459 = arith.mulf %458, %457 : vector<16x16xf32>
      %460 = arith.addf %454, %459 : vector<16x16xf32>
      %461 = vector.extract_strided_slice %203 {offsets = [3, 4], sizes = [16, 16], strides = [1, 1]} : vector<22x22xf32> to vector<16x16xf32>
      %462 = vector.broadcast %456 : f32 to vector<16x16xf32>
      %463 = arith.mulf %462, %461 : vector<16x16xf32>
      %464 = arith.addf %460, %463 : vector<16x16xf32>
      %c26 = arith.constant 26 : index
      %465 = memref.load %arg3[%c26] : memref<98xf32, #tpu.memory_space<smem>>
      %c75 = arith.constant 75 : index
      %466 = memref.load %arg3[%c75] : memref<98xf32, #tpu.memory_space<smem>>
      %467 = vector.extract_strided_slice %202 {offsets = [3, 5], sizes = [16, 16], strides = [1, 1]} : vector<22x22xf32> to vector<16x16xf32>
      %468 = vector.broadcast %465 : f32 to vector<16x16xf32>
      %469 = arith.mulf %468, %467 : vector<16x16xf32>
      %470 = arith.addf %464, %469 : vector<16x16xf32>
      %471 = vector.extract_strided_slice %203 {offsets = [3, 5], sizes = [16, 16], strides = [1, 1]} : vector<22x22xf32> to vector<16x16xf32>
      %472 = vector.broadcast %466 : f32 to vector<16x16xf32>
      %473 = arith.mulf %472, %471 : vector<16x16xf32>
      %474 = arith.addf %470, %473 : vector<16x16xf32>
      %c27 = arith.constant 27 : index
      %475 = memref.load %arg3[%c27] : memref<98xf32, #tpu.memory_space<smem>>
      %c76 = arith.constant 76 : index
      %476 = memref.load %arg3[%c76] : memref<98xf32, #tpu.memory_space<smem>>
      %477 = vector.extract_strided_slice %202 {offsets = [3, 6], sizes = [16, 16], strides = [1, 1]} : vector<22x22xf32> to vector<16x16xf32>
      %478 = vector.broadcast %475 : f32 to vector<16x16xf32>
      %479 = arith.mulf %478, %477 : vector<16x16xf32>
      %480 = arith.addf %474, %479 : vector<16x16xf32>
      %481 = vector.extract_strided_slice %203 {offsets = [3, 6], sizes = [16, 16], strides = [1, 1]} : vector<22x22xf32> to vector<16x16xf32>
      %482 = vector.broadcast %476 : f32 to vector<16x16xf32>
      %483 = arith.mulf %482, %481 : vector<16x16xf32>
      %484 = arith.addf %480, %483 : vector<16x16xf32>
      %c28 = arith.constant 28 : index
      %485 = memref.load %arg3[%c28] : memref<98xf32, #tpu.memory_space<smem>>
      %c77 = arith.constant 77 : index
      %486 = memref.load %arg3[%c77] : memref<98xf32, #tpu.memory_space<smem>>
      %487 = vector.extract_strided_slice %202 {offsets = [4, 0], sizes = [16, 16], strides = [1, 1]} : vector<22x22xf32> to vector<16x16xf32>
      %488 = vector.broadcast %485 : f32 to vector<16x16xf32>
      %489 = arith.mulf %488, %487 : vector<16x16xf32>
      %490 = arith.addf %484, %489 : vector<16x16xf32>
      %491 = vector.extract_strided_slice %203 {offsets = [4, 0], sizes = [16, 16], strides = [1, 1]} : vector<22x22xf32> to vector<16x16xf32>
      %492 = vector.broadcast %486 : f32 to vector<16x16xf32>
      %493 = arith.mulf %492, %491 : vector<16x16xf32>
      %494 = arith.addf %490, %493 : vector<16x16xf32>
      %c29 = arith.constant 29 : index
      %495 = memref.load %arg3[%c29] : memref<98xf32, #tpu.memory_space<smem>>
      %c78 = arith.constant 78 : index
      %496 = memref.load %arg3[%c78] : memref<98xf32, #tpu.memory_space<smem>>
      %497 = vector.extract_strided_slice %202 {offsets = [4, 1], sizes = [16, 16], strides = [1, 1]} : vector<22x22xf32> to vector<16x16xf32>
      %498 = vector.broadcast %495 : f32 to vector<16x16xf32>
      %499 = arith.mulf %498, %497 : vector<16x16xf32>
      %500 = arith.addf %494, %499 : vector<16x16xf32>
      %501 = vector.extract_strided_slice %203 {offsets = [4, 1], sizes = [16, 16], strides = [1, 1]} : vector<22x22xf32> to vector<16x16xf32>
      %502 = vector.broadcast %496 : f32 to vector<16x16xf32>
      %503 = arith.mulf %502, %501 : vector<16x16xf32>
      %504 = arith.addf %500, %503 : vector<16x16xf32>
      %c30 = arith.constant 30 : index
      %505 = memref.load %arg3[%c30] : memref<98xf32, #tpu.memory_space<smem>>
      %c79 = arith.constant 79 : index
      %506 = memref.load %arg3[%c79] : memref<98xf32, #tpu.memory_space<smem>>
      %507 = vector.extract_strided_slice %202 {offsets = [4, 2], sizes = [16, 16], strides = [1, 1]} : vector<22x22xf32> to vector<16x16xf32>
      %508 = vector.broadcast %505 : f32 to vector<16x16xf32>
      %509 = arith.mulf %508, %507 : vector<16x16xf32>
      %510 = arith.addf %504, %509 : vector<16x16xf32>
      %511 = vector.extract_strided_slice %203 {offsets = [4, 2], sizes = [16, 16], strides = [1, 1]} : vector<22x22xf32> to vector<16x16xf32>
      %512 = vector.broadcast %506 : f32 to vector<16x16xf32>
      %513 = arith.mulf %512, %511 : vector<16x16xf32>
      %514 = arith.addf %510, %513 : vector<16x16xf32>
      %c31 = arith.constant 31 : index
      %515 = memref.load %arg3[%c31] : memref<98xf32, #tpu.memory_space<smem>>
      %c80_161 = arith.constant 80 : index
      %516 = memref.load %arg3[%c80_161] : memref<98xf32, #tpu.memory_space<smem>>
      %517 = vector.extract_strided_slice %202 {offsets = [4, 3], sizes = [16, 16], strides = [1, 1]} : vector<22x22xf32> to vector<16x16xf32>
      %518 = vector.broadcast %515 : f32 to vector<16x16xf32>
      %519 = arith.mulf %518, %517 : vector<16x16xf32>
      %520 = arith.addf %514, %519 : vector<16x16xf32>
      %521 = vector.extract_strided_slice %203 {offsets = [4, 3], sizes = [16, 16], strides = [1, 1]} : vector<22x22xf32> to vector<16x16xf32>
      %522 = vector.broadcast %516 : f32 to vector<16x16xf32>
      %523 = arith.mulf %522, %521 : vector<16x16xf32>
      %524 = arith.addf %520, %523 : vector<16x16xf32>
      %c32_162 = arith.constant 32 : index
      %525 = memref.load %arg3[%c32_162] : memref<98xf32, #tpu.memory_space<smem>>
      %c81 = arith.constant 81 : index
      %526 = memref.load %arg3[%c81] : memref<98xf32, #tpu.memory_space<smem>>
      %527 = vector.extract_strided_slice %202 {offsets = [4, 4], sizes = [16, 16], strides = [1, 1]} : vector<22x22xf32> to vector<16x16xf32>
      %528 = vector.broadcast %525 : f32 to vector<16x16xf32>
      %529 = arith.mulf %528, %527 : vector<16x16xf32>
      %530 = arith.addf %524, %529 : vector<16x16xf32>
      %531 = vector.extract_strided_slice %203 {offsets = [4, 4], sizes = [16, 16], strides = [1, 1]} : vector<22x22xf32> to vector<16x16xf32>
      %532 = vector.broadcast %526 : f32 to vector<16x16xf32>
      %533 = arith.mulf %532, %531 : vector<16x16xf32>
      %534 = arith.addf %530, %533 : vector<16x16xf32>
      %c33 = arith.constant 33 : index
      %535 = memref.load %arg3[%c33] : memref<98xf32, #tpu.memory_space<smem>>
      %c82 = arith.constant 82 : index
      %536 = memref.load %arg3[%c82] : memref<98xf32, #tpu.memory_space<smem>>
      %537 = vector.extract_strided_slice %202 {offsets = [4, 5], sizes = [16, 16], strides = [1, 1]} : vector<22x22xf32> to vector<16x16xf32>
      %538 = vector.broadcast %535 : f32 to vector<16x16xf32>
      %539 = arith.mulf %538, %537 : vector<16x16xf32>
      %540 = arith.addf %534, %539 : vector<16x16xf32>
      %541 = vector.extract_strided_slice %203 {offsets = [4, 5], sizes = [16, 16], strides = [1, 1]} : vector<22x22xf32> to vector<16x16xf32>
      %542 = vector.broadcast %536 : f32 to vector<16x16xf32>
      %543 = arith.mulf %542, %541 : vector<16x16xf32>
      %544 = arith.addf %540, %543 : vector<16x16xf32>
      %c34 = arith.constant 34 : index
      %545 = memref.load %arg3[%c34] : memref<98xf32, #tpu.memory_space<smem>>
      %c83 = arith.constant 83 : index
      %546 = memref.load %arg3[%c83] : memref<98xf32, #tpu.memory_space<smem>>
      %547 = vector.extract_strided_slice %202 {offsets = [4, 6], sizes = [16, 16], strides = [1, 1]} : vector<22x22xf32> to vector<16x16xf32>
      %548 = vector.broadcast %545 : f32 to vector<16x16xf32>
      %549 = arith.mulf %548, %547 : vector<16x16xf32>
      %550 = arith.addf %544, %549 : vector<16x16xf32>
      %551 = vector.extract_strided_slice %203 {offsets = [4, 6], sizes = [16, 16], strides = [1, 1]} : vector<22x22xf32> to vector<16x16xf32>
      %552 = vector.broadcast %546 : f32 to vector<16x16xf32>
      %553 = arith.mulf %552, %551 : vector<16x16xf32>
      %554 = arith.addf %550, %553 : vector<16x16xf32>
      %c35 = arith.constant 35 : index
      %555 = memref.load %arg3[%c35] : memref<98xf32, #tpu.memory_space<smem>>
      %c84 = arith.constant 84 : index
      %556 = memref.load %arg3[%c84] : memref<98xf32, #tpu.memory_space<smem>>
      %557 = vector.extract_strided_slice %202 {offsets = [5, 0], sizes = [16, 16], strides = [1, 1]} : vector<22x22xf32> to vector<16x16xf32>
      %558 = vector.broadcast %555 : f32 to vector<16x16xf32>
      %559 = arith.mulf %558, %557 : vector<16x16xf32>
      %560 = arith.addf %554, %559 : vector<16x16xf32>
      %561 = vector.extract_strided_slice %203 {offsets = [5, 0], sizes = [16, 16], strides = [1, 1]} : vector<22x22xf32> to vector<16x16xf32>
      %562 = vector.broadcast %556 : f32 to vector<16x16xf32>
      %563 = arith.mulf %562, %561 : vector<16x16xf32>
      %564 = arith.addf %560, %563 : vector<16x16xf32>
      %c36 = arith.constant 36 : index
      %565 = memref.load %arg3[%c36] : memref<98xf32, #tpu.memory_space<smem>>
      %c85 = arith.constant 85 : index
      %566 = memref.load %arg3[%c85] : memref<98xf32, #tpu.memory_space<smem>>
      %567 = vector.extract_strided_slice %202 {offsets = [5, 1], sizes = [16, 16], strides = [1, 1]} : vector<22x22xf32> to vector<16x16xf32>
      %568 = vector.broadcast %565 : f32 to vector<16x16xf32>
      %569 = arith.mulf %568, %567 : vector<16x16xf32>
      %570 = arith.addf %564, %569 : vector<16x16xf32>
      %571 = vector.extract_strided_slice %203 {offsets = [5, 1], sizes = [16, 16], strides = [1, 1]} : vector<22x22xf32> to vector<16x16xf32>
      %572 = vector.broadcast %566 : f32 to vector<16x16xf32>
      %573 = arith.mulf %572, %571 : vector<16x16xf32>
      %574 = arith.addf %570, %573 : vector<16x16xf32>
      %c37 = arith.constant 37 : index
      %575 = memref.load %arg3[%c37] : memref<98xf32, #tpu.memory_space<smem>>
      %c86 = arith.constant 86 : index
      %576 = memref.load %arg3[%c86] : memref<98xf32, #tpu.memory_space<smem>>
      %577 = vector.extract_strided_slice %202 {offsets = [5, 2], sizes = [16, 16], strides = [1, 1]} : vector<22x22xf32> to vector<16x16xf32>
      %578 = vector.broadcast %575 : f32 to vector<16x16xf32>
      %579 = arith.mulf %578, %577 : vector<16x16xf32>
      %580 = arith.addf %574, %579 : vector<16x16xf32>
      %581 = vector.extract_strided_slice %203 {offsets = [5, 2], sizes = [16, 16], strides = [1, 1]} : vector<22x22xf32> to vector<16x16xf32>
      %582 = vector.broadcast %576 : f32 to vector<16x16xf32>
      %583 = arith.mulf %582, %581 : vector<16x16xf32>
      %584 = arith.addf %580, %583 : vector<16x16xf32>
      %c38 = arith.constant 38 : index
      %585 = memref.load %arg3[%c38] : memref<98xf32, #tpu.memory_space<smem>>
      %c87 = arith.constant 87 : index
      %586 = memref.load %arg3[%c87] : memref<98xf32, #tpu.memory_space<smem>>
      %587 = vector.extract_strided_slice %202 {offsets = [5, 3], sizes = [16, 16], strides = [1, 1]} : vector<22x22xf32> to vector<16x16xf32>
      %588 = vector.broadcast %585 : f32 to vector<16x16xf32>
      %589 = arith.mulf %588, %587 : vector<16x16xf32>
      %590 = arith.addf %584, %589 : vector<16x16xf32>
      %591 = vector.extract_strided_slice %203 {offsets = [5, 3], sizes = [16, 16], strides = [1, 1]} : vector<22x22xf32> to vector<16x16xf32>
      %592 = vector.broadcast %586 : f32 to vector<16x16xf32>
      %593 = arith.mulf %592, %591 : vector<16x16xf32>
      %594 = arith.addf %590, %593 : vector<16x16xf32>
      %c39 = arith.constant 39 : index
      %595 = memref.load %arg3[%c39] : memref<98xf32, #tpu.memory_space<smem>>
      %c88 = arith.constant 88 : index
      %596 = memref.load %arg3[%c88] : memref<98xf32, #tpu.memory_space<smem>>
      %597 = vector.extract_strided_slice %202 {offsets = [5, 4], sizes = [16, 16], strides = [1, 1]} : vector<22x22xf32> to vector<16x16xf32>
      %598 = vector.broadcast %595 : f32 to vector<16x16xf32>
      %599 = arith.mulf %598, %597 : vector<16x16xf32>
      %600 = arith.addf %594, %599 : vector<16x16xf32>
      %601 = vector.extract_strided_slice %203 {offsets = [5, 4], sizes = [16, 16], strides = [1, 1]} : vector<22x22xf32> to vector<16x16xf32>
      %602 = vector.broadcast %596 : f32 to vector<16x16xf32>
      %603 = arith.mulf %602, %601 : vector<16x16xf32>
      %604 = arith.addf %600, %603 : vector<16x16xf32>
      %c40 = arith.constant 40 : index
      %605 = memref.load %arg3[%c40] : memref<98xf32, #tpu.memory_space<smem>>
      %c89 = arith.constant 89 : index
      %606 = memref.load %arg3[%c89] : memref<98xf32, #tpu.memory_space<smem>>
      %607 = vector.extract_strided_slice %202 {offsets = [5, 5], sizes = [16, 16], strides = [1, 1]} : vector<22x22xf32> to vector<16x16xf32>
      %608 = vector.broadcast %605 : f32 to vector<16x16xf32>
      %609 = arith.mulf %608, %607 : vector<16x16xf32>
      %610 = arith.addf %604, %609 : vector<16x16xf32>
      %611 = vector.extract_strided_slice %203 {offsets = [5, 5], sizes = [16, 16], strides = [1, 1]} : vector<22x22xf32> to vector<16x16xf32>
      %612 = vector.broadcast %606 : f32 to vector<16x16xf32>
      %613 = arith.mulf %612, %611 : vector<16x16xf32>
      %614 = arith.addf %610, %613 : vector<16x16xf32>
      %c41 = arith.constant 41 : index
      %615 = memref.load %arg3[%c41] : memref<98xf32, #tpu.memory_space<smem>>
      %c90 = arith.constant 90 : index
      %616 = memref.load %arg3[%c90] : memref<98xf32, #tpu.memory_space<smem>>
      %617 = vector.extract_strided_slice %202 {offsets = [5, 6], sizes = [16, 16], strides = [1, 1]} : vector<22x22xf32> to vector<16x16xf32>
      %618 = vector.broadcast %615 : f32 to vector<16x16xf32>
      %619 = arith.mulf %618, %617 : vector<16x16xf32>
      %620 = arith.addf %614, %619 : vector<16x16xf32>
      %621 = vector.extract_strided_slice %203 {offsets = [5, 6], sizes = [16, 16], strides = [1, 1]} : vector<22x22xf32> to vector<16x16xf32>
      %622 = vector.broadcast %616 : f32 to vector<16x16xf32>
      %623 = arith.mulf %622, %621 : vector<16x16xf32>
      %624 = arith.addf %620, %623 : vector<16x16xf32>
      %c42 = arith.constant 42 : index
      %625 = memref.load %arg3[%c42] : memref<98xf32, #tpu.memory_space<smem>>
      %c91 = arith.constant 91 : index
      %626 = memref.load %arg3[%c91] : memref<98xf32, #tpu.memory_space<smem>>
      %627 = vector.extract_strided_slice %202 {offsets = [6, 0], sizes = [16, 16], strides = [1, 1]} : vector<22x22xf32> to vector<16x16xf32>
      %628 = vector.broadcast %625 : f32 to vector<16x16xf32>
      %629 = arith.mulf %628, %627 : vector<16x16xf32>
      %630 = arith.addf %624, %629 : vector<16x16xf32>
      %631 = vector.extract_strided_slice %203 {offsets = [6, 0], sizes = [16, 16], strides = [1, 1]} : vector<22x22xf32> to vector<16x16xf32>
      %632 = vector.broadcast %626 : f32 to vector<16x16xf32>
      %633 = arith.mulf %632, %631 : vector<16x16xf32>
      %634 = arith.addf %630, %633 : vector<16x16xf32>
      %c43 = arith.constant 43 : index
      %635 = memref.load %arg3[%c43] : memref<98xf32, #tpu.memory_space<smem>>
      %c92 = arith.constant 92 : index
      %636 = memref.load %arg3[%c92] : memref<98xf32, #tpu.memory_space<smem>>
      %637 = vector.extract_strided_slice %202 {offsets = [6, 1], sizes = [16, 16], strides = [1, 1]} : vector<22x22xf32> to vector<16x16xf32>
      %638 = vector.broadcast %635 : f32 to vector<16x16xf32>
      %639 = arith.mulf %638, %637 : vector<16x16xf32>
      %640 = arith.addf %634, %639 : vector<16x16xf32>
      %641 = vector.extract_strided_slice %203 {offsets = [6, 1], sizes = [16, 16], strides = [1, 1]} : vector<22x22xf32> to vector<16x16xf32>
      %642 = vector.broadcast %636 : f32 to vector<16x16xf32>
      %643 = arith.mulf %642, %641 : vector<16x16xf32>
      %644 = arith.addf %640, %643 : vector<16x16xf32>
      %c44 = arith.constant 44 : index
      %645 = memref.load %arg3[%c44] : memref<98xf32, #tpu.memory_space<smem>>
      %c93 = arith.constant 93 : index
      %646 = memref.load %arg3[%c93] : memref<98xf32, #tpu.memory_space<smem>>
      %647 = vector.extract_strided_slice %202 {offsets = [6, 2], sizes = [16, 16], strides = [1, 1]} : vector<22x22xf32> to vector<16x16xf32>
      %648 = vector.broadcast %645 : f32 to vector<16x16xf32>
      %649 = arith.mulf %648, %647 : vector<16x16xf32>
      %650 = arith.addf %644, %649 : vector<16x16xf32>
      %651 = vector.extract_strided_slice %203 {offsets = [6, 2], sizes = [16, 16], strides = [1, 1]} : vector<22x22xf32> to vector<16x16xf32>
      %652 = vector.broadcast %646 : f32 to vector<16x16xf32>
      %653 = arith.mulf %652, %651 : vector<16x16xf32>
      %654 = arith.addf %650, %653 : vector<16x16xf32>
      %c45 = arith.constant 45 : index
      %655 = memref.load %arg3[%c45] : memref<98xf32, #tpu.memory_space<smem>>
      %c94 = arith.constant 94 : index
      %656 = memref.load %arg3[%c94] : memref<98xf32, #tpu.memory_space<smem>>
      %657 = vector.extract_strided_slice %202 {offsets = [6, 3], sizes = [16, 16], strides = [1, 1]} : vector<22x22xf32> to vector<16x16xf32>
      %658 = vector.broadcast %655 : f32 to vector<16x16xf32>
      %659 = arith.mulf %658, %657 : vector<16x16xf32>
      %660 = arith.addf %654, %659 : vector<16x16xf32>
      %661 = vector.extract_strided_slice %203 {offsets = [6, 3], sizes = [16, 16], strides = [1, 1]} : vector<22x22xf32> to vector<16x16xf32>
      %662 = vector.broadcast %656 : f32 to vector<16x16xf32>
      %663 = arith.mulf %662, %661 : vector<16x16xf32>
      %664 = arith.addf %660, %663 : vector<16x16xf32>
      %c46 = arith.constant 46 : index
      %665 = memref.load %arg3[%c46] : memref<98xf32, #tpu.memory_space<smem>>
      %c95 = arith.constant 95 : index
      %666 = memref.load %arg3[%c95] : memref<98xf32, #tpu.memory_space<smem>>
      %667 = vector.extract_strided_slice %202 {offsets = [6, 4], sizes = [16, 16], strides = [1, 1]} : vector<22x22xf32> to vector<16x16xf32>
      %668 = vector.broadcast %665 : f32 to vector<16x16xf32>
      %669 = arith.mulf %668, %667 : vector<16x16xf32>
      %670 = arith.addf %664, %669 : vector<16x16xf32>
      %671 = vector.extract_strided_slice %203 {offsets = [6, 4], sizes = [16, 16], strides = [1, 1]} : vector<22x22xf32> to vector<16x16xf32>
      %672 = vector.broadcast %666 : f32 to vector<16x16xf32>
      %673 = arith.mulf %672, %671 : vector<16x16xf32>
      %674 = arith.addf %670, %673 : vector<16x16xf32>
      %c47 = arith.constant 47 : index
      %675 = memref.load %arg3[%c47] : memref<98xf32, #tpu.memory_space<smem>>
      %c96_163 = arith.constant 96 : index
      %676 = memref.load %arg3[%c96_163] : memref<98xf32, #tpu.memory_space<smem>>
      %677 = vector.extract_strided_slice %202 {offsets = [6, 5], sizes = [16, 16], strides = [1, 1]} : vector<22x22xf32> to vector<16x16xf32>
      %678 = vector.broadcast %675 : f32 to vector<16x16xf32>
      %679 = arith.mulf %678, %677 : vector<16x16xf32>
      %680 = arith.addf %674, %679 : vector<16x16xf32>
      %681 = vector.extract_strided_slice %203 {offsets = [6, 5], sizes = [16, 16], strides = [1, 1]} : vector<22x22xf32> to vector<16x16xf32>
      %682 = vector.broadcast %676 : f32 to vector<16x16xf32>
      %683 = arith.mulf %682, %681 : vector<16x16xf32>
      %684 = arith.addf %680, %683 : vector<16x16xf32>
      %c48_164 = arith.constant 48 : index
      %685 = memref.load %arg3[%c48_164] : memref<98xf32, #tpu.memory_space<smem>>
      %c97 = arith.constant 97 : index
      %686 = memref.load %arg3[%c97] : memref<98xf32, #tpu.memory_space<smem>>
      %687 = vector.extract_strided_slice %202 {offsets = [6, 6], sizes = [16, 16], strides = [1, 1]} : vector<22x22xf32> to vector<16x16xf32>
      %688 = vector.broadcast %685 : f32 to vector<16x16xf32>
      %689 = arith.mulf %688, %687 : vector<16x16xf32>
      %690 = arith.addf %684, %689 : vector<16x16xf32>
      %691 = vector.extract_strided_slice %203 {offsets = [6, 6], sizes = [16, 16], strides = [1, 1]} : vector<22x22xf32> to vector<16x16xf32>
      %692 = vector.broadcast %686 : f32 to vector<16x16xf32>
      %693 = arith.mulf %692, %691 : vector<16x16xf32>
      %694 = arith.addf %690, %693 : vector<16x16xf32>
      %695 = arith.negf %694 : vector<16x16xf32>
      %696 = math.exp %695 : vector<16x16xf32>
      %cst_165 = arith.constant 1.000000e+00 : f32
      %697 = vector.broadcast %cst_165 : f32 to vector<16x16xf32>
      %698 = arith.addf %697, %696 : vector<16x16xf32>
      %699 = arith.divf %697, %698 : vector<16x16xf32>
      %c0_166 = arith.constant 0 : index
      %c0_167 = arith.constant 0 : index
      %c0_168 = arith.constant 0 : index
      %c0_169 = arith.constant 0 : index
      %700 = vector.load %arg4[%c0_166, %c0_167, %c0_168, %c0_169] : memref<1x1x16x16xf32, #tpu.memory_space<vmem>>, vector<1x1x16x16xf32>
      %701 = vector.shape_cast %700 : vector<1x1x16x16xf32> to vector<16x16xf32>
      %702 = vector.shape_cast %699 : vector<16x16xf32> to vector<1x1x16x16xf32>
      tpu.vector_store %arg4[%c0_166, %c0_167, %c0_168, %c0_169], %702 {strides = array<i32>} : memref<1x1x16x16xf32, #tpu.memory_space<vmem>>, vector<1x1x16x16xf32>,
    } else {
    }
    return
  }
  func.func @transform_0(%arg0: i32, %arg1: i32) -> (i32, i32, i32) {
    %c0_i32 = arith.constant 0 : i32
    %c0_i32_0 = arith.constant 0 : i32
    return %arg0, %arg1, %c0_i32 : i32, i32, i32
  }
  func.func @transform_1(%arg0: i32, %arg1: i32) -> i32 {
    %c0_i32 = arith.constant 0 : i32
    %c0_i32_0 = arith.constant 0 : i32
    return %c0_i32 : i32
  }
  func.func @transform_2(%arg0: i32, %arg1: i32) -> (i32, i32, i32, i32) {
    %c0_i32 = arith.constant 0 : i32
    %c0_i32_0 = arith.constant 0 : i32
    %c0_i32_1 = arith.constant 0 : i32
    %c0_i32_2 = arith.constant 0 : i32
    return %arg0, %c0_i32, %c0_i32_0, %c0_i32_1 : i32, i32, i32, i32
  }
}

</mosaic_0001>

<bundles_post_ra>
// kernel: tpu_custom_call.1
= control target key start
LH: loop header
LB: loop body
LE: loop exit
PB: predicated region body
PF: predicated region fallthrough
CT: control target
= control target key end

     0   :  { %s5377_s0 = inlined_call_operand.hbm [shape: f32[2,32,256], index: 0, kind: input, shape index: {}]   ;;  %s5378_s1 = inlined_call_operand.vmem [shape: f32[98], index: 1, kind: input, shape index: {}]   ;;  %s5379_s2 = inlined_call_operand.hbm [shape: f32[2,1,16,16], index: 2, kind: output, shape index: {}]  }
   0x1   :  { %5415 = sst [smem:[#allocation19_spill]] %s5378_s1 }
   0x2   :  { %7 = vsyncpa [#allocation7], 0 }
   0x3   :  { %9 = vsyncpa [#allocation7 + $0x1], 0 }
   0x4   :  { %10 = vsyncpa [#allocation9], 0 }
   0x5   :  { %11 = vsyncpa [#allocation8], 0 }
   0x6   :  { %13 = vsyncpa [#allocation8 + $0x1], 0  ;;  %s3044_s9 = smov 0   ;;  %s3046_s10 = smov 0  }
   0x7   :  { %s3048_s11 = smov 0   ;;  %s3050_s12 = smov 0  }
   0x8   :  { %s3052_s13 = smov 0   ;;  %s3054_s14 = smov 0  }
   0x9   :  { %s3056_s15 = smov 0   ;;  %s3058_s16 = smov 0  }
   0xa   :  { %s3060_s17 = smov 0   ;;  %s3062_s18 = smov 0  }
   0xb   :  { %s3064_s19 = smov 0  }
   0xc LB: > { %5416 = sst [smem:[#allocation15_spill]] %s2994_s17  ;;  %s2552_s20 = sadd.s32 4294967295, %s3002_s19   ;;  %s3002_s19 = sphi %s3064_s19, %s19_s19   ;;  %s2998_s18 = sphi %s3062_s18, %s5467_s18   ;;  %s2994_s17 = sphi %s3060_s17, %s5458_s17   ;;  %s2990_s16 = sphi %s3058_s16, %s5466_s16   ;;  %s2986_s15 = sphi %s3056_s15, %s5457_s15   ;;  %s2982_s14 = sphi %s3054_s14, %s5465_s14   ;;  %s2978_s13 = sphi %s3052_s13, %s5464_s13   ;;  %s2974_s12 = sphi %s3050_s12, %s5463_s12   ;;  %s2970_s11 = sphi %s3048_s11, %s5462_s11   ;;  %s2966_s10 = sphi %s3046_s10, %s5461_s10   ;;  %s2962_s9 = sphi %s3044_s9, %s5460_s9  }
   0xd   : > { %s2553_s21 = sadd.s32 4294967294, %s3002_s19   ;;  %p47_p0 = scmp.ne.s32.totalorder %s2982_s14, %s2978_s13 }
   0xe   : > { %p48_p1 = scmp.eq.s32.totalorder %s3002_s19, 0  ;;  %p53_p2 = scmp.ne.s32.totalorder %s2978_s13, %s2974_s12 }
   0xf   : > { %p3104_p3 = scmp.eq.s32.totalorder %s2552_s20, 0  ;;  %p97_p5 = scmp.ne.s32.totalorder %s2970_s11, %s2966_s10 }
  0x10   : > { %p3109_p4 = por %p48_p1, %p47_p0  ;;  %p98_p7 = scmp.eq.s32.totalorder %s2552_s20, 3 }
  0x11   : > { %p3117_p6 = por %p3104_p3, %p53_p2  ;;  %p103_p8 = scmp.ne.s32.totalorder %s2966_s10, %s2962_s9 }
  0x12   : > { %p104_p9 = scmp.eq.s32.totalorder %s2553_s21, 3  ;;  %p3123_p10 = por %p98_p7, %p97_p5 }
  0x13   : > { %s5419_s26 = scalar_select %p3117_p6, 1, 0 }
  0x14   : > { %s5420_s27 = scalar_select %p3123_p10, 1, 0 }
  0x15   : > { %p2554_p11 = scmp.ge.s32.totalorder %s3002_s19, 1  ;;  %p3128_p12 = por %p104_p9, %p103_p8 }
  0x16   : > { %p111_p13 = scmp.lt.s32.totalorder %s3002_s19, 5  ;;  %s5423_s1 = sld [smem:[#allocation19_spill]] }
  0x17   : > { %s5421_s28 = scalar_select %p3128_p12, 1, 0 }
  0x18   : > { %p3136_p0 = pnand %p2554_p11, %p111_p13  ;;  %p2697_p2 = scmp.lt.s32.totalorder %s3002_s19, 4 }
  0x19   : > { %5422 = sst [smem:[#allocation16_spill]] %s5421_s28 }
  0x1a   : > { %s5424_s4 = scalar_select %p3136_p0, 1, 0 }
  0x1b   : > { %p2684_p1 = pneg %p3136_p0  ;;  %p3147_p7 = pnand %p2697_p2, %p3109_p4 }
  0x1c   : > { %s124_s3 = sshll.u32 %s5423_s1, 4  ;;  %s125_s3 = int_to_ptr.vmem [resolvable:$true] %s124_s3 }
  0x1d   : > { %p2685_p5 = pnand %p2684_p1, %p3104_p3  ;;  %s2831_s6 = scalar_lea.vmem %s125_s3, 16 }
  0x1e   : > { %p2832_p8 = scmp.ne.s32.totalorder %s125_s3, %s2831_s6  ;;  %p2839_p13 = scmp.lt.s32.totalorder %s125_s3, %s125_s3 }
  0x1f   : > { %p2833_p9 = pneg %p2685_p5  ;;  %p2840_p10 = scmp.lt.s32.totalorder %s2831_s6, %s2831_s6 }
  0x21   : > { %p2834_p12 = pnand %p2833_p9, %p2832_p8  ;;  %p2841_p6 = por %p2840_p10, %p2839_p13 }
  0x23   : > { %p2835_p11 = pneg %p2834_p12 }
  0x25   : > { %p2842_p0 = pnand %p2841_p6, %p2835_p11 }
  0x27   : > { %2845 = shalt.err (!%p2842_p0)
}
  0x28   : > { %s3004_s7 = smov [#allocation10]   ;;  %s28_s8 = sadd.s32 1, %s2994_s17 }
  0x29   : > { %2687 = dma.vmem_to_smem (!%p2685_p5), %s125_s3, 16, %s3004_s7, [#allocation9]  }
  0x2a   : > { %s31_s12 = sadd.s32 1, %s2998_s18  ;;  %p29_p4 = scmp.ge.s32.totalorder %s28_s8, 2 }
  0x2b   : > { %s135_s20 = sand.u32 1, %s2982_s14   ;;  %s2674_s29 = sshll.u32 %s2994_s17, 2 }
  0x2c   : > { %s2557_s21 = sshll.u32 %s135_s20, 5  ;;  %s5469_s8 = smov (%p29_p4, %s28_s8), 0 }
  0x2d   : > { %5426 = sst [smem:[#allocation17_spill]] %s5469_s8  ;;  %s5471_s12 = smov (!%p29_p4, %s31_s12), %s2998_s18 }
  0x2e   : > { %s36_s25 = ssub.s32 %s2994_s17, %s5469_s8  ;;  %p33_p6 = scmp.ge.s32.totalorder %s5471_s12, 2 }
  0x2f   : > { %s2560_s30 = sshll.u32 %s2998_s18, 3  ;;  %s139_s6 = scalar_lea.vmem [#allocation6], %s2557_s21 }
  0x30   : > { %s149_s3 = sshll.u32 %s139_s6, 4  ;;  %s5473_s12 = smov (%p33_p6, %s5471_s12), 0  ;;  %s3163_s3 = int_to_ptr.vmem [resolvable:$true] %s149_s3 }
  0x31   : > { %5427 = sst [smem:[#allocation18_spill]] %s5473_s12  ;;  %s146_s7 = sadd.s32 %s2674_s29, %s2560_s30 }
  0x32   : > { %s35_s22 = ssub.s32 %s2998_s18, %s5473_s12  ;;  %s2561_s24 = sshll.u32 %s146_s7, 7 }
  0x33   : > { %s37_s1 = sor.u32 %s36_s25, %s35_s22  ;;  %p85_p10 = scmp.eq.s32.totalorder %s35_s22, 0 }
  0x34   : > { %p38_p12 = scmp.eq.s32.totalorder %s37_s1, 0  ;;  %s3170_s17 = scalar_lea.hbm %s5377_s0, %s2561_s24 }
  0x35   : > { %s5428_s21 = sadd.s32 1, %s2970_s11  ;;  %s5429_s29 = sadd.s32 1, %s2982_s14 }
  0x36   : > { %s3175_s6 = scalar_select %p85_p10, %s2970_s11, %s5428_s21  }
  0x37   : > { %s3180_s30 = scalar_select %p38_p12, %s2982_s14, %s5429_s29  }
  0x38   : > { %s3182_s12 = scalar_lea.sflag [#allocation7], %s135_s20  ;;  %s2846_s25 = scalar_lea.hbm %s3170_s17, 512 }
  0x39   : > { %p2847_p0 = scmp.ne.s32.totalorder %s3170_s17, %s2846_s25  ;;  %p2848_p1 = pneg %p3147_p7 }
  0x3a   : > { %s2851_s24 = scalar_lea.hbm %s5377_s0, 2048  ;;  %p2852_p8 = scmp.lt.u32.totalorder %s3170_s17, %s5377_s0 }
  0x3b   : > { %p2849_p2 = pnand %p2848_p1, %p2847_p0  ;;  %p2853_p9 = scmp.lt.u32.totalorder %s2851_s24, %s2846_s25 }
  0x3c   : > { %p2855_p13 = scmp.lt.u32.totalorder %s2846_s25, %s3170_s17 }
  0x3d   : > { %p2850_p5 = pneg %p2849_p2  ;;  %p2854_p11 = por %p2853_p9, %p2852_p8 }
  0x3f   : > { %p2856_p4 = por %p2855_p13, %p2854_p11 }
  0x41   : > { %p2857_p6 = pnand %p2856_p4, %p2850_p5 }
  0x43   : > { %2860 = shalt.err (!%p2857_p6)
}
  0x44   : > { %s2861_s20 = scalar_lea.vmem %s3163_s3, 512  ;;  %s3005_s7 = smov [#allocation6]  }
  0x45   : > { %p2862_p10 = scmp.ne.s32.totalorder %s3163_s3, %s2861_s20  ;;  %s2866_s21 = sshll.u32 %s3005_s7, 4  ;;  %s2867_s21 = int_to_ptr.vmem [resolvable:$false] %s2866_s21 }
  0x46   : > { %s2868_s29 = scalar_lea.vmem %s2867_s21, 1024  ;;  %p2869_p2 = scmp.lt.s32.totalorder %s3163_s3, %s2867_s21 }
  0x47   : > { %p2864_p12 = pnand %p2862_p10, %p2848_p1  ;;  %p2870_p8 = scmp.lt.s32.totalorder %s2868_s29, %s2861_s20 }
  0x49   : > { %p2865_p0 = pneg %p2864_p12  ;;  %p2871_p9 = por %p2870_p8, %p2869_p2 }
  0x4b   : > { %p2872_p11 = pnand %p2871_p9, %p2865_p0 }
  0x4d   : > { %2875 = shalt.err (!%p2872_p11)
}
  0x4e   : > { %s3006_s25 = smov 256   ;;  %s3007_s1 = smov 16  }
  0x4f   : > { %2691 = dma.hbm_to_vmem [thread:$0]  (!%p3147_p7), %s3170_s17, 512, %s3163_s3, %s3182_s12, %s3006_s25, %s3006_s25, %s3007_s1  }
  0x50   : > { %p5430_p1 = scmp.ne.s32.totalorder %s5424_s4, 0 }
  0x51   : > { %s163_s22 = sand.u32 (!%p5430_p1), 1, %s2978_s13   ;;  %p5431_p5 = scmp.ne.s32.totalorder (!%p5430_p1), %s5419_s26, 0 }
  0x52   : > { %161 = sbr.rel (%p5430_p1) target bundleno = 819 (0x333), region = 28  ;;  %s2563_s24 = sshll.u32 (!%p5430_p1), %s163_s22, 5 }
  0x53   : > { %s164_s28 = scalar_lea.sflag (!%p5430_p1), [#allocation7], %s163_s22  ;;  %s167_s8 = scalar_lea.vmem (!%p5430_p1), [#allocation6], %s2563_s24 }
  0x59   : > { %2949 = dma.done.wait (%p5431_p5), %s164_s28, 512  }
  0x5a   : > { %2951 = vsyncadd (%p5431_p5), %s164_s28, 4294966784 }
  0x5b   : > { %2953 = dma.done.wait (%p3104_p3), [#allocation9], 16  }
  0x5c   : > { %2955 = vsyncadd (%p3104_p3), [#allocation9], 4294967280 }
  0x5d   : > { %176 = sfence }
  0x5e   : > { %s5387_s17 = sand.u32 1, %s2966_s10   ;;  %p2566_p7 = scmp.ne.s32.totalorder %s2986_s15, 0 }
  0x5f   : > { %s2565_s4 = sshll.u32 %s5387_s17, 4  ;;  %v3008_v0 = vmov (!%p2566_p7), 0.0   ;;  %v3009_v1 = vmov (!%p2566_p7), -inf  }
  0x60   : > { %s3224_s5 = scalar_lea.vmem [#allocation11], %s2565_s4  ;;  %197 = sbr.rel (%p2566_p7) target bundleno = 103 (0x67), region = 40  ;;  %198 = vst [vmem:[#allocation2] sm:$0xff] (!%p2566_p7), %v3008_v0  ;;  %199 = vst [vmem:[#allocation2 + $0x8] sm:$0xff] (!%p2566_p7), %v3008_v0 }
  0x61   : > { %200 = vst [vmem:[#allocation3] sm:$0xff] (!%p2566_p7), %v3009_v1  ;;  %201 = vst [vmem:[#allocation3 + $0x8] sm:$0xff] (!%p2566_p7), %v3009_v1 }
  0x67 PF: > { %v205_v2 = vld [vmem:[%s167_s8] sm:$0xff]  ;;  %v206_v4 = vld [vmem:[%s167_s8 + $0x8] sm:$0xff]  ;;  %v213_v7 = vld [vmem:[#allocation2] sm:$0xff]  ;;  %p2569_p3 = scmp.ne.s32.totalorder %s2986_s15, 1 }
  0x68   : > { %v207_v3 = vld [vmem:[#allocation3] sm:$0xff]  ;;  %v208_v6 = vld [vmem:[#allocation3 + $0x8] sm:$0xff]  ;;  %v214_v8 = vld [vmem:[#allocation2 + $0x8] sm:$0xff]  ;;  %v215_v10 = vadd.f32 %v213_v7, %v205_v2  ;;  %v276_v24 = vlaneseq (!%p2569_p3)  ;;  %v3010_v29 = vmov (!%p2569_p3), 1966171168   ;;  %vm314_vm0 = vcmask (!%p2569_p3), 179200  }
  0x69   : > { %v209_v5 = vmax.f32 %v207_v3, %v205_v2  ;;  %v210_v9 = vmax.f32 %v208_v6, %v206_v4  ;;  %v216_v11 = vadd.f32 %v214_v8, %v206_v4  ;;  %v2567_v12 = vld [vmem:[%s167_s8 + $0x10] sm:$0xff]  ;;  %v2568_v13 = vld [vmem:[%s167_s8 + $0x18] sm:$0xff]  ;;  %239 = sbr.rel (%p2569_p3) target bundleno = 792 (0x318), region = 44  ;;  %v274_v30 = vunpack.c.l.s4 (!%p2569_p3), %v3010_v29  ;;  %s3012_s15 = smov (!%p2569_p3), 115  }
  0x6a   : > { %v232_v16 = vadd.f32 %v2567_v12, %v215_v10  ;;  %v3011_v35 = vmov (!%p2569_p3), 0.0   ;;  %v277_v41 = vshrl.u32 (!%p2569_p3), %v276_v24, 7  ;;  %vm290_vm1 = vcmp.lt.s32.totalorder (!%p2569_p3), %v276_v24, 256  ;;  %s3013_s23 = smov (!%p2569_p3), 3   ;;  %s3014_s26 = smov (!%p2569_p3), 99  }
  0x6b   : > { %v226_v14 = vmax.f32 %v209_v5, %v2567_v12  ;;  %v227_v15 = vmax.f32 %v210_v9, %v2568_v13  ;;  %v233_v17 = vadd.f32 %v2568_v13, %v216_v11  ;;  %319 = vst.msk [vmem:[#allocation5] sm:$0xff] (!%p2569_p3), %vm314_vm0, %v3011_v35  ;;  %315 = vst.msk [vmem:[#allocation4] sm:$0xff] (!%p2569_p3), %vm314_vm0, %v3011_v35  ;;  %v275_v40 = vunpack.c.0.s8 (!%p2569_p3), %v274_v30  ;;  %s3015_s12 = smov (!%p2569_p3), 83   ;;  %s3016_s3 = smov (!%p2569_p3), 67  }
  0x6c   : > { %234 = vst [vmem:[#allocation2] sm:$0xff] %v232_v16  ;;  %316 = vst.msk [vmem:[#allocation4 + $0x8] sm:$0xff] (!%p2569_p3), %vm314_vm0, %v3011_v35  ;;  %s3017_s20 = smov (!%p2569_p3), 51   ;;  %s3018_s7 = smov (!%p2569_p3), 35   ;;  %vm317_vm2 = vcmask (!%p2569_p3), 177152   ;;  %vm327_vm3 = vcmask (!%p2569_p3), 147480  }
  0x6d   : > { %228 = vst [vmem:[#allocation3] sm:$0xff] %v226_v14  ;;  %229 = vst [vmem:[#allocation3 + $0x8] sm:$0xff] %v227_v15  ;;  %v278_v50 = vsub.s32 (!%p2569_p3), %v275_v40, %v277_v41  ;;  %s3019_s21 = smov (!%p2569_p3), 19   ;;  %s3240_s29 = sld [smem:[#allocation10 + $0x32]] (!%p2569_p3)  ;;  %vm710_vm4 = vcmask (!%p2569_p3), 1046528   ;;  %vm997_vm5 = vcmask (!%p2569_p3), 1045504  }
  0x6e   : > { %235 = vst [vmem:[#allocation2 + $0x8] sm:$0xff] %v233_v17  ;;  %320 = vst.msk [vmem:[#allocation5 + $0x8] sm:$0xff] (!%p2569_p3), %vm314_vm0, %v3011_v35  ;;  %s3244_s25 = sld [smem:[#allocation10 + $0x33]] (!%p2569_p3)  ;;  %s3249_s1 = sld [smem:[#allocation10 + $0x34]] (!%p2569_p3)  ;;  %vm1284_vm6 = vcmask (!%p2569_p3), 1044480   ;;  %vm1571_vm7 = vcmask (!%p2569_p3), 1043456  }
  0x6f   : > { %321 = vst.msk [vmem:[#allocation5 + $0x10] sm:$0x3f] (!%p2569_p3), %vm317_vm2, %v3011_v35  ;;  %318 = vst.msk [vmem:[#allocation4 + $0x10] sm:$0x3f] (!%p2569_p3), %vm317_vm2, %v3011_v35  ;;  %s3259_s22 = sld [smem:[#allocation10 + $0x35]] (!%p2569_p3)  ;;  %s5394_s24 = smov (!%p2569_p3), 127  }
  0x70   : > { %s3268_s28 = sld [smem:[#allocation10 + $0x36]]  ;;  %s5392_s8 = smov 126   ;;  %vm1858_vm8 = vcmask 1042432   ;;  %vm2145_vm9 = vcmask 1041408   ;;  %vm2435_vm10 = vcmask 130048  }
  0x71   : > { %s3277_s4 = sld [smem:[#allocation10 + $0x37]]  ;;  %s3324_s17 = sld [smem:[#allocation10 + $0x5]] }
  0x73   : > { %v240_v22 = vld [vmem:[#allocation2] sm:$0xff]  ;;  %v548_v11 = vstv %s3240_s29  ;;  %s2590_s29 = sld [smem:[#allocation10 + $0x3b]] }
  0x74   : > { %v256_v18 = vld [vmem:[#allocation3] sm:$0xff]  ;;  %v257_v19 = vld [vmem:[#allocation3 + $0x8] sm:$0xff]  ;;  %v242_v25 = vrot.slane %v240_v22, 4  ;;  %v576_v16 = vstv %s3244_s25  ;;  %s2592_s25 = sld [smem:[#allocation10 + $0x3c]] }
  0x75   : > { %v258_v20 = vrot.slane %v256_v18, 4  ;;  %v264_v21 = vrot.slane %v257_v19, 4  ;;  %v241_v23 = vld [vmem:[#allocation2 + $0x8] sm:$0xff]  ;;  %v632_v24 = vstv %s3259_s22  ;;  %s2596_s22 = sld [smem:[#allocation10 + $0x3e]] }
  0x76   : > { %v248_v26 = vrot.slane %v241_v23, 4  ;;  %v243_v31 = vadd.f32 %v242_v25, %v240_v22 }
  0x77   : > { %v259_v27 = vmax.f32 %v256_v18, %v258_v20  ;;  %v265_v28 = vmax.f32 %v257_v19, %v264_v21  ;;  %v604_v20 = vstv %s3249_s1  ;;  %s2594_s1 = sld [smem:[#allocation10 + $0x3d]] }
  0x78   : > { %v249_v32 = vadd.f32 %v248_v26, %v241_v23  ;;  %v244_v36 = vrot.slane %v243_v31, 2 }
  0x79   : > { %v260_v33 = vrot.slane %v259_v27, 2  ;;  %v266_v34 = vrot.slane %v265_v28, 2 }
  0x7a   : > { %v250_v37 = vrot.slane %v249_v32, 2  ;;  %v245_v42 = vadd.f32 %v244_v36, %v243_v31 }
  0x7b   : > { %v261_v38 = vmax.f32 %v259_v27, %v260_v33  ;;  %v267_v39 = vmax.f32 %v265_v28, %v266_v34  ;;  %v660_v28 = vstv %s3268_s28  ;;  %s2585_s28 = sld [smem:[#allocation10 + $0x8]] }
  0x7c   : > { %v251_v43 = vadd.f32 %v250_v37, %v249_v32  ;;  %v246_v46 = vrot.slane %v245_v42, 1  ;;  %v688_v32 = vstv %s3277_s4  ;;  %s5437_s4 = smov 125  }
  0x7d   : > { %v262_v44 = vrot.slane %v261_v38, 1  ;;  %v268_v45 = vrot.slane %v267_v39, 1 }
  0x7e   : > { %v252_v47 = vrot.slane %v251_v43, 1  ;;  %v247_v51 = vadd.f32 %v246_v46, %v245_v42 }
  0x7f   : > { %v263_v48 = vmax.f32 %v261_v38, %v262_v44  ;;  %v269_v49 = vmax.f32 %v267_v39, %v268_v45 }
  0x80   : > { %v253_v52 = vadd.f32 %v252_v47, %v251_v43  ;;  %v254_v54 = vmul.f32 0.03125, %v247_v51 }
  0x81   : > { %v296_v53 = vcombine.low %v263_v48, %v269_v49 }
  0x82   : > { %v255_v55 = vmul.f32 0.03125, %v253_v52 }
  0x83   : > { %v303_v56 = vrot.slane %v296_v53, %v278_v50 }
  0x84   : > { %v272_v57 = vcombine.low %v254_v54, %v255_v55  ;;  %v647_v55 = vstv %s3324_s17  ;;  %s2599_s17 = sld [smem:[#allocation10 + $0xf]] }
  0x85   : > { %v310_v58 = vrot.slane %v303_v56, %v278_v50 }
  0x86   : > { %v279_v59 = vrot.slane %v272_v57, %v278_v50 }
  0x87   : > { %312 = vst.msk [vmem:[#allocation3] ss:$8 sm:$0x3] %vm290_vm1, %v310_v58 }
  0x88   : > { %v286_v60 = vrot.slane %v279_v59, %v278_v50 }
  0x8a   : > { %292 = vst.msk [vmem:[#allocation2] ss:$8 sm:$0x3] %vm290_vm1, %v286_v60 }
  0x8e   : > { %v341_v61 = vld [vmem:[#allocation3] ss:$0 sm:$0xff]  ;;  %v425_v63 = vld [vmem:[#allocation3 + $0x8] ss:$0 sm:$0xff] }
  0x8f   : > { %343 = vrot.lane.b32.xlu1 %v341_v61, %s3012_s15  ;;  %331 = vrot.lane.b32.xlu0 %v341_v61, %s3013_s23 }
  0x91   : > { %v322_v62 = vld [vmem:[#allocation2] ss:$0 sm:$0xff]  ;;  %v419_v0 = vld [vmem:[#allocation2 + $0x8] ss:$0 sm:$0xff] }
  0x93   : > { %355 = vrot.lane.b32.xlu1 %v341_v61, %s3014_s26  ;;  %324 = vrot.lane.b32.xlu0 %v322_v62, %s3013_s23 }
  0x97   : > { %367 = vrot.lane.b32.xlu1 %v341_v61, %s3015_s12  ;;  %349 = vrot.lane.b32.xlu0 %v322_v62, %s3014_s26 }
  0x9b   : > { %379 = vrot.lane.b32.xlu1 %v341_v61, %s3016_s3  ;;  %361 = vrot.lane.b32.xlu0 %v322_v62, %s3015_s12 }
  0x9f   : > { %391 = vrot.lane.b32.xlu1 %v341_v61, %s3017_s20  ;;  %373 = vrot.lane.b32.xlu0 %v322_v62, %s3016_s3 }
  0xa3   : > { %403 = vrot.lane.b32.xlu1 %v341_v61, %s3018_s7  ;;  %385 = vrot.lane.b32.xlu0 %v322_v62, %s3017_s20 }
  0xa7   : > { %415 = vrot.lane.b32.xlu1 %v341_v61, %s3019_s21  ;;  %397 = vrot.lane.b32.xlu0 %v322_v62, %s3018_s7 }
  0xab   : > { %337 = vrot.lane.b32.xlu1 %v322_v62, %s3012_s15  ;;  %409 = vrot.lane.b32.xlu0 %v322_v62, %s3019_s21 }
  0xaf   : > { %427 = vrot.lane.b32.xlu1 %v425_v63, %s3013_s23  ;;  %421 = vrot.lane.b32.xlu0 %v419_v0, %s3013_s23  ;;  %s3286_s23 = sld [smem:[#allocation10 + $0x1]] }
  0xb3   : > { %439 = vrot.lane.b32.xlu1 %v425_v63, %s3012_s15  ;;  %433 = vrot.lane.b32.xlu0 %v419_v0, %s3012_s15  ;;  %s5398_s15 = smov 125  }
  0xb5   : > { %v535_v37 = vstv %s3286_s23  ;;  %s2589_s23 = sld [smem:[#allocation10 + $0xa]] }
  0xb7   : > { %451 = vrot.lane.b32.xlu1 %v425_v63, %s3014_s26  ;;  %445 = vrot.lane.b32.xlu0 %v419_v0, %s3014_s26  ;;  %s5396_s26 = smov 124  }
  0xbb   : > { %463 = vrot.lane.b32.xlu1 %v425_v63, %s3015_s12  ;;  %457 = vrot.lane.b32.xlu0 %v419_v0, %s3015_s12  ;;  %s3295_s12 = sld [smem:[#allocation10 + $0x2]] }
  0xbf   : > { %475 = vrot.lane.b32.xlu1 %v425_v63, %s3016_s3  ;;  %469 = vrot.lane.b32.xlu0 %v419_v0, %s3016_s3  ;;  %s5390_s3 = smov 123  }
  0xc1   : > { %v563_v41 = vstv %s3295_s12  ;;  %s2591_s12 = sld [smem:[#allocation10 + $0xb]] }
  0xc3   : > { %487 = vrot.lane.b32.xlu1 %v425_v63, %s3017_s20  ;;  %481 = vrot.lane.b32.xlu0 %v419_v0, %s3017_s20  ;;  %s3306_s20 = sld [smem:[#allocation10 + $0x3]] }
  0xc7   : > { %499 = vrot.lane.b32.xlu1 %v425_v63, %s3018_s7  ;;  %493 = vrot.lane.b32.xlu0 %v419_v0, %s3018_s7  ;;  %s5388_s7 = smov 122  }
  0xc9   : > { %v591_v45 = vstv %s3306_s20  ;;  %s2593_s20 = sld [smem:[#allocation10 + $0xc]] }
  0xcb   : > { %511 = vrot.lane.b32.xlu1 %v425_v63, %s3019_s21  ;;  %505 = vrot.lane.b32.xlu0 %v419_v0, %s3019_s21  ;;  %s3315_s21 = sld [smem:[#allocation10 + $0x4]] }
  0xd1   : > { %v619_v49 = vstv %s3315_s21  ;;  %s2595_s21 = sld [smem:[#allocation10 + $0xd]] }
 0x101   : > { %v344_v1 = vpop.permute.xlu1 %343  ;;  %v332_v2 = vpop.permute.xlu0 %331 }
 0x102   : > { %346 = vst.msk [vmem:[#allocation5 + $0x4] sm:$0x1] %vm327_vm3, %v344_v1  ;;  %334 = vst.msk [vmem:[#allocation5 + $0x3] sm:$0x1] %vm327_vm3, %v332_v2 }
 0x105   : > { %v356_v3 = vpop.permute.xlu1 %355  ;;  %v325_v4 = vpop.permute.xlu0 %324 }
 0x106   : > { %358 = vst.msk [vmem:[#allocation5 + $0x5] sm:$0x1] %vm327_vm3, %v356_v3  ;;  %328 = vst.msk [vmem:[#allocation4 + $0x3] sm:$0x1] %vm327_vm3, %v325_v4 }
 0x109   : > { %v368_v5 = vpop.permute.xlu1 %367  ;;  %v350_v6 = vpop.permute.xlu0 %349 }
 0x10a   : > { %370 = vst.msk [vmem:[#allocation5 + $0x6] sm:$0x1] %vm327_vm3, %v368_v5  ;;  %352 = vst.msk [vmem:[#allocation4 + $0x5] sm:$0x1] %vm327_vm3, %v350_v6 }
 0x10d   : > { %v380_v7 = vpop.permute.xlu1 %379  ;;  %v362_v8 = vpop.permute.xlu0 %361 }
 0x10e   : > { %382 = vst.msk [vmem:[#allocation5 + $0x7] sm:$0x1] %vm327_vm3, %v380_v7  ;;  %364 = vst.msk [vmem:[#allocation4 + $0x6] sm:$0x1] %vm327_vm3, %v362_v8  ;;  %v3388_v8 = vstv %s2590_s29  ;;  %s2587_s29 = sld [smem:[#allocation10 + $0x9]] }
 0x111   : > { %v392_v9 = vpop.permute.xlu1 %391  ;;  %v374_v10 = vpop.permute.xlu0 %373 }
 0x112   : > { %394 = vst.msk [vmem:[#allocation5 + $0x8] sm:$0x1] %vm327_vm3, %v392_v9  ;;  %376 = vst.msk [vmem:[#allocation4 + $0x7] sm:$0x1] %vm327_vm3, %v374_v10 }
 0x115   : > { %v3251_v12 = vld [vmem:[#allocation5] sm:$0xff]  ;;  %v404_v13 = vpop.permute.xlu1 %403  ;;  %v386_v14 = vpop.permute.xlu0 %385 }
 0x116   : > { %406 = vst.msk [vmem:[#allocation5 + $0x9] sm:$0x1] %vm327_vm3, %v404_v13  ;;  %388 = vst.msk [vmem:[#allocation4 + $0x8] sm:$0x1] %vm327_vm3, %v386_v14  ;;  %v549_v15 = vmul.f32 %v548_v11, %v3251_v12  ;;  %v577_v19 = vmul.f32 %v576_v16, %v3251_v12  ;;  %v605_v23 = vmul.f32 %v604_v20, %v3251_v12 }
 0x117   : > { %v633_v27 = vmul.f32 %v632_v24, %v3251_v12  ;;  %v661_v31 = vmul.f32 %v660_v28, %v3251_v12  ;;  %v689_v35 = vmul.f32 %v688_v32, %v3251_v12  ;;  %v843_v14 = vmul.f32 %v3388_v8, %v3251_v12 }
 0x118   : > { %553 = vrot.lane.b32.xlu0 %v549_v15, %s5394_s24 }
 0x119   : > { %v416_v17 = vpop.permute.xlu1 %415  ;;  %v398_v18 = vpop.permute.xlu0 %397 }
 0x11a   : > { %418 = vst.msk [vmem:[#allocation5 + $0xa] sm:$0x1] %vm327_vm3, %v416_v17  ;;  %400 = vst.msk [vmem:[#allocation4 + $0x9] sm:$0x1] %vm327_vm3, %v398_v18 }
 0x11c   : > { %581 = vrot.lane.b32.xlu0 %v577_v19, %s5392_s8 }
 0x11d   : > { %v338_v21 = vpop.permute.xlu1 %337  ;;  %v410_v22 = vpop.permute.xlu0 %409 }
 0x11e   : > { %340 = vst.msk [vmem:[#allocation4 + $0x4] sm:$0x1] %vm327_vm3, %v338_v21  ;;  %412 = vst.msk [vmem:[#allocation4 + $0xa] sm:$0x1] %vm327_vm3, %v410_v22 }
 0x120   : > { %609 = vrot.lane.b32.xlu0 %v605_v23, %s5398_s15  ;;  %v3422_v23 = vstv %s2594_s1  ;;  %s2602_s1 = sld [smem:[#allocation10 + $0x41]] }
 0x121   : > { %v428_v25 = vpop.permute.xlu1 %427  ;;  %v422_v26 = vpop.permute.xlu0 %421 }
 0x122   : > { %430 = vst.msk [vmem:[#allocation5 + $0xb] sm:$0x1] %vm327_vm3, %v428_v25  ;;  %424 = vst.msk [vmem:[#allocation4 + $0xb] sm:$0x1] %vm327_vm3, %v422_v26 }
 0x124   : > { %637 = vrot.lane.b32.xlu0 %v633_v27, %s5396_s26 }
 0x125   : > { %v440_v29 = vpop.permute.xlu1 %439  ;;  %v434_v30 = vpop.permute.xlu0 %433  ;;  %v3303_v36 = vld [vmem:[#allocation4] sm:$0xff] }
 0x126   : > { %442 = vst.msk [vmem:[#allocation5 + $0xc] sm:$0x1] %vm327_vm3, %v440_v29  ;;  %436 = vst.msk [vmem:[#allocation4 + $0xc] sm:$0x1] %vm327_vm3, %v434_v30  ;;  %v536_v40 = vmul.f32 %v535_v37, %v3303_v36  ;;  %v564_v44 = vmul.f32 %v563_v41, %v3303_v36  ;;  %v592_v48 = vmul.f32 %v591_v45, %v3303_v36 }
 0x127   : > { %v620_v54 = vmul.f32 %v619_v49, %v3303_v36  ;;  %v648_v59 = vmul.f32 %v647_v55, %v3303_v36  ;;  %v927_v29 = vmul.f32 %v3422_v23, %v3251_v12 }
 0x128   : > { %665 = vrot.lane.b32.xlu0 %v661_v31, %s5390_s3  ;;  %s3333_s3 = sld [smem:[#allocation10 + $0x6]]  ;;  %v3441_v31 = vstv %s2596_s22  ;;  %s2603_s22 = sld [smem:[#allocation10 + $0x11]] }
 0x129   : > { %v452_v33 = vpop.permute.xlu1 %451  ;;  %v446_v34 = vpop.permute.xlu0 %445 }
 0x12a   : > { %454 = vst.msk [vmem:[#allocation5 + $0xd] sm:$0x1] %vm327_vm3, %v452_v33  ;;  %448 = vst.msk [vmem:[#allocation4 + $0xd] sm:$0x1] %vm327_vm3, %v446_v34 }
 0x12c   : > { %693 = vrot.lane.b32.xlu0 %v689_v35, %s5388_s7  ;;  %s2586_s7 = sld [smem:[#allocation10 + $0x39]]  ;;  %v933_v35 = vrot.slane %v927_v29, 1  ;;  %v3546_v29 = vstv %s2595_s21  ;;  %s2609_s21 = sld [smem:[#allocation10 + $0x14]] }
 0x12d   : > { %v464_v38 = vpop.permute.xlu1 %463  ;;  %v458_v39 = vpop.permute.xlu0 %457 }
 0x12e   : > { %466 = vst.msk [vmem:[#allocation5 + $0xe] sm:$0x1] %vm327_vm3, %v464_v38  ;;  %460 = vst.msk [vmem:[#allocation4 + $0xe] sm:$0x1] %vm327_vm3, %v458_v39  ;;  %v675_v61 = vstv %s3333_s3  ;;  %v3458_v39 = vstv %s2585_s28  ;;  %s2600_s3 = sld [smem:[#allocation10 + $0x40]]  ;;  %s2604_s28 = sld [smem:[#allocation10 + $0x42]] }
 0x12f   : > { %v676_v1 = vmul.f32 %v675_v61, %v3303_v36 }
 0x130   : > { %540 = vrot.lane.b32.xlu0 %v536_v40, %s5394_s24 }
 0x131   : > { %v476_v42 = vpop.permute.xlu1 %475  ;;  %v470_v43 = vpop.permute.xlu0 %469 }
 0x132   : > { %478 = vst.msk [vmem:[#allocation5 + $0xf] sm:$0x1] %vm327_vm3, %v476_v42  ;;  %472 = vst.msk [vmem:[#allocation4 + $0xf] sm:$0x1] %vm327_vm3, %v470_v43  ;;  %v3357_v60 = vstv %s2586_s7  ;;  %s5434_s7 = smov 122  }
 0x133   : > { %v759_v63 = vmul.f32 %v3357_v60, %v3251_v12 }
 0x134   : > { %568 = vrot.lane.b32.xlu0 %v564_v44, %s5392_s8  ;;  %s2588_s8 = sld [smem:[#allocation10 + $0x3a]] }
 0x135   : > { %v488_v46 = vpop.permute.xlu1 %487  ;;  %v482_v47 = vpop.permute.xlu0 %481  ;;  %v765_v5 = vrot.slane %v759_v63, 1 }
 0x136   : > { %490 = vst.msk [vmem:[#allocation5 + $0x10] sm:$0x1] %vm327_vm3, %v488_v46  ;;  %484 = vst.msk [vmem:[#allocation4 + $0x10] sm:$0x1] %vm327_vm3, %v482_v47  ;;  %v3475_v47 = vstv %s2587_s29  ;;  %s2605_s29 = sld [smem:[#allocation10 + $0x12]] }
 0x138   : > { %596 = vrot.lane.b32.xlu0 %v592_v48, %s5398_s15 }
 0x139   : > { %v3336_v50 = vld [vmem:[#allocation5 + $0x8] sm:$0xff]  ;;  %v500_v51 = vpop.permute.xlu1 %499  ;;  %v494_v52 = vpop.permute.xlu0 %493 }
 0x13a   : > { %502 = vst.msk [vmem:[#allocation5 + $0x11] sm:$0x1] %vm327_vm3, %v500_v51  ;;  %496 = vst.msk [vmem:[#allocation4 + $0x11] sm:$0x1] %vm327_vm3, %v494_v52  ;;  %v550_v53 = vmul.f32 %v548_v11, %v3336_v50  ;;  %v578_v58 = vmul.f32 %v576_v16, %v3336_v50  ;;  %v3362_v62 = vmul.f32 %v3357_v60, %v3336_v50  ;;  %v3374_v2 = vstv %s2588_s8  ;;  %s5435_s8 = smov 124  }
 0x13b   : > { %v606_v0 = vmul.f32 %v604_v20, %v3336_v50  ;;  %v3379_v4 = vmul.f32 %v3374_v2, %v3336_v50  ;;  %v801_v6 = vmul.f32 %v3374_v2, %v3251_v12  ;;  %v634_v7 = vmul.f32 %v632_v24, %v3336_v50  ;;  %v3424_v24 = vld [vmem:[#allocation4 + $0x8] sm:$0xff] }
 0x13c   : > { %555 = vrot.lane.b32.xlu1 %v550_v53, %s5394_s24  ;;  %624 = vrot.lane.b32.xlu0 %v620_v54, %s5396_s26  ;;  %s5432_s24 = smov 126   ;;  %s5433_s26 = smov 123   ;;  %v766_v3 = vrot.slane %v3362_v62, 1  ;;  %v3396_v11 = vmul.f32 %v3388_v8, %v3336_v50  ;;  %v662_v15 = vmul.f32 %v660_v28, %v3336_v50  ;;  %v3405_v16 = vstv %s2592_s25 }
 0x13d   : > { %v512_v56 = vpop.permute.xlu1 %511  ;;  %v506_v57 = vpop.permute.xlu0 %505  ;;  %v808_v10 = vrot.slane %v3379_v4, 1  ;;  %v807_v13 = vrot.slane %v801_v6, 1  ;;  %v3413_v19 = vmul.f32 %v3405_v16, %v3336_v50  ;;  %v849_v20 = vrot.slane %v843_v14, 1  ;;  %s2601_s25 = sld [smem:[#allocation10 + $0x10]] }
 0x13e   : > { %514 = vst.msk [vmem:[#allocation5 + $0x12] sm:$0x1] %vm327_vm3, %v512_v56  ;;  %508 = vst.msk [vmem:[#allocation4 + $0x12] sm:$0x1] %vm327_vm3, %v506_v57  ;;  %v767_v9 = vsel %vm710_vm4, %v765_v5, %v766_v3  ;;  %v850_v18 = vrot.slane %v3396_v11, 1  ;;  %v885_v21 = vmul.f32 %v3405_v16, %v3251_v12  ;;  %v690_v22 = vmul.f32 %v688_v32, %v3336_v50 }
 0x13f   : > { %v809_v17 = vsel %vm710_vm4, %v807_v13, %v808_v10  ;;  %v892_v26 = vrot.slane %v3413_v19, 1  ;;  %v3432_v27 = vmul.f32 %v3422_v23, %v3336_v50  ;;  %v537_v30 = vmul.f32 %v535_v37, %v3424_v24 }
 0x140   : > { %583 = vrot.lane.b32.xlu1 %v578_v58, %s5432_s24  ;;  %652 = vrot.lane.b32.xlu0 %v648_v59, %s5433_s26  ;;  %v851_v25 = vsel %vm710_vm4, %v849_v20, %v850_v18  ;;  %v891_v28 = vrot.slane %v885_v21, 1  ;;  %v3449_v34 = vmul.f32 %v3441_v31, %v3336_v50  ;;  %v969_v37 = vmul.f32 %v3441_v31, %v3251_v12 }
 0x141   : > { %v934_v33 = vrot.slane %v3432_v27, 1  ;;  %v565_v38 = vmul.f32 %v563_v41, %v3424_v24  ;;  %v3466_v43 = vmul.f32 %v3458_v39, %v3424_v24  ;;  %v739_v41 = vmul.f32 %v3458_v39, %v3303_v36 }
 0x142   : > { %v893_v32 = vsel %vm710_vm4, %v891_v28, %v892_v26  ;;  %v976_v42 = vrot.slane %v3449_v34, 1  ;;  %v975_v44 = vrot.slane %v969_v37, 1  ;;  %v593_v46 = vmul.f32 %v591_v45, %v3424_v24 }
 0x143   : > { %v935_v40 = vsel %vm710_vm4, %v933_v35, %v934_v33  ;;  %v746_v51 = vrot.slane %v3466_v43, 1  ;;  %v3483_v52 = vmul.f32 %v3475_v47, %v3424_v24  ;;  %v745_v53 = vrot.slane %v739_v41, 1 }
 0x144   : > { %611 = vrot.lane.b32.xlu1 %v606_v0, %s5398_s15  ;;  %680 = vrot.lane.b32.xlu0 %v676_v1, %s5434_s7  ;;  %s5436_s15 = smov 127   ;;  %v977_v48 = vsel %vm710_vm4, %v975_v44, %v976_v42  ;;  %v781_v45 = vmul.f32 %v3475_v47, %v3303_v36  ;;  %v621_v54 = vmul.f32 %v619_v49, %v3424_v24  ;;  %v3492_v56 = vstv %s2589_s23  ;;  %s2606_s23 = sld [smem:[#allocation10 + $0x43]] }
 0x145   : > { %v747_v57 = vsel %vm710_vm4, %v745_v53, %v746_v51  ;;  %v788_v58 = vrot.slane %v3483_v52, 1  ;;  %v3500_v59 = vmul.f32 %v3492_v56, %v3424_v24  ;;  %v3502_v63 = vld [vmem:[#allocation5 + $0x10] sm:$0x3f]  ;;  %v823_v0 = vmul.f32 %v3492_v56, %v3303_v36 }
 0x146   : > { %v787_v49 = vrot.slane %v781_v45, 1  ;;  %v649_v1 = vmul.f32 %v647_v55, %v3424_v24  ;;  %v3511_v5 = vstv %s2591_s12  ;;  %v761_v13 = vmul.f32 %v3357_v60, %v3502_v63  ;;  %s2607_s12 = sld [smem:[#allocation10 + $0x13]] }
 0x147   : > { %v829_v55 = vrot.slane %v823_v0, 1  ;;  %v865_v14 = vmul.f32 %v3511_v5, %v3303_v36  ;;  %v3565_v41 = vstv %s2599_s17  ;;  %v887_v53 = vmul.f32 %v3405_v16, %v3502_v63  ;;  %s3744_s17 = sld [smem:[#allocation10 + $0x31]] }
 0x148   : > { %639 = vrot.lane.b32.xlu1 %v634_v7, %s5435_s8  ;;  %770 = vrot.lane.b32.xlu0 %v767_v9, %s5436_s15  ;;  %v789_v6 = vsel %vm710_vm4, %v787_v49, %v788_v58  ;;  %v830_v7 = vrot.slane %v3500_v59, 1  ;;  %v3519_v9 = vmul.f32 %v3511_v5, %v3424_v24  ;;  %v3570_v62 = vmul.f32 %v3565_v41, %v3424_v24 }
 0x149   : > { %v871_v28 = vrot.slane %v865_v14, 1  ;;  %v894_v0 = vrot.slane %v887_v53, 1 }
 0x14a   : > { %v831_v60 = vsel %vm710_vm4, %v829_v55, %v830_v7  ;;  %v872_v21 = vrot.slane %v3519_v9, 1  ;;  %v1033_v49 = vrot.slane %v3570_v62, 2  ;;  %v3603_v55 = vstv %s2601_s25  ;;  %s2610_s25 = sld [smem:[#allocation10 + $0x45]] }
 0x14b   : > { %v895_v14 = vsel %vm710_vm4, %v892_v26, %v894_v0 }
 0x14c   : > { %667 = vrot.lane.b32.xlu1 %v662_v15, %s5433_s26  ;;  %812 = vrot.lane.b32.xlu0 %v809_v17, %s5432_s24  ;;  %v3527_v15 = vstv %s2593_s20  ;;  %v677_v17 = vmul.f32 %v675_v61, %v3424_v24  ;;  %s2608_s20 = sld [smem:[#allocation10 + $0x44]] }
 0x14d   : > { %v3534_v20 = vmul.f32 %v3527_v15, %v3424_v24  ;;  %v907_v61 = vmul.f32 %v3527_v15, %v3303_v36 }
 0x14f   : > { %v913_v44 = vrot.slane %v907_v61, 1  ;;  %v3628_v61 = vstv %s2602_s1  ;;  %s2613_s1 = sld [smem:[#allocation10 + $0x16]] }
 0x150   : > { %695 = vrot.lane.b32.xlu1 %v690_v22, %s5434_s7  ;;  %854 = vrot.lane.b32.xlu0 %v851_v25, %s5437_s4  ;;  %v768_v22 = vrot.slane %v761_v13, 1  ;;  %v803_v25 = vmul.f32 %v3374_v2, %v3502_v63  ;;  %v873_v2 = vsel %vm710_vm4, %v871_v28, %v872_v21  ;;  %v1068_v28 = vmul.f32 %v3603_v55, %v3303_v36 }
 0x152   : > { %v769_v35 = vsel %vm710_vm4, %v766_v3, %v768_v22  ;;  %v810_v37 = vrot.slane %v803_v25, 1  ;;  %v3618_v22 = vld [vmem:[#allocation4 + $0x10] sm:$0x3f] }
 0x154   : > { %896 = vrot.lane.b32.xlu0 %v893_v32, %s5435_s8  ;;  %542 = vrot.lane.b32.xlu1 %v537_v30, %s5436_s15  ;;  %v914_v30 = vrot.slane %v3534_v20, 1  ;;  %v3551_v32 = vmul.f32 %v3546_v29, %v3424_v24 }
 0x156   : > { %v915_v3 = vsel %vm710_vm4, %v913_v44, %v914_v30  ;;  %v3643_v44 = vstv %s2603_s22  ;;  %s2614_s22 = sld [smem:[#allocation10 + $0x47]] }
 0x158   : > { %938 = vrot.lane.b32.xlu0 %v935_v40, %s5433_s26  ;;  %570 = vrot.lane.b32.xlu1 %v565_v38, %s5432_s24  ;;  %v845_v38 = vmul.f32 %v3388_v8, %v3502_v63  ;;  %v949_v40 = vmul.f32 %v3546_v29, %v3303_v36  ;;  %v811_v8 = vsel %vm710_vm4, %v808_v10, %v810_v37 }
 0x159   : > { %v741_v37 = vmul.f32 %v3458_v39, %v3618_v22 }
 0x15a   : > { %v955_v45 = vrot.slane %v949_v40, 1  ;;  %v1088_v40 = vmul.f32 %v3628_v61, %v3251_v12 }
 0x15c   : > { %980 = vrot.lane.b32.xlu0 %v977_v48, %s5434_s7  ;;  %598 = vrot.lane.b32.xlu1 %v593_v46, %s5437_s4  ;;  %v956_v46 = vrot.slane %v3551_v32, 1  ;;  %v852_v48 = vrot.slane %v845_v38, 1  ;;  %v1074_v38 = vrot.slane %v1068_v28, 2  ;;  %v1094_v53 = vrot.slane %v1088_v40, 2 }
 0x15e   : > { %v957_v4 = vsel %vm710_vm4, %v955_v45, %v956_v46  ;;  %v853_v16 = vsel %vm710_vm4, %v850_v18, %v852_v48  ;;  %v3608_v18 = vmul.f32 %v3603_v55, %v3424_v24  ;;  %v783_v48 = vmul.f32 %v3475_v47, %v3618_v22 }
 0x15f   : > { %v1110_v45 = vmul.f32 %v3643_v44, %v3303_v36 }
 0x160   : > { %750 = vrot.lane.b32.xlu0 %v747_v57, %s5436_s15  ;;  %626 = vrot.lane.b32.xlu1 %v621_v54, %s5435_s8  ;;  %v1026_v54 = vmul.f32 %v3565_v41, %v3303_v36  ;;  %v3584_v57 = vstv %s2600_s3  ;;  %v1075_v26 = vrot.slane %v3608_v18, 2  ;;  %v790_v0 = vrot.slane %v783_v48, 1  ;;  %s3754_s3 = sld [smem:[#allocation10]] }
 0x161   : > { %v3591_v10 = vmul.f32 %v3584_v57, %v3336_v50 }
 0x162   : > { %v1032_v13 = vrot.slane %v1026_v54, 2  ;;  %v1076_v27 = vsel %vm997_vm5, %v1074_v38, %v1075_v26  ;;  %v3662_v54 = vstv %s2604_s28  ;;  %s2615_s28 = sld [smem:[#allocation10 + $0x17]] }
 0x163   : > { %v1053_v11 = vrot.slane %v3591_v10, 2  ;;  %v3666_v34 = vmul.f32 %v3662_v54, %v3336_v50 }
 0x164   : > { %792 = vrot.lane.b32.xlu0 %v789_v6, %s5432_s24  ;;  %654 = vrot.lane.b32.xlu1 %v649_v1, %s5433_s26  ;;  %v929_v1 = vmul.f32 %v3422_v23, %v3502_v63  ;;  %v1046_v6 = vmul.f32 %v3584_v57, %v3251_v12  ;;  %v1034_v23 = vsel %vm997_vm5, %v1032_v13, %v1033_v49 }
 0x165   : > { %v1137_v13 = vrot.slane %v3666_v34, 2 }
 0x166   : > { %v1052_v25 = vrot.slane %v1046_v6, 2  ;;  %v3681_v6 = vstv %s2605_s29  ;;  %s2616_s29 = sld [smem:[#allocation10 + $0x48]] }
 0x167   : > { %v3686_v43 = vmul.f32 %v3681_v6, %v3424_v24 }
 0x168   : > { %834 = vrot.lane.b32.xlu0 %v831_v60, %s5437_s4  ;;  %682 = vrot.lane.b32.xlu1 %v677_v17, %s5434_s7  ;;  %v936_v17 = vrot.slane %v929_v1, 1  ;;  %v971_v60 = vmul.f32 %v3441_v31, %v3502_v63  ;;  %v1054_v19 = vsel %vm997_vm5, %v1052_v25, %v1053_v11  ;;  %v1130_v1 = vmul.f32 %v3662_v54, %v3251_v12 }
 0x169   : > { %v1152_v25 = vmul.f32 %v3681_v6, %v3303_v36 }
 0x16a   : > { %v937_v31 = vsel %vm710_vm4, %v934_v33, %v936_v17  ;;  %v3650_v33 = vmul.f32 %v3643_v44, %v3424_v24  ;;  %v867_v17 = vmul.f32 %v3511_v5, %v3618_v22 }
 0x16b   : > { %v1158_v38 = vrot.slane %v1152_v25, 2 }
 0x16c   : > { %876 = vrot.lane.b32.xlu0 %v873_v2, %s5435_s8  ;;  %772 = vrot.lane.b32.xlu1 %v769_v35, %s5436_s15  ;;  %v978_v2 = vrot.slane %v971_v60, 1  ;;  %v3635_v35 = vmul.f32 %v3628_v61, %v3336_v50  ;;  %v1136_v60 = vrot.slane %v1130_v1, 2 }
 0x16e   : > { %v979_v39 = vsel %vm710_vm4, %v976_v42, %v978_v2  ;;  %v825_v42 = vmul.f32 %v3492_v56, %v3618_v22  ;;  %v1116_v56 = vrot.slane %v1110_v45, 2  ;;  %v1138_v52 = vsel %vm997_vm5, %v1136_v60, %v1137_v13 }
 0x170   : > { %918 = vrot.lane.b32.xlu0 %v915_v3, %s5433_s26  ;;  %814 = vrot.lane.b32.xlu1 %v811_v8, %s5432_s24  ;;  %v1095_v3 = vrot.slane %v3635_v35, 2  ;;  %v748_v8 = vrot.slane %v741_v37, 1  ;;  %v909_v37 = vmul.f32 %v3527_v15, %v3618_v22 }
 0x172   : > { %v1096_v47 = vsel %vm997_vm5, %v1094_v53, %v1095_v3  ;;  %v916_v48 = vrot.slane %v909_v37, 1  ;;  %v951_v53 = vmul.f32 %v3546_v29, %v3618_v22  ;;  %v1028_v29 = vmul.f32 %v3565_v41, %v3618_v22 }
 0x173   : > { %v528_v37 = vstv %s3744_s17  ;;  %s4070_s17 = sld [smem:[#allocation10 + $0x1d]] }
 0x174   : > { %960 = vrot.lane.b32.xlu0 %v957_v4, %s5434_s7  ;;  %856 = vrot.lane.b32.xlu1 %v853_v16, %s5437_s4  ;;  %v749_v4 = vsel %vm710_vm4, %v746_v51, %v748_v8  ;;  %v1117_v16 = vrot.slane %v3650_v33, 2  ;;  %v1035_v25 = vrot.slane %v1028_v29, 2 }
 0x176   : > { %v1118_v51 = vsel %vm997_vm5, %v1116_v56, %v1117_v16  ;;  %v958_v56 = vrot.slane %v951_v53, 1  ;;  %v1070_v53 = vmul.f32 %v3603_v55, %v3618_v22 }
 0x178   : > { %1037 = vrot.lane.b32.xlu0 %v1034_v23, %s5436_s15  ;;  %898 = vrot.lane.b32.xlu1 %v895_v14, %s5435_s8  ;;  %v791_v23 = vsel %vm710_vm4, %v788_v58, %v790_v0  ;;  %v832_v14 = vrot.slane %v825_v42, 1  ;;  %v1159_v58 = vrot.slane %v3686_v43, 2  ;;  %v917_v0 = vsel %vm710_vm4, %v914_v30, %v916_v48 }
 0x179   : > { %v959_v60 = vsel %vm710_vm4, %v956_v46, %v958_v56 }
 0x17a   : > { %v833_v5 = vsel %vm710_vm4, %v830_v7, %v832_v14  ;;  %v1160_v7 = vsel %vm997_vm5, %v1158_v38, %v1159_v58 }
 0x17c   : > { %1057 = vrot.lane.b32.xlu0 %v1054_v19, %s5436_s15  ;;  %940 = vrot.lane.b32.xlu1 %v937_v31, %s5433_s26  ;;  %v3706_v19 = vstv %s2606_s23  ;;  %v874_v31 = vrot.slane %v867_v17, 1  ;;  %s2617_s23 = sld [smem:[#allocation10 + $0x18]] }
 0x17d   : > { %v3713_v2 = vmul.f32 %v3706_v19, %v3336_v50  ;;  %v1172_v40 = vmul.f32 %v3706_v19, %v3251_v12 }
 0x17f   : > { %v1179_v8 = vrot.slane %v3713_v2, 2  ;;  %v1178_v45 = vrot.slane %v1172_v40, 2  ;;  %v3796_v40 = vstv %s2610_s25  ;;  %s3940_s25 = sld [smem:[#allocation10 + $0x1a]] }
 0x180   : > { %1079 = vrot.lane.b32.xlu0 %v1076_v27, %s5432_s24  ;;  %982 = vrot.lane.b32.xlu1 %v979_v39, %s5434_s7  ;;  %v3721_v27 = vstv %s2607_s12  ;;  %v875_v39 = vsel %vm710_vm4, %v872_v21, %v874_v31  ;;  %v3803_v48 = vmul.f32 %v3796_v40, %v3336_v50  ;;  %v1256_v62 = vmul.f32 %v3796_v40, %v3251_v12  ;;  %s2618_s12 = sld [smem:[#allocation10 + $0x49]] }
 0x181   : > { %v3730_v15 = vmul.f32 %v3721_v27, %v3424_v24  ;;  %v1194_v42 = vmul.f32 %v3721_v27, %v3303_v36 }
 0x182   : > { %v3897_v33 = vstv %s2617_s23  ;;  %s4024_s23 = sld [smem:[#allocation10 + $0x4c]] }
 0x183   : > { %v1201_v1 = vrot.slane %v3730_v15, 2 }
 0x184   : > { %1099 = vrot.lane.b32.xlu0 %v1096_v47, %s5432_s24  ;;  %752 = vrot.lane.b32.xlu1 %v749_v4, %s5436_s15  ;;  %v3742_v47 = vstv %s2608_s20  ;;  %v1180_v4 = vsel %vm997_vm5, %v1178_v45, %v1179_v8  ;;  %s2619_s20 = sld [smem:[#allocation10 + $0x19]] }
 0x185   : > { %v3750_v21 = vmul.f32 %v3742_v47, %v3336_v50  ;;  %v1214_v41 = vmul.f32 %v3742_v47, %v3251_v12 }
 0x187   : > { %v1221_v20 = vrot.slane %v3750_v21, 2 }
 0x188   : > { %1121 = vrot.lane.b32.xlu0 %v1118_v51, %s5437_s4  ;;  %794 = vrot.lane.b32.xlu1 %v791_v23, %s5432_s24  ;;  %v1200_v51 = vrot.slane %v1194_v42, 2  ;;  %v3767_v23 = vstv %s2609_s21  ;;  %s2620_s21 = sld [smem:[#allocation10 + $0x4a]] }
 0x189   : > { %v3774_v30 = vmul.f32 %v3767_v23, %v3424_v24  ;;  %v1236_v31 = vmul.f32 %v3767_v23, %v3303_v36 }
 0x18a   : > { %v3700_v28 = vpop.permute.xlu0 %553  ;;  %v1202_v17 = vsel %vm997_vm5, %v1200_v51, %v1201_v1  ;;  %v1077_v51 = vrot.slane %v1070_v53, 2 }
 0x18b   : > { %v1243_v46 = vrot.slane %v3774_v30, 2  ;;  %v1242_v45 = vrot.slane %v1236_v31, 2 }
 0x18c   : > { %1141 = vrot.lane.b32.xlu0 %v1138_v52, %s5437_s4  ;;  %836 = vrot.lane.b32.xlu1 %v833_v5, %s5437_s4  ;;  %v1048_v52 = vmul.f32 %v3584_v57, %v3502_v63  ;;  %v1220_v5 = vrot.slane %v1214_v41, 2  ;;  %v523_v57 = vstv %s3754_s3  ;;  %v1263_v41 = vrot.slane %v3803_v48, 2  ;;  %s4116_s3 = sld [smem:[#allocation10 + $0x4e]] }
 0x18d   : > { %v524_v42 = vmul.f32 %v523_v57, %v3303_v36  ;;  %v1244_v55 = vsel %vm997_vm5, %v1242_v45, %v1243_v46 }
 0x18e   : > { %v3723_v59 = vpop.permute.xlu0 %581  ;;  %v1222_v32 = vsel %vm997_vm5, %v1220_v5, %v1221_v20  ;;  %v3838_v5 = vstv %s2614_s22  ;;  %s3970_s22 = sld [smem:[#allocation10 + $0x7]] }
 0x18f   : > { %v3843_v31 = vmul.f32 %v3838_v5, %v3336_v50  ;;  %v1333_v45 = vmul.f32 %v3838_v5, %v3251_v12 }
 0x190   : > { %1163 = vrot.lane.b32.xlu0 %v1160_v7, %s5435_s8  ;;  %878 = vrot.lane.b32.xlu1 %v875_v39, %s5435_s8  ;;  %v1036_v7 = vsel %vm997_vm5, %v1033_v49, %v1035_v25  ;;  %v1055_v39 = vrot.slane %v1048_v52, 2  ;;  %v3814_v49 = vstv %s2613_s1  ;;  %v1262_v25 = vrot.slane %v1256_v62, 2  ;;  %s3963_s1 = sld [smem:[#allocation10 + $0x4b]] }
 0x191   : > { %v1313_v52 = vmul.f32 %v3814_v49, %v3303_v36  ;;  %v3858_v62 = vstv %s2615_s28  ;;  %v1340_v18 = vrot.slane %v3843_v31, 3  ;;  %s3991_s28 = sld [smem:[#allocation10 + $0x38]] }
 0x192   : > { %v3746_v9 = vpop.permute.xlu0 %609  ;;  %v1056_v56 = vsel %vm997_vm5, %v1053_v11, %v1055_v39  ;;  %v1078_v39 = vsel %vm997_vm5, %v1075_v26, %v1077_v51  ;;  %v3863_v26 = vmul.f32 %v3858_v62, %v3424_v24 }
 0x194   : > { %1183 = vrot.lane.b32.xlu0 %v1180_v4, %s5435_s8  ;;  %920 = vrot.lane.b32.xlu1 %v917_v0, %s5433_s26  ;;  %v529_v4 = vmul.f32 %v528_v37, %v3251_v12  ;;  %v3826_v0 = vmul.f32 %v3814_v49, %v3424_v24 }
 0x196   : > { %v3769_v14 = vpop.permute.xlu0 %637  ;;  %v1320_v11 = vrot.slane %v3826_v0, 3 }
 0x198   : > { %1205 = vrot.lane.b32.xlu0 %v1202_v17, %s5433_s26  ;;  %962 = vrot.lane.b32.xlu1 %v959_v60, %s5434_s7  ;;  %v1090_v17 = vmul.f32 %v3628_v61, %v3502_v63  ;;  %v531_v60 = vadd.f32 %v529_v4, %v524_v42  ;;  %v1112_v61 = vmul.f32 %v3643_v44, %v3618_v22  ;;  %v1319_v42 = vrot.slane %v1313_v52, 3 }
 0x19a   : > { %v3789_v38 = vpop.permute.xlu0 %665  ;;  %v1097_v53 = vrot.slane %v1090_v17, 2  ;;  %v1119_v4 = vrot.slane %v1112_v61, 2  ;;  %v1321_v51 = vsel %vm1284_vm6, %v1319_v42, %v1320_v11  ;;  %v1132_v17 = vmul.f32 %v3662_v54, %v3502_v63 }
 0x19b   : > { %v3882_v61 = vstv %s2616_s29  ;;  %s3998_s29 = sld [smem:[#allocation10 + $0x1b]] }
 0x19c   : > { %1225 = vrot.lane.b32.xlu0 %v1222_v32, %s5433_s26  ;;  %1039 = vrot.lane.b32.xlu1 %v1036_v7, %s5436_s15  ;;  %v1264_v7 = vsel %vm997_vm5, %v1262_v25, %v1263_v41  ;;  %v1355_v25 = vmul.f32 %v3858_v62, %v3303_v36  ;;  %v1120_v54 = vsel %vm997_vm5, %v1117_v16, %v1119_v4 }
 0x19e   : > { %v3816_v29 = vpop.permute.xlu0 %693 }
 0x1a0   : > { %1247 = vrot.lane.b32.xlu0 %v1244_v55, %s5434_s7  ;;  %1059 = vrot.lane.b32.xlu1 %v1056_v56, %s5436_s15 }
 0x1a2   : > { %v541_v10 = vpop.permute.xlu0 %540 }
 0x1a3   : > { %v546_v32 = vadd.f32 %v541_v10, %v531_v60  ;;  %v1339_v60 = vrot.slane %v1333_v45, 3  ;;  %v1375_v45 = vmul.f32 %v3882_v61, %v3251_v12 }
 0x1a4   : > { %1267 = vrot.lane.b32.xlu0 %v1264_v7, %s5434_s7  ;;  %1081 = vrot.lane.b32.xlu1 %v1078_v39, %s5432_s24  ;;  %v3889_v7 = vmul.f32 %v3882_v61, %v3336_v50  ;;  %v1361_v39 = vrot.slane %v1355_v25, 3  ;;  %v3919_v25 = vstv %s2618_s12  ;;  %s4130_s12 = sld [smem:[#allocation10 + $0x1e]] }
 0x1a5   : > { %v559_v44 = vadd.f32 %v3700_v28, %v546_v32  ;;  %v1098_v28 = vsel %vm997_vm5, %v1095_v3, %v1097_v53  ;;  %v1341_v35 = vsel %vm1284_vm6, %v1339_v60, %v1340_v18  ;;  %v1362_v3 = vrot.slane %v3863_v26, 3 }
 0x1a6   : > { %v569_v55 = vpop.permute.xlu0 %568  ;;  %v1139_v32 = vrot.slane %v1132_v17, 2  ;;  %v1382_v4 = vrot.slane %v3889_v7, 3  ;;  %v1381_v60 = vrot.slane %v1375_v45, 3  ;;  %v3950_v45 = vstv %s2619_s20  ;;  %s4169_s20 = sld [smem:[#allocation10 + $0x4f]] }
 0x1a7   : > { %v574_v56 = vadd.f32 %v569_v55, %v559_v44  ;;  %v1363_v42 = vsel %vm1284_vm6, %v1361_v39, %v1362_v3  ;;  %v1439_v2 = vmul.f32 %v3950_v45, %v3303_v36 }
 0x1a8   : > { %1324 = vrot.lane.b32.xlu0 %v1321_v51, %s5436_s15  ;;  %1101 = vrot.lane.b32.xlu1 %v1098_v28, %s5432_s24  ;;  %v1140_v55 = vsel %vm997_vm5, %v1137_v13, %v1139_v32  ;;  %v1174_v51 = vmul.f32 %v3706_v19, %v3502_v63  ;;  %v1397_v28 = vmul.f32 %v3897_v33, %v3303_v36 }
 0x1a9   : > { %v587_v52 = vadd.f32 %v3723_v59, %v574_v56  ;;  %v1154_v59 = vmul.f32 %v3681_v6, %v3618_v22  ;;  %v3906_v6 = vmul.f32 %v3897_v33, %v3424_v24  ;;  %v3926_v19 = vmul.f32 %v3919_v25, %v3336_v50 }
 0x1aa   : > { %v597_v10 = vpop.permute.xlu0 %596  ;;  %v1403_v32 = vrot.slane %v1397_v28, 3  ;;  %v4183_v26 = vstv %s4130_s12  ;;  %s4421_s12 = sld [smem:[#allocation10 + $0x53]] }
 0x1ab   : > { %v602_v53 = vadd.f32 %v597_v10, %v587_v52  ;;  %v1161_v56 = vrot.slane %v1154_v59, 2  ;;  %v5404_v52 = vrot.slane %v3906_v6, 3  ;;  %v1383_v10 = vsel %vm1284_vm6, %v1381_v60, %v1382_v4 }
 0x1ac   : > { %1344 = vrot.lane.b32.xlu0 %v1341_v35, %s5436_s15  ;;  %1123 = vrot.lane.b32.xlu1 %v1120_v54, %s5437_s4  ;;  %v1181_v35 = vrot.slane %v1174_v51, 2  ;;  %v1196_v54 = vmul.f32 %v3721_v27, %v3618_v22  ;;  %v1417_v59 = vmul.f32 %v3919_v25, %v3251_v12  ;;  %v5402_v27 = vrot.slane %v3926_v19, 3 }
 0x1ad   : > { %v615_v17 = vadd.f32 %v3746_v9, %v602_v53  ;;  %v1162_v9 = vsel %vm997_vm5, %v1159_v58, %v1161_v56  ;;  %v1405_v58 = vsel %vm1284_vm6, %v1403_v32, %v5404_v52  ;;  %v1216_v56 = vmul.f32 %v3742_v47, %v3502_v63 }
 0x1ae   : > { %v3899_v16 = vpop.permute.xlu1 %555  ;;  %v625_v44 = vpop.permute.xlu0 %624  ;;  %v1423_v51 = vrot.slane %v1417_v59, 3  ;;  %v1445_v59 = vrot.slane %v1439_v2, 3 }
 0x1af   : > { %v630_v39 = vadd.f32 %v625_v44, %v615_v17  ;;  %v3957_v44 = vmul.f32 %v3950_v45, %v3424_v24 }
 0x1b0   : > { %1366 = vrot.lane.b32.xlu0 %v1363_v42, %s5432_s24  ;;  %1143 = vrot.lane.b32.xlu1 %v1140_v55, %s5437_s4  ;;  %v1182_v42 = vsel %vm997_vm5, %v1179_v8, %v1181_v35  ;;  %v1203_v55 = vrot.slane %v1196_v54, 2  ;;  %v3968_v8 = vstv %s2620_s21  ;;  %v1425_v60 = vsel %vm1284_vm6, %v1423_v51, %v5402_v27  ;;  %s4185_s21 = sld [smem:[#allocation10 + $0x3f]] }
 0x1b1   : > { %v643_v28 = vadd.f32 %v3769_v14, %v630_v39  ;;  %v1223_v35 = vrot.slane %v1216_v56, 2  ;;  %v1238_v54 = vmul.f32 %v3767_v23, %v3618_v22  ;;  %v1459_v15 = vmul.f32 %v3968_v8, %v3251_v12 }
 0x1b2   : > { %v3921_v34 = vpop.permute.xlu1 %583  ;;  %v653_v13 = vpop.permute.xlu0 %652  ;;  %v1204_v14 = vsel %vm997_vm5, %v1201_v1, %v1203_v55  ;;  %v3996_v39 = vstv %s3940_s25  ;;  %v1258_v56 = vmul.f32 %v3796_v40, %v3502_v63  ;;  %v525_v40 = vmul.f32 %v523_v57, %v3424_v24  ;;  %s4191_s25 = sld [smem:[#allocation10 + $0x50]] }
 0x1b3   : > { %v658_v32 = vadd.f32 %v653_v13, %v643_v28  ;;  %v1245_v55 = vrot.slane %v1238_v54, 2  ;;  %v1481_v51 = vmul.f32 %v3996_v39, %v3303_v36  ;;  %v4022_v28 = vstv %s3963_s1  ;;  %s4202_s1 = sld [smem:[#allocation10 + $0x1f]] }
 0x1b4   : > { %1386 = vrot.lane.b32.xlu0 %v1383_v10, %s5432_s24  ;;  %1165 = vrot.lane.b32.xlu1 %v1162_v9, %s5435_s8  ;;  %v3981_v10 = vmul.f32 %v3968_v8, %v3336_v50  ;;  %v5401_v9 = vrot.slane %v3957_v44, 3  ;;  %v1465_v21 = vrot.slane %v1459_v15, 3 }
 0x1b5   : > { %v671_v2 = vadd.f32 %v3789_v38, %v658_v32  ;;  %v4043_v38 = vmul.f32 %v4022_v28, %v3336_v50  ;;  %v1246_v57 = vsel %vm997_vm5, %v1243_v46, %v1245_v55  ;;  %v1265_v32 = vrot.slane %v1258_v56, 2 }
 0x1b6   : > { %v3942_v53 = vpop.permute.xlu1 %611  ;;  %v3944_v43 = vpop.permute.xlu0 %680  ;;  %v5400_v13 = vrot.slane %v3981_v10, 3  ;;  %v1447_v12 = vsel %vm1284_vm6, %v1445_v59, %v5401_v9  ;;  %v1315_v59 = vmul.f32 %v3814_v49, %v3618_v22  ;;  %v4068_v49 = vstv %s3998_s29  ;;  %s4240_s29 = sld [smem:[#allocation10 + $0x20]] }
 0x1b7   : > { %v686_v46 = vadd.f32 %v3944_v43, %v671_v2  ;;  %v4082_v43 = vmul.f32 %v4068_v49, %v3424_v24  ;;  %v1335_v9 = vmul.f32 %v3838_v5, %v3502_v63 }
 0x1b8   : > { %1408 = vrot.lane.b32.xlu0 %v1405_v58, %s5437_s4  ;;  %1185 = vrot.lane.b32.xlu1 %v1182_v42, %s5435_s8  ;;  %v4007_v58 = vmul.f32 %v3996_v39, %v3424_v24  ;;  %v1224_v42 = vsel %vm997_vm5, %v1221_v20, %v1223_v35  ;;  %v530_v20 = vmul.f32 %v528_v37, %v3336_v50 }
 0x1b9   : > { %v1467_v37 = vsel %vm1284_vm6, %v1465_v21, %v5400_v13  ;;  %v4064_v21 = vstv %s3991_s28  ;;  %v1508_v13 = vrot.slane %v4043_v38, 3  ;;  %s4214_s28 = sld [smem:[#allocation10 + $0x51]] }
 0x1ba   : > { %v3972_v17 = vpop.permute.xlu1 %639  ;;  %v3974_v47 = vpop.permute.xlu0 %770  ;;  %v5403_v54 = vrot.slane %v4007_v58, 3  ;;  %v532_v55 = vadd.f32 %v530_v20, %v525_v40  ;;  %v1266_v20 = vsel %vm997_vm5, %v1263_v41, %v1265_v32  ;;  %v1322_v40 = vrot.slane %v1315_v59, 3 }
 0x1bb   : > { %v699_v41 = vadd.f32 %v3816_v29, %v686_v46  ;;  %v1523_v32 = vmul.f32 %v4068_v49, %v3303_v36  ;;  %v1357_v29 = vmul.f32 %v3858_v62, %v3618_v22  ;;  %v5411_v46 = vrot.slane %v4082_v43, 3 }
 0x1bc   : > { %1428 = vrot.lane.b32.xlu0 %v1425_v60, %s5437_s4  ;;  %1207 = vrot.lane.b32.xlu1 %v1204_v14, %s5433_s26  ;;  %v4034_v60 = vstv %s3970_s22  ;;  %s4212_s22 = sld [smem:[#allocation10 + $0xe]] }
 0x1bd   : > { %v4055_v15 = vmul.f32 %v4034_v60, %v3424_v24  ;;  %v704_v56 = vmul.f32 %v4034_v60, %v3303_v36  ;;  %v1323_v36 = vsel %vm1284_vm6, %v1320_v11, %v1322_v40 }
 0x1be   : > { %v4000_v1 = vpop.permute.xlu1 %667  ;;  %v4002_v23 = vpop.permute.xlu0 %812 }
 0x1bf   : > { %v5412_v27 = vrot.slane %v4055_v15, 1  ;;  %v711_v59 = vrot.slane %v704_v56, 1  ;;  %v1342_v56 = vrot.slane %v1335_v9, 3  ;;  %v4134_v9 = vstv %s4070_s17  ;;  %s4345_s17 = sld [smem:[#allocation10 + $0x52]] }
 0x1c0   : > { %1450 = vrot.lane.b32.xlu0 %v1447_v12, %s5435_s8  ;;  %1227 = vrot.lane.b32.xlu1 %v1224_v42, %s5433_s26  ;;  %v1487_v12 = vrot.slane %v1481_v51, 3  ;;  %v4059_v42 = vld [vmem:[#allocation5] sm:$0xff] }
 0x1c1   : > { %v1501_v30 = vmul.f32 %v4059_v42, %v4022_v28  ;;  %v721_v48 = vmul.f32 %v4059_v42, %v4064_v21 }
 0x1c2   : > { %v4036_v14 = vpop.permute.xlu1 %695  ;;  %v4038_v35 = vpop.permute.xlu0 %854 }
 0x1c4   : > { %1470 = vrot.lane.b32.xlu0 %v1467_v37, %s5435_s8  ;;  %1249 = vrot.lane.b32.xlu1 %v1246_v57, %s5434_s7  ;;  %v1489_v57 = vsel %vm1284_vm6, %v1487_v12, %v5403_v54  ;;  %v4092_v12 = vmul.f32 %v4064_v21, %v3336_v50  ;;  %v1507_v54 = vrot.slane %v1501_v30, 3 }
 0x1c6   : > { %v543_v37 = vpop.permute.xlu1 %542  ;;  %v4074_v51 = vpop.permute.xlu0 %896  ;;  %v1509_v30 = vsel %vm1284_vm6, %v1507_v54, %v1508_v13  ;;  %v713_v54 = vsel %vm710_vm4, %v711_v59, %v5412_v27 }
 0x1c7   : > { %v547_v2 = vadd.f32 %v543_v37, %v532_v55  ;;  %v4097_v55 = vstv %s4024_s23  ;;  %v718_v0 = vadd.f32 %v713_v54, %v699_v41  ;;  %s4324_s23 = sld [smem:[#allocation10 + $0x21]] }
 0x1c8   : > { %1492 = vrot.lane.b32.xlu0 %v1489_v57, %s5433_s26  ;;  %1269 = vrot.lane.b32.xlu1 %v1266_v20, %s5434_s7  ;;  %v4112_v57 = vmul.f32 %v4097_v55, %v3336_v50  ;;  %v5410_v50 = vrot.slane %v4092_v12, 1  ;;  %v1543_v62 = vmul.f32 %v4059_v42, %v4097_v55  ;;  %v727_v20 = vrot.slane %v721_v48, 1 }
 0x1c9   : > { %v560_v5 = vadd.f32 %v3899_v16, %v547_v2  ;;  %v1529_v2 = vrot.slane %v1523_v32, 3  ;;  %v4149_v48 = vmul.f32 %v4134_v9, %v3424_v24 }
 0x1ca   : > { %v571_v37 = vpop.permute.xlu1 %570  ;;  %v4105_v52 = vpop.permute.xlu0 %938  ;;  %v5409_v59 = vrot.slane %v4112_v57, 3  ;;  %v729_v41 = vsel %vm710_vm4, %v727_v20, %v5410_v50 }
 0x1cb   : > { %v575_v16 = vadd.f32 %v571_v37, %v560_v5  ;;  %v1364_v37 = vrot.slane %v1357_v29, 3  ;;  %v734_v32 = vadd.f32 %v729_v41, %v718_v0 }
 0x1cc   : > { %1512 = vrot.lane.b32.xlu0 %v1509_v30, %s5433_s26  ;;  %1326 = vrot.lane.b32.xlu1 %v1323_v36, %s5436_s15  ;;  %v1377_v30 = vmul.f32 %v3882_v61, %v3502_v63  ;;  %v1531_v36 = vsel %vm1284_vm6, %v1529_v2, %v5411_v46  ;;  %v1549_v61 = vrot.slane %v1543_v62, 3  ;;  %v4167_v62 = vstv %s4116_s3  ;;  %s4389_s3 = sld [smem:[#allocation10 + $0x22]] }
 0x1cd   : > { %v588_v11 = vadd.f32 %v3921_v34, %v575_v16  ;;  %v1343_v34 = vsel %vm1284_vm6, %v1340_v18, %v1342_v56  ;;  %v4156_v16 = vld [vmem:[#allocation4] sm:$0xff]  ;;  %v1365_v2 = vsel %vm1284_vm6, %v1362_v3, %v1364_v37 }
 0x1ce   : > { %v599_v40 = vpop.permute.xlu1 %598  ;;  %v4136_v5 = vpop.permute.xlu0 %980  ;;  %v1600_v31 = vmul.f32 %v4156_v16, %v4134_v9  ;;  %v1551_v54 = vsel %vm1284_vm6, %v1549_v61, %v5409_v59  ;;  %v1384_v20 = vrot.slane %v1377_v30, 3  ;;  %v1620_v30 = vmul.f32 %v4059_v42, %v4167_v62  ;;  %v4320_v59 = vld [vmem:[#allocation5 + $0x10] sm:$0x3f] }
 0x1cf   : > { %v603_v29 = vadd.f32 %v599_v40, %v588_v11  ;;  %v5408_v11 = vrot.slane %v4149_v48, 4  ;;  %v1399_v40 = vmul.f32 %v3897_v33, %v3618_v22  ;;  %v1503_v50 = vmul.f32 %v4320_v59, %v4022_v28 }
 0x1d0   : > { %1534 = vrot.lane.b32.xlu0 %v1531_v36, %s5434_s7  ;;  %1346 = vrot.lane.b32.xlu1 %v1343_v34, %s5436_s15  ;;  %v4174_v36 = vld [vmem:[#allocation5 + $0x8] sm:$0xff]  ;;  %v1606_v33 = vrot.slane %v1600_v31, 4 }
 0x1d1   : > { %v4178_v34 = vmul.f32 %v4174_v36, %v4167_v62  ;;  %v616_v3 = vadd.f32 %v3942_v53, %v603_v29  ;;  %v4200_v53 = vmul.f32 %v4183_v26, %v3424_v24  ;;  %v1406_v31 = vrot.slane %v1399_v40, 3 }
 0x1d2   : > { %v627_v18 = vpop.permute.xlu1 %626  ;;  %v751_v56 = vpop.permute.xlu0 %750  ;;  %v1608_v29 = vsel %vm1571_vm7, %v1606_v33, %v5408_v11  ;;  %v4223_v33 = vstv %s4169_s20  ;;  %s4435_s20 = sld [smem:[#allocation10 + $0x24]] }
 0x1d3   : > { %v756_v0 = vadd.f32 %v751_v56, %v734_v32  ;;  %v1385_v32 = vsel %vm1284_vm6, %v1382_v4, %v1384_v20  ;;  %v1419_v56 = vmul.f32 %v3919_v25, %v3502_v63  ;;  %v5407_v7 = vrot.slane %v4178_v34, 4 }
 0x1d4   : > { %1554 = vrot.lane.b32.xlu0 %v1551_v54, %s5434_s7  ;;  %1368 = vrot.lane.b32.xlu1 %v1365_v2, %s5432_s24  ;;  %v1642_v4 = vmul.f32 %v4156_v16, %v4183_v26  ;;  %v631_v24 = vadd.f32 %v627_v18, %v616_v3  ;;  %v1626_v54 = vrot.slane %v1620_v30, 4  ;;  %v5406_v40 = vrot.slane %v4200_v53, 4 }
 0x1d5   : > { %v776_v37 = vadd.f32 %v3974_v47, %v756_v0  ;;  %v1426_v0 = vrot.slane %v1419_v56, 3  ;;  %v4233_v3 = vmul.f32 %v4174_v36, %v4223_v33  ;;  %v4238_v30 = vstv %s4185_s21  ;;  %s4462_s21 = sld [smem:[#allocation10 + $0x55]] }
 0x1d6   : > { %v655_v41 = vpop.permute.xlu1 %654  ;;  %v793_v61 = vpop.permute.xlu0 %792 }
 0x1d7   : > { %v798_v47 = vadd.f32 %v793_v61, %v776_v37  ;;  %v1441_v37 = vmul.f32 %v3950_v45, %v3618_v22  ;;  %v1648_v45 = vrot.slane %v1642_v4, 4  ;;  %v5439_v4 = vrot.slane %v3926_v19, 3 }
 0x1d8   : > { %1388 = vrot.lane.b32.xlu1 %v1385_v32, %s5432_s24  ;;  %1611 = vrot.lane.b32.xlu0 %v1608_v29, %s5436_s15  ;;  %v5438_v32 = vrot.slane %v3906_v6, 3  ;;  %v644_v6 = vadd.f32 %v3972_v17, %v631_v24  ;;  %v4247_v29 = vstv %s4191_s25  ;;  %s4494_s25 = sld [smem:[#allocation10 + $0x25]] }
 0x1d9   : > { %v818_v25 = vadd.f32 %v4002_v23, %v798_v47  ;;  %v1628_v23 = vsel %vm1571_vm7, %v1626_v54, %v5407_v7  ;;  %v1662_v47 = vmul.f32 %v4059_v42, %v4223_v33  ;;  %v1427_v54 = vsel %vm1284_vm6, %v5439_v4, %v1426_v0 }
 0x1da   : > { %v4217_v2 = vpop.permute.xlu1 %682  ;;  %v835_v20 = vpop.permute.xlu0 %834  ;;  %v1407_v18 = vsel %vm1284_vm6, %v5438_v32, %v1406_v31  ;;  %v1650_v17 = vsel %vm1571_vm7, %v1648_v45, %v5406_v40  ;;  %v1448_v24 = vrot.slane %v1441_v37, 3  ;;  %v1461_v32 = vmul.f32 %v3968_v8, %v3502_v63 }
 0x1db   : > { %v840_v61 = vadd.f32 %v835_v20, %v818_v25  ;;  %v4272_v0 = vstv %s4212_s22  ;;  %v4275_v37 = vstv %s4214_s28  ;;  %v5440_v4 = vrot.slane %v3957_v44, 3  ;;  %s4517_s22 = sld [smem:[#allocation10 + $0x46]]  ;;  %s4541_s28 = sld [smem:[#allocation10 + $0x15]] }
 0x1dc   : > { %1410 = vrot.lane.b32.xlu1 %v1407_v18, %s5437_s4  ;;  %1631 = vrot.lane.b32.xlu0 %v1628_v23, %s5436_s15  ;;  %v4263_v18 = vld [vmem:[#allocation4 + $0x8] sm:$0xff]  ;;  %v659_v23 = vadd.f32 %v655_v41, %v644_v6  ;;  %v1483_v41 = vmul.f32 %v3996_v39, %v3618_v22  ;;  %v1008_v39 = vmul.f32 %v4059_v42, %v4238_v30 }
 0x1dd   : > { %v860_v56 = vadd.f32 %v4038_v35, %v840_v61  ;;  %v4258_v35 = vstv %s4202_s1  ;;  %v5405_v61 = vrot.slane %v4233_v3, 4  ;;  %s4515_s1 = sld [smem:[#allocation10 + $0x56]] }
 0x1de   : > { %v4249_v31 = vpop.permute.xlu1 %772  ;;  %v877_v25 = vpop.permute.xlu0 %876  ;;  %v4267_v19 = vmul.f32 %v4263_v18, %v4258_v35  ;;  %v1684_v63 = vmul.f32 %v4156_v16, %v4258_v35  ;;  %v1490_v7 = vrot.slane %v1483_v41, 3  ;;  %v1014_v28 = vrot.slane %v1008_v39, 2 }
 0x1df   : > { %v882_v20 = vadd.f32 %v877_v25, %v860_v56  ;;  %v1668_v56 = vrot.slane %v1662_v47, 4 }
 0x1e0   : > { %1430 = vrot.lane.b32.xlu1 %v1427_v54, %s5437_s4  ;;  %1653 = vrot.lane.b32.xlu0 %v1650_v17, %s5432_s24  ;;  %v1449_v54 = vsel %vm1284_vm6, %v5440_v4, %v1448_v24  ;;  %v4287_v17 = vmul.f32 %v4263_v18, %v4272_v0  ;;  %v1691_v44 = vrot.slane %v4267_v19, 4  ;;  %v991_v24 = vmul.f32 %v4156_v16, %v4272_v0 }
 0x1e1   : > { %v902_v45 = vadd.f32 %v4074_v51, %v882_v20  ;;  %v4293_v51 = vmul.f32 %v4174_v36, %v4247_v29  ;;  %v1670_v47 = vsel %vm1571_vm7, %v1668_v56, %v5405_v61  ;;  %v1468_v20 = vrot.slane %v1461_v32, 3 }
 0x1e2   : > { %v4280_v8 = vpop.permute.xlu1 %814  ;;  %v919_v25 = vpop.permute.xlu0 %918  ;;  %v672_v32 = vadd.f32 %v4000_v1, %v659_v23  ;;  %v1690_v4 = vrot.slane %v1684_v63, 4  ;;  %v999_v61 = vrot.slane %v4287_v17, 2  ;;  %v5441_v1 = vrot.slane %v3981_v10, 3 }
 0x1e3   : > { %v924_v6 = vadd.f32 %v919_v25, %v902_v45  ;;  %v4307_v45 = vmul.f32 %v4174_v36, %v4238_v30  ;;  %v4310_v25 = vstv %s4240_s29  ;;  %v1711_v11 = vrot.slane %v4293_v51, 4  ;;  %s4543_s29 = sld [smem:[#allocation10 + $0x26]] }
 0x1e4   : > { %1452 = vrot.lane.b32.xlu1 %v1449_v54, %s5435_s8  ;;  %1673 = vrot.lane.b32.xlu0 %v1670_v47, %s5432_s24  ;;  %v1704_v54 = vmul.f32 %v4059_v42, %v4247_v29  ;;  %v1469_v23 = vsel %vm1284_vm6, %v5441_v1, %v1468_v20  ;;  %v1692_v63 = vsel %vm1571_vm7, %v1690_v4, %v1691_v44  ;;  %v998_v46 = vrot.slane %v991_v24, 2 }
 0x1e5   : > { %v944_v56 = vadd.f32 %v4105_v52, %v924_v6  ;;  %v4334_v41 = vmul.f32 %v4263_v18, %v4310_v25  ;;  %v706_v6 = vmul.f32 %v4034_v60, %v3618_v22  ;;  %v1015_v27 = vrot.slane %v4307_v45, 2 }
 0x1e6   : > { %v4316_v47 = vpop.permute.xlu1 %856  ;;  %v961_v40 = vpop.permute.xlu0 %960  ;;  %v687_v10 = vadd.f32 %v4217_v2, %v672_v32  ;;  %v1710_v20 = vrot.slane %v1704_v54, 4  ;;  %v1000_v60 = vsel %vm997_vm5, %v998_v46, %v999_v61  ;;  %v5442_v4 = vrot.slane %v4007_v58, 3 }
 0x1e7   : > { %v966_v52 = vadd.f32 %v961_v40, %v944_v56  ;;  %v1726_v56 = vmul.f32 %v4156_v16, %v4310_v25  ;;  %v1510_v32 = vrot.slane %v1503_v50, 3  ;;  %v1733_v46 = vrot.slane %v4334_v41, 4 }
 0x1e8   : > { %1472 = vrot.lane.b32.xlu1 %v1469_v23, %s5435_s8  ;;  %1695 = vrot.lane.b32.xlu0 %v1692_v63, %s5437_s4  ;;  %v1491_v2 = vsel %vm1284_vm6, %v5442_v4, %v1490_v7  ;;  %v4365_v1 = vmul.f32 %v4174_v36, %v4275_v37  ;;  %v723_v58 = vmul.f32 %v4320_v59, %v4064_v21  ;;  %v714_v7 = vrot.slane %v706_v6, 1 }
 0x1e9   : > { %v986_v40 = vadd.f32 %v4136_v5, %v966_v52  ;;  %v1525_v5 = vmul.f32 %v4068_v49, %v3618_v22  ;;  %v1712_v52 = vsel %vm1571_vm7, %v1710_v20, %v1711_v11  ;;  %v1016_v49 = vsel %vm997_vm5, %v1014_v28, %v1015_v27 }
 0x1ea   : > { %v4350_v24 = vpop.permute.xlu1 %898  ;;  %v4352_v39 = vpop.permute.xlu0 %1037  ;;  %v700_v50 = vadd.f32 %v4036_v14, %v687_v10  ;;  %v1732_v63 = vrot.slane %v1726_v56, 4  ;;  %v1511_v6 = vsel %vm1284_vm6, %v1508_v13, %v1510_v32  ;;  %v1753_v10 = vrot.slane %v4365_v1, 4 }
 0x1eb   : > { %v1005_v54 = vadd.f32 %v1000_v60, %v986_v40  ;;  %v1746_v40 = vmul.f32 %v4059_v42, %v4275_v37  ;;  %v1532_v28 = vrot.slane %v1525_v5, 3  ;;  %v4387_v60 = vstv %s4324_s23  ;;  %s4576_s23 = sld [smem:[#allocation10 + $0x57]] }
 0x1ec   : > { %1494 = vrot.lane.b32.xlu1 %v1491_v2, %s5433_s26  ;;  %1715 = vrot.lane.b32.xlu0 %v1712_v52, %s5437_s4  ;;  %v1734_v14 = vsel %vm1571_vm7, %v1732_v63, %v1733_v46  ;;  %v1545_v56 = vmul.f32 %v4320_v59, %v4097_v55  ;;  %v4399_v38 = vmul.f32 %v4263_v18, %v4387_v60  ;;  %v730_v4 = vrot.slane %v723_v58, 1 }
 0x1ed   : > { %v4375_v23 = vadd.f32 %v1016_v49, %v1005_v54  ;;  %v5443_v13 = vrot.slane %v4055_v15, 1  ;;  %v1752_v5 = vrot.slane %v1746_v40, 4  ;;  %v1768_v54 = vmul.f32 %v4156_v16, %v4387_v60 }
 0x1ee   : > { %v4379_v20 = vpop.permute.xlu1 %940  ;;  %v4381_v21 = vpop.permute.xlu0 %1057  ;;  %v4409_v52 = vstv %s4345_s17  ;;  %v1602_v15 = vmul.f32 %v4134_v9, %v3618_v22  ;;  %v1552_v40 = vrot.slane %v1545_v56, 3  ;;  %v5445_v22 = vrot.slane %v4092_v12, 1  ;;  %s4606_s17 = sld [smem:[#allocation10 + $0x27]] }
 0x1ef   : > { %v715_v2 = vsel %vm710_vm4, %v5443_v13, %v714_v7  ;;  %v4419_v58 = vmul.f32 %v4174_v36, %v4409_v52  ;;  %v5444_v7 = vrot.slane %v4082_v43, 3  ;;  %v1754_v63 = vsel %vm1571_vm7, %v1752_v5, %v1753_v10 }
 0x1f0   : > { %1514 = vrot.lane.b32.xlu1 %v1511_v6, %s5433_s26  ;;  %1737 = vrot.lane.b32.xlu0 %v1734_v14, %s5435_s8  ;;  %v719_v32 = vadd.f32 %v715_v2, %v700_v50  ;;  %v1775_v6 = vrot.slane %v4399_v38, 4  ;;  %v731_v9 = vsel %vm710_vm4, %v5445_v22, %v730_v4  ;;  %v1788_v14 = vmul.f32 %v4059_v42, %v4409_v52 }
 0x1f1   : > { %v1533_v50 = vsel %vm1284_vm6, %v5444_v7, %v1532_v28  ;;  %v1774_v28 = vrot.slane %v1768_v54, 4  ;;  %v1609_v56 = vrot.slane %v1602_v15, 4  ;;  %v5414_v5 = vrot.slane %v4419_v58, 4 }
 0x1f2   : > { %v4411_v55 = vpop.permute.xlu1 %982  ;;  %v4413_v49 = vpop.permute.xlu0 %1079  ;;  %v735_v43 = vadd.f32 %v731_v9, %v719_v32  ;;  %v1622_v12 = vmul.f32 %v4320_v59, %v4167_v62  ;;  %v4445_v4 = vstv %s4389_s3  ;;  %v5447_v9 = vrot.slane %v4149_v48, 4  ;;  %s4645_s3 = sld [smem:[#allocation10 + $0x58]] }
 0x1f3   : > { %v1776_v54 = vsel %vm1571_vm7, %v1774_v28, %v1775_v6  ;;  %v4455_v15 = vmul.f32 %v4263_v18, %v4445_v4 }
 0x1f4   : > { %1536 = vrot.lane.b32.xlu1 %v1533_v50, %s5434_s7  ;;  %1757 = vrot.lane.b32.xlu0 %v1754_v63, %s5435_s8  ;;  %v5446_v50 = vrot.slane %v4112_v57, 3  ;;  %v1794_v63 = vrot.slane %v1788_v14, 4  ;;  %v1810_v57 = vmul.f32 %v4156_v16, %v4445_v4  ;;  %v1629_v28 = vrot.slane %v1622_v12, 4 }
 0x1f5   : > { %v4474_v14 = vstv %s4421_s12  ;;  %s4684_s12 = sld [smem:[#allocation10 + $0x28]] }
 0x1f6   : > { %v753_v13 = vpop.permute.xlu1 %752  ;;  %v4439_v2 = vpop.permute.xlu0 %1099  ;;  %v1553_v32 = vsel %vm1284_vm6, %v5446_v50, %v1552_v40  ;;  %v1796_v50 = vsel %vm1571_vm7, %v1794_v63, %v5414_v5  ;;  %v4482_v48 = vmul.f32 %v4174_v36, %v4474_v14  ;;  %v5449_v5 = vrot.slane %v4200_v53, 4 }
 0x1f7   : > { %v757_v7 = vadd.f32 %v753_v13, %v735_v43  ;;  %v1610_v43 = vsel %vm1571_vm7, %v5447_v9, %v1609_v56  ;;  %v4469_v13 = vld [vmem:[#allocation4 + $0x10] sm:$0x3f]  ;;  %v4487_v56 = vstv %s4435_s20  ;;  %v5448_v9 = vrot.slane %v4178_v34, 4  ;;  %s4718_s20 = sld [smem:[#allocation10 + $0x59]] }
 0x1f8   : > { %1556 = vrot.lane.b32.xlu1 %v1553_v32, %s5434_s7  ;;  %1779 = vrot.lane.b32.xlu0 %v1776_v54, %s5433_s26  ;;  %v5413_v32 = vrot.slane %v4455_v15, 4  ;;  %v1816_v54 = vrot.slane %v1810_v57, 4  ;;  %v1887_v34 = vmul.f32 %v4156_v16, %v4487_v56 }
 0x1f9   : > { %v777_v62 = vadd.f32 %v4249_v31, %v757_v7  ;;  %v1644_v31 = vmul.f32 %v4469_v13, %v4183_v26  ;;  %v1043_v26 = vadd.f32 %v4352_v39, %v4375_v23 }
 0x1fa   : > { %v795_v40 = vpop.permute.xlu1 %794  ;;  %v4464_v22 = vpop.permute.xlu0 %1121  ;;  %v1818_v23 = vsel %vm1571_vm7, %v1816_v54, %v5413_v32  ;;  %v4522_v54 = vstv %s4462_s21  ;;  %s4736_s21 = sld [smem:[#allocation10 + $0x29]] }
 0x1fb   : > { %v799_v7 = vadd.f32 %v795_v40, %v777_v62  ;;  %v1830_v62 = vmul.f32 %v4059_v42, %v4474_v14  ;;  %v1651_v57 = vrot.slane %v1644_v31, 4 }
 0x1fc   : > { %1613 = vrot.lane.b32.xlu1 %v1610_v43, %s5436_s15  ;;  %1799 = vrot.lane.b32.xlu0 %v1796_v50, %s5433_s26  ;;  %v1630_v43 = vsel %vm1571_vm7, %v5448_v9, %v1629_v28  ;;  %v1664_v50 = vmul.f32 %v4320_v59, %v4223_v33  ;;  %v1063_v33 = vadd.f32 %v4381_v21, %v1043_v26 }
 0x1fd   : > { %v819_v12 = vadd.f32 %v4280_v8, %v799_v7  ;;  %v4505_v8 = vmul.f32 %v4263_v18, %v4487_v56  ;;  %v1837_v7 = vrot.slane %v4482_v48, 4  ;;  %v1652_v21 = vsel %vm1571_vm7, %v5449_v5, %v1651_v57 }
 0x1fe   : > { %v837_v63 = vpop.permute.xlu1 %836  ;;  %v4496_v40 = vpop.permute.xlu0 %1141  ;;  %v1671_v9 = vrot.slane %v1664_v50, 4  ;;  %v4535_v26 = vmul.f32 %v4174_v36, %v4522_v54  ;;  %v1085_v53 = vadd.f32 %v4413_v49, %v1063_v33  ;;  %v993_v50 = vmul.f32 %v4469_v13, %v4272_v0 }
 0x1ff   : > { %v841_v39 = vadd.f32 %v837_v63, %v819_v12  ;;  %v1836_v12 = vrot.slane %v1830_v62, 4  ;;  %v1893_v62 = vrot.slane %v1887_v34, 5 }
 0x200   : > { %1633 = vrot.lane.b32.xlu1 %v1630_v43, %s5436_s15  ;;  %1821 = vrot.lane.b32.xlu0 %v1818_v23, %s5434_s7  ;;  %v1894_v43 = vrot.slane %v4505_v8, 5  ;;  %v1686_v23 = vmul.f32 %v4469_v13, %v4258_v35  ;;  %v1907_v35 = vmul.f32 %v4059_v42, %v4522_v54  ;;  %v1105_v0 = vadd.f32 %v4439_v2, %v1085_v53 }
 0x201   : > { %v861_v28 = vadd.f32 %v4316_v47, %v841_v39  ;;  %v1838_v47 = vsel %vm1571_vm7, %v1836_v12, %v1837_v7  ;;  %v4550_v39 = vstv %s4494_s25  ;;  %v1914_v33 = vrot.slane %v4535_v26, 5  ;;  %s4754_s25 = sld [smem:[#allocation10 + $0x5a]] }
 0x202   : > { %v879_v31 = vpop.permute.xlu1 %878  ;;  %v1164_v63 = vpop.permute.xlu0 %1163  ;;  %v1693_v49 = vrot.slane %v1686_v23, 4  ;;  %v4571_v23 = vstv %s4515_s1  ;;  %v1127_v2 = vadd.f32 %v4464_v22, %v1105_v0  ;;  %v1929_v53 = vmul.f32 %v4156_v16, %v4550_v39  ;;  %s4777_s1 = sld [smem:[#allocation10 + $0x2b]] }
 0x203   : > { %v883_v32 = vadd.f32 %v879_v31, %v861_v28  ;;  %v5450_v28 = vrot.slane %v4233_v3, 4  ;;  %v1895_v31 = vsel %vm1858_vm8, %v1893_v62, %v1894_v43  ;;  %v1010_v3 = vmul.f32 %v4320_v59, %v4238_v30 }
 0x204   : > { %1655 = vrot.lane.b32.xlu1 %v1652_v21, %s5432_s24  ;;  %1841 = vrot.lane.b32.xlu0 %v1838_v47, %s5434_s7  ;;  %v4564_v21 = vmul.f32 %v4263_v18, %v4550_v39  ;;  %v1001_v62 = vrot.slane %v993_v50, 2  ;;  %v1694_v30 = vsel %vm1571_vm7, %v1691_v44, %v1693_v49  ;;  %v4589_v22 = vmul.f32 %v4174_v36, %v4571_v23 }
 0x205   : > { %v903_v5 = vadd.f32 %v4350_v24, %v883_v32  ;;  %v1672_v12 = vsel %vm1571_vm7, %v5450_v28, %v1671_v9  ;;  %v1706_v24 = vmul.f32 %v4320_v59, %v4247_v29  ;;  %v1913_v9 = vrot.slane %v1907_v35, 5 }
 0x206   : > { %v921_v57 = vpop.permute.xlu1 %920  ;;  %v1184_v34 = vpop.permute.xlu0 %1183  ;;  %v4574_v29 = vstv %s4517_s22  ;;  %v1728_v28 = vmul.f32 %v4469_v13, %v4310_v25  ;;  %v1017_v19 = vrot.slane %v1010_v3, 2  ;;  %v1949_v44 = vmul.f32 %v4059_v42, %v4571_v23  ;;  %s4803_s22 = sld [smem:[#allocation10 + $0x5c]] }
 0x207   : > { %v925_v32 = vadd.f32 %v921_v57, %v903_v5  ;;  %v1713_v35 = vrot.slane %v1706_v24, 4  ;;  %v4601_v25 = vstv %s4541_s28  ;;  %v4604_v49 = vstv %s4543_s29  ;;  %s4827_s28 = sld [smem:[#allocation10 + $0x2c]]  ;;  %s4857_s29 = sld [smem:[#allocation10 + $0x5d]] }
 0x208   : > { %1675 = vrot.lane.b32.xlu1 %v1672_v12, %s5432_s24  ;;  %1898 = vrot.lane.b32.xlu0 %v1895_v31, %s5436_s15  ;;  %v1915_v12 = vsel %vm1858_vm8, %v1913_v9, %v1914_v33  ;;  %v1936_v31 = vrot.slane %v4564_v21, 5  ;;  %v1002_v24 = vsel %vm997_vm5, %v999_v61, %v1001_v62  ;;  %v1955_v51 = vrot.slane %v1949_v44, 5 }
 0x209   : > { %v945_v47 = vadd.f32 %v4379_v20, %v925_v32  ;;  %v1147_v20 = vadd.f32 %v4496_v40, %v1127_v2  ;;  %v1935_v32 = vrot.slane %v1929_v53, 5  ;;  %v1714_v2 = vsel %vm1571_vm7, %v1711_v11, %v1713_v35 }
 0x20a   : > { %v963_v5 = vpop.permute.xlu1 %962  ;;  %v1206_v57 = vpop.permute.xlu0 %1205  ;;  %v1018_v11 = vsel %vm997_vm5, %v1015_v27, %v1017_v19  ;;  %v1278_v35 = vmul.f32 %v4156_v16, %v4601_v25  ;;  %v1971_v27 = vmul.f32 %v4156_v16, %v4604_v49 }
 0x20b   : > { %v967_v50 = vadd.f32 %v963_v5, %v945_v47  ;;  %v1169_v40 = vadd.f32 %v1164_v63, %v1147_v20  ;;  %v1735_v47 = vrot.slane %v1728_v28, 4  ;;  %v1956_v5 = vrot.slane %v4589_v22, 5 }
 0x20c   : > { %1697 = vrot.lane.b32.xlu1 %v1694_v30, %s5437_s4  ;;  %1918 = vrot.lane.b32.xlu0 %v1915_v12, %s5436_s15  ;;  %v1748_v63 = vmul.f32 %v4320_v59, %v4275_v37  ;;  %v1937_v61 = vsel %vm1858_vm8, %v1935_v32, %v1936_v31  ;;  %v4634_v37 = vmul.f32 %v4263_v18, %v4601_v25  ;;  %v1285_v32 = vrot.slane %v1278_v35, 3 }
 0x20d   : > { %v987_v0 = vadd.f32 %v4411_v55, %v967_v50  ;;  %v1189_v17 = vadd.f32 %v1184_v34, %v1169_v40  ;;  %v4625_v55 = vmul.f32 %v4263_v18, %v4604_v49  ;;  %v4637_v34 = vstv %s4576_s23  ;;  %s4886_s23 = sld [smem:[#allocation10 + $0x2d]] }
 0x20e   : > { %v4612_v3 = vpop.permute.xlu1 %1039  ;;  %v1226_v9 = vpop.permute.xlu0 %1225  ;;  %v1736_v20 = vsel %vm1571_vm7, %v1733_v46, %v1735_v47  ;;  %v4654_v50 = vmul.f32 %v4174_v36, %v4574_v29  ;;  %v1770_v12 = vmul.f32 %v4469_v13, %v4387_v60  ;;  %v1957_v44 = vsel %vm1858_vm8, %v1955_v51, %v1956_v5 }
 0x20f   : > { %v1006_v30 = vadd.f32 %v1002_v24, %v987_v0  ;;  %v1211_v53 = vadd.f32 %v1206_v57, %v1189_v17  ;;  %v1755_v57 = vrot.slane %v1748_v63, 4  ;;  %v1978_v40 = vrot.slane %v4625_v55, 5 }
 0x210   : > { %1717 = vrot.lane.b32.xlu1 %v1714_v2, %s5437_s4  ;;  %1940 = vrot.lane.b32.xlu0 %v1937_v61, %s5432_s24  ;;  %v4664_v41 = vmul.f32 %v4174_v36, %v4637_v34  ;;  %v1286_v46 = vrot.slane %v4634_v37, 3  ;;  %v1295_v60 = vmul.f32 %v4059_v42, %v4574_v29  ;;  %v4672_v24 = vstv %s4606_s17  ;;  %s4905_s17 = sld [smem:[#allocation10 + $0x5e]] }
 0x211   : > { %v4639_v62 = vadd.f32 %v1018_v11, %v1006_v30  ;;  %v1231_v19 = vadd.f32 %v1226_v9, %v1211_v53  ;;  %v1977_v9 = vrot.slane %v1971_v27, 5  ;;  %v1991_v2 = vmul.f32 %v4059_v42, %v4637_v34 }
 0x212   : > { %v4647_v45 = vpop.permute.xlu1 %1059  ;;  %v1248_v28 = vpop.permute.xlu0 %1247  ;;  %v1302_v63 = vrot.slane %v4654_v50, 3  ;;  %v1756_v30 = vsel %vm1571_vm7, %v1753_v10, %v1755_v57  ;;  %v1777_v61 = vrot.slane %v1770_v12, 4  ;;  %v1790_v11 = vmul.f32 %v4320_v59, %v4409_v52 }
 0x213   : > { %v1253_v0 = vadd.f32 %v1248_v28, %v1231_v19  ;;  %v1979_v53 = vsel %vm1858_vm8, %v1977_v9, %v1978_v40  ;;  %v1998_v35 = vrot.slane %v4664_v41, 5  ;;  %v4692_v27 = vmul.f32 %v4263_v18, %v4672_v24 }
 0x214   : > { %1739 = vrot.lane.b32.xlu1 %v1736_v20, %s5435_s8  ;;  %1960 = vrot.lane.b32.xlu0 %v1957_v44, %s5432_s24  ;;  %v1287_v1 = vsel %vm1284_vm6, %v1285_v32, %v1286_v46  ;;  %v1301_v10 = vrot.slane %v1295_v60, 3  ;;  %v1997_v28 = vrot.slane %v1991_v2, 5  ;;  %v2013_v20 = vmul.f32 %v4156_v16, %v4672_v24 }
 0x215   : > { %v4702_v57 = vstv %s4645_s3  ;;  %v1778_v60 = vsel %vm1571_vm7, %v1775_v6, %v1777_v61  ;;  %v2020_v38 = vrot.slane %v4692_v27, 5  ;;  %s4935_s3 = sld [smem:[#allocation10 + $0x2e]] }
 0x216   : > { %v4676_v47 = vpop.permute.xlu1 %1081  ;;  %v1268_v17 = vpop.permute.xlu0 %1267  ;;  %v1303_v12 = vsel %vm1284_vm6, %v1301_v10, %v1302_v63  ;;  %v4716_v32 = vmul.f32 %v4174_v36, %v4702_v57  ;;  %v1999_v2 = vsel %vm1858_vm8, %v1997_v28, %v1998_v35  ;;  %v4734_v10 = vstv %s4684_s12  ;;  %s2662_s12 = sld [smem:[#allocation10 + $0x5f]] }
 0x217   : > { %v1273_v51 = vadd.f32 %v1268_v17, %v1253_v0  ;;  %v1812_v0 = vmul.f32 %v4469_v13, %v4445_v4  ;;  %v1797_v17 = vrot.slane %v1790_v11, 4  ;;  %v2019_v4 = vrot.slane %v2013_v20, 5 }
 0x218   : > { %1759 = vrot.lane.b32.xlu1 %v1756_v30, %s5435_s8  ;;  %1982 = vrot.lane.b32.xlu0 %v1979_v53, %s5437_s4  ;;  %v2033_v30 = vmul.f32 %v4059_v42, %v4702_v57  ;;  %v1832_v11 = vmul.f32 %v4320_v59, %v4474_v14  ;;  %v5451_v28 = vrot.slane %v4419_v58, 4  ;;  %v1044_v14 = vadd.f32 %v4612_v3, %v4639_v62 }
 0x219   : > { %v1292_v52 = vadd.f32 %v1287_v1, %v1273_v51  ;;  %v1819_v53 = vrot.slane %v1812_v0, 4  ;;  %v2040_v1 = vrot.slane %v4716_v32, 5  ;;  %v2055_v58 = vmul.f32 %v4156_v16, %v4734_v10 }
 0x21a   : > { %v4707_v19 = vpop.permute.xlu1 %1101  ;;  %v1325_v44 = vpop.permute.xlu0 %1324  ;;  %v1798_v20 = vsel %vm1571_vm7, %v5451_v28, %v1797_v17  ;;  %v2035_v50 = vmul.f32 %v4320_v59, %v4702_v57 }
 0x21b   : > { %v1308_v9 = vadd.f32 %v1303_v12, %v1292_v52  ;;  %v2021_v12 = vsel %vm1858_vm8, %v2019_v4, %v2020_v38  ;;  %v1889_v4 = vmul.f32 %v4469_v13, %v4487_v56  ;;  %v2061_v56 = vrot.slane %v2055_v58, 5 }
 0x21c   : > { %1781 = vrot.lane.b32.xlu1 %v1778_v60, %s5433_s26  ;;  %2002 = vrot.lane.b32.xlu0 %v1999_v2, %s5437_s4  ;;  %v2039_v60 = vrot.slane %v2033_v30, 5  ;;  %v5452_v2 = vrot.slane %v4455_v15, 4  ;;  %v1064_v15 = vadd.f32 %v4647_v45, %v1044_v14 }
 0x21d   : > { %v1330_v6 = vadd.f32 %v1325_v44, %v1308_v9  ;;  %v4746_v44 = vmul.f32 %v4263_v18, %v4734_v10 }
 0x21e   : > { %v4728_v61 = vpop.permute.xlu1 %1123  ;;  %v1345_v51 = vpop.permute.xlu0 %1344  ;;  %v1820_v17 = vsel %vm1571_vm7, %v5452_v2, %v1819_v53  ;;  %v2041_v62 = vsel %vm1858_vm8, %v2039_v60, %v2040_v1  ;;  %v1909_v60 = vmul.f32 %v4320_v59, %v4522_v54  ;;  %v1086_v48 = vadd.f32 %v4676_v47, %v1064_v15 }
 0x21f   : > { %v1350_v52 = vadd.f32 %v1345_v51, %v1330_v6  ;;  %v1839_v6 = vrot.slane %v1832_v11, 4  ;;  %v4762_v51 = vstv %s4718_s20  ;;  %v2062_v30 = vrot.slane %v4746_v44, 5  ;;  %s2663_s20 = sld [smem:[#allocation10 + $0x2f]] }
 0x220   : > { %1801 = vrot.lane.b32.xlu1 %v1798_v20, %s5433_s26  ;;  %2024 = vrot.lane.b32.xlu0 %v2021_v12, %s5435_s8  ;;  %v4770_v28 = vmul.f32 %v4174_v36, %v4762_v51  ;;  %v2075_v53 = vmul.f32 %v4059_v42, %v4762_v51  ;;  %v1896_v12 = vrot.slane %v1889_v4, 5  ;;  %v1106_v15 = vadd.f32 %v4707_v19, %v1086_v48 }
 0x221   : > { %v1840_v20 = vsel %vm1571_vm7, %v1837_v7, %v1839_v6  ;;  %v2063_v14 = vsel %vm1858_vm8, %v2061_v56, %v2062_v30  ;;  %v1931_v56 = vmul.f32 %v4469_v13, %v4550_v39 }
 0x222   : > { %v1144_v0 = vpop.permute.xlu1 %1143  ;;  %v1367_v9 = vpop.permute.xlu0 %1366  ;;  %v2082_v58 = vrot.slane %v4770_v28, 5  ;;  %v2081_v7 = vrot.slane %v2075_v53, 5 }
 0x223   : > { %v1372_v3 = vadd.f32 %v1367_v9, %v1350_v52  ;;  %v4785_v9 = vstv %s4736_s21  ;;  %s2664_s21 = sld [smem:[#allocation10 + $0x60]] }
 0x224   : > { %1823 = vrot.lane.b32.xlu1 %v1820_v17, %s5434_s7  ;;  %2044 = vrot.lane.b32.xlu0 %v2041_v62, %s5435_s8  ;;  %v4793_v2 = vmul.f32 %v4263_v18, %v4785_v9  ;;  %v2097_v54 = vmul.f32 %v4156_v16, %v4785_v9  ;;  %v4801_v17 = vstv %s4754_s25  ;;  %v1916_v62 = vrot.slane %v1909_v60, 5  ;;  %s5026_s25 = sld [smem:[#allocation10 + $0x30]] }
 0x225   : > { %v4812_v47 = vmul.f32 %v4174_v36, %v4801_v17  ;;  %v2117_v8 = vmul.f32 %v4059_v42, %v4801_v17  ;;  %v1951_v42 = vmul.f32 %v4320_v59, %v4571_v23  ;;  %v4847_v23 = vstv %s4803_s22  ;;  %s5051_s22 = sld [smem:[#allocation10 + $0x61]] }
 0x226   : > { %v1166_v11 = vpop.permute.xlu1 %1165  ;;  %v1387_v52 = vpop.permute.xlu0 %1386  ;;  %v2103_v39 = vrot.slane %v2097_v54, 5  ;;  %v4862_v21 = vmul.f32 %v4174_v36, %v4847_v23 }
 0x227   : > { %v1392_v45 = vadd.f32 %v1387_v52, %v1372_v3  ;;  %v1897_v3 = vsel %vm1858_vm8, %v1894_v43, %v1896_v12  ;;  %v2083_v52 = vsel %vm1858_vm8, %v2081_v7, %v2082_v58  ;;  %v1128_v43 = vadd.f32 %v4728_v61, %v1106_v15 }
 0x228   : > { %1843 = vrot.lane.b32.xlu1 %v1840_v20, %s5434_s7  ;;  %2066 = vrot.lane.b32.xlu0 %v2063_v14, %s5433_s26  ;;  %v2104_v20 = vrot.slane %v4793_v2, 5  ;;  %v4825_v12 = vstv %s4777_s1  ;;  %v1938_v14 = vrot.slane %v1931_v56, 5  ;;  %v2124_v48 = vrot.slane %v4812_v47, 5  ;;  %s5036_s1 = sld [smem:[#allocation10 + $0x1c]] }
 0x229   : > { %v1148_v7 = vadd.f32 %v1144_v0, %v1128_v43  ;;  %v2123_v26 = vrot.slane %v2117_v8, 5 }
 0x22a   : > { %v1186_v6 = vpop.permute.xlu1 %1185  ;;  %v1409_v4 = vpop.permute.xlu0 %1408  ;;  %v2105_v54 = vsel %vm1858_vm8, %v2103_v39, %v2104_v20  ;;  %v1939_v56 = vsel %vm1858_vm8, %v1936_v31, %v1938_v14  ;;  %v1297_v39 = vmul.f32 %v4320_v59, %v4574_v29  ;;  %v1993_v14 = vmul.f32 %v4320_v59, %v4637_v34 }
 0x22b   : > { %v1414_v53 = vadd.f32 %v1409_v4, %v1392_v45  ;;  %v1917_v45 = vsel %vm1858_vm8, %v1914_v33, %v1916_v62  ;;  %v4840_v4 = vmul.f32 %v4263_v18, %v4825_v12  ;;  %v2174_v33 = vmul.f32 %v4156_v16, %v4825_v12 }
 0x22c   : > { %1900 = vrot.lane.b32.xlu1 %v1897_v3, %s5436_s15  ;;  %2086 = vrot.lane.b32.xlu0 %v2083_v52, %s5433_s26  ;;  %v1170_v3 = vadd.f32 %v1166_v11, %v1148_v7  ;;  %v2125_v15 = vsel %vm1858_vm8, %v2123_v26, %v2124_v48  ;;  %v1973_v52 = vmul.f32 %v4469_v13, %v4604_v49 }
 0x22d   : > { %v2181_v43 = vrot.slane %v4840_v4, 6  ;;  %v2180_v31 = vrot.slane %v2174_v33, 6  ;;  %v1280_v49 = vmul.f32 %v4469_v13, %v4601_v25  ;;  %v2201_v33 = vrot.slane %v4862_v21, 6 }
 0x22e   : > { %v1208_v19 = vpop.permute.xlu1 %1207  ;;  %v1429_v60 = vpop.permute.xlu0 %1428  ;;  %v1190_v11 = vadd.f32 %v1186_v6, %v1170_v3 }
 0x22f   : > { %v1434_v61 = vadd.f32 %v1429_v60, %v1414_v53  ;;  %v1958_v53 = vrot.slane %v1951_v42, 5  ;;  %v4870_v60 = vld [vmem:[#allocation5] sm:$0xff]  ;;  %v4877_v42 = vstv %s4827_s28  ;;  %v2182_v34 = vsel %vm2145_vm9, %v2180_v31, %v2181_v43  ;;  %s5061_s28 = sld [smem:[#allocation10 + $0x4d]] }
 0x230   : > { %1920 = vrot.lane.b32.xlu1 %v1917_v45, %s5436_s15  ;;  %2108 = vrot.lane.b32.xlu0 %v2105_v54, %s5434_s7  ;;  %v1212_v6 = vadd.f32 %v1208_v19, %v1190_v11  ;;  %v2194_v45 = vmul.f32 %v4870_v60, %v4847_v23  ;;  %v1980_v54 = vrot.slane %v1973_v52, 5  ;;  %v4884_v29 = vmul.f32 %v4263_v18, %v4877_v42 }
 0x231   : > { %v1959_v25 = vsel %vm1858_vm8, %v1956_v5, %v1958_v53  ;;  %v1288_v22 = vrot.slane %v1280_v49, 3  ;;  %v2216_v5 = vmul.f32 %v4156_v16, %v4877_v42  ;;  %v4903_v31 = vstv %s4857_s29 }
 0x232   : > { %v1228_v0 = vpop.permute.xlu1 %1227  ;;  %v1451_v62 = vpop.permute.xlu0 %1450  ;;  %v1981_v52 = vsel %vm1858_vm8, %v1978_v40, %v1980_v54  ;;  %v2223_v11 = vrot.slane %v4884_v29, 6  ;;  %v4912_v55 = vmul.f32 %v4174_v36, %v4903_v31  ;;  %v2236_v36 = vmul.f32 %v4870_v60, %v4903_v31 }
 0x233   : > { %v1456_v8 = vadd.f32 %v1451_v62, %v1434_v61  ;;  %v1232_v19 = vadd.f32 %v1228_v0, %v1212_v6  ;;  %v1304_v62 = vrot.slane %v1297_v39, 3  ;;  %v2000_v0 = vrot.slane %v1993_v14, 5 }
 0x234   : > { %1942 = vrot.lane.b32.xlu1 %v1939_v56, %s5432_s24  ;;  %2128 = vrot.lane.b32.xlu0 %v2125_v15, %s5434_s7  ;;  %v2200_v56 = vrot.slane %v2194_v45, 6  ;;  %v1289_v40 = vsel %vm1284_vm6, %v1286_v46, %v1288_v22  ;;  %v2242_v57 = vrot.slane %v2236_v36, 6 }
 0x235   : > { %v1305_v6 = vsel %vm1284_vm6, %v1302_v63, %v1304_v62  ;;  %v2001_v14 = vsel %vm1858_vm8, %v1998_v35, %v2000_v0  ;;  %v2243_v35 = vrot.slane %v4912_v55, 6  ;;  %v2042_v62 = vrot.slane %v2035_v50, 5 }
 0x236   : > { %v1250_v7 = vpop.permute.xlu1 %1249  ;;  %v1471_v61 = vpop.permute.xlu0 %1470  ;;  %v2202_v39 = vsel %vm2145_vm9, %v2200_v56, %v2201_v33  ;;  %v2057_v56 = vmul.f32 %v4469_v13, %v4734_v10  ;;  %v4958_v0 = vstv %s4905_s17  ;;  %v2099_v50 = vmul.f32 %v4469_v13, %v4785_v9 }
 0x237   : > { %v1476_v26 = vadd.f32 %v1471_v61, %v1456_v8  ;;  %v1254_v3 = vadd.f32 %v1250_v7, %v1232_v19  ;;  %v2015_v8 = vmul.f32 %v4469_v13, %v4672_v24  ;;  %v2222_v24 = vrot.slane %v2216_v5, 6 }
 0x238   : > { %1962 = vrot.lane.b32.xlu1 %v1959_v25, %s5432_s24  ;;  %2185 = vrot.lane.b32.xlu0 %v2182_v34, %s5436_s15  ;;  %v4933_v25 = vstv %s4886_s23  ;;  %v2278_v10 = vmul.f32 %v4870_v60, %v4958_v0 }
 0x239   : > { %v2224_v46 = vsel %vm2145_vm9, %v2222_v24, %v2223_v11  ;;  %v2022_v61 = vrot.slane %v2015_v8, 5  ;;  %v4942_v54 = vmul.f32 %v4263_v18, %v4933_v25  ;;  %v4964_v8 = vld [vmem:[#allocation5 + $0x8] sm:$0xff]  ;;  %v2077_v24 = vmul.f32 %v4320_v59, %v4762_v51 }
 0x23a   : > { %v1270_v15 = vpop.permute.xlu1 %1269  ;;  %v1493_v53 = vpop.permute.xlu0 %1492  ;;  %v4968_v27 = vmul.f32 %v4964_v8, %v4958_v0  ;;  %v2284_v32 = vrot.slane %v2278_v10, 6 }
 0x23b   : > { %v1274_v16 = vadd.f32 %v1270_v15, %v1254_v3  ;;  %v1498_v49 = vadd.f32 %v1493_v53, %v1476_v26  ;;  %v4946_v26 = vld [vmem:[#allocation4] sm:$0xff]  ;;  %v2023_v3 = vsel %vm1858_vm8, %v2020_v38, %v2022_v61  ;;  %v2244_v53 = vsel %vm2145_vm9, %v2242_v57, %v2243_v35 }
 0x23c   : > { %1984 = vrot.lane.b32.xlu1 %v1981_v52, %s5437_s4  ;;  %2205 = vrot.lane.b32.xlu0 %v2202_v39, %s5436_s15  ;;  %v2258_v34 = vmul.f32 %v4946_v26, %v4933_v25  ;;  %v2265_v52 = vrot.slane %v4942_v54, 6  ;;  %v2043_v39 = vsel %vm1858_vm8, %v2040_v1, %v2042_v62  ;;  %v2285_v36 = vrot.slane %v4968_v27, 6 }
 0x23d   : > { %v1293_v45 = vadd.f32 %v1289_v40, %v1274_v16  ;;  %v2064_v40 = vrot.slane %v2057_v56, 5  ;;  %v2084_v61 = vrot.slane %v2077_v24, 5  ;;  %v2106_v56 = vrot.slane %v2099_v50, 5 }
 0x23e   : > { %v1327_v37 = vpop.permute.xlu1 %1326  ;;  %v1513_v7 = vpop.permute.xlu0 %1512  ;;  %v2264_v38 = vrot.slane %v2258_v34, 6  ;;  %v2286_v57 = vsel %vm2145_vm9, %v2284_v32, %v2285_v36 }
 0x23f   : > { %v1309_v41 = vadd.f32 %v1305_v6, %v1293_v45  ;;  %v4937_v63 = vadd.f32 %v1513_v7, %v1498_v49  ;;  %v4982_v6 = vstv %s4935_s3  ;;  %v2085_v62 = vsel %vm1858_vm8, %v2082_v58, %v2084_v61 }
 0x240   : > { %2004 = vrot.lane.b32.xlu1 %v2001_v14, %s5437_s4  ;;  %2227 = vrot.lane.b32.xlu0 %v2224_v46, %s5432_s24  ;;  %v2266_v14 = vsel %vm2145_vm9, %v2264_v38, %v2265_v52  ;;  %v2300_v1 = vmul.f32 %v4946_v26, %v4982_v6  ;;  %v2065_v46 = vsel %vm1858_vm8, %v2062_v30, %v2064_v40 }
 0x241   : > { %v1331_v19 = vadd.f32 %v1327_v37, %v1309_v41  ;;  %v4990_v37 = vmul.f32 %v4263_v18, %v4982_v6  ;;  %v5003_v41 = vstv %s2662_s12  ;;  %v2107_v24 = vsel %vm1858_vm8, %v2104_v20, %v2106_v56  ;;  %v5081_v56 = vld [vmem:[#allocation4 + $0x8] sm:$0xff] }
 0x242   : > { %v1347_v22 = vpop.permute.xlu1 %1346  ;;  %v4950_v5 = vpop.permute.xlu0 %1534  ;;  %v2306_v44 = vrot.slane %v2300_v1, 6  ;;  %v2320_v30 = vmul.f32 %v4870_v60, %v5003_v41  ;;  %v2302_v55 = vmul.f32 %v4469_v13, %v4982_v6 }
 0x243   : > { %v1351_v15 = vadd.f32 %v1347_v22, %v1331_v19  ;;  %v2307_v34 = vrot.slane %v4990_v37, 6  ;;  %v5011_v22 = vmul.f32 %v4964_v8, %v5003_v41 }
 0x244   : > { %2026 = vrot.lane.b32.xlu1 %v2023_v3, %s5435_s8  ;;  %2247 = vrot.lane.b32.xlu0 %v2244_v53, %s5432_s24  ;;  %v5024_v53 = vstv %s2663_s20  ;;  %v2326_v58 = vrot.slane %v2320_v30, 6 }
 0x245   : > { %v2308_v10 = vsel %vm2145_vm9, %v2306_v44, %v2307_v34  ;;  %v5034_v28 = vmul.f32 %v4263_v18, %v5024_v53  ;;  %v2176_v18 = vmul.f32 %v4469_v13, %v4825_v12  ;;  %v5075_v44 = vstv %s5026_s25 }
 0x246   : > { %v1369_v16 = vpop.permute.xlu1 %1368  ;;  %v4974_v49 = vpop.permute.xlu0 %1554  ;;  %v5085_v47 = vmul.f32 %v5081_v56, %v5075_v44 }
 0x247   : > { %v1373_v45 = vadd.f32 %v1369_v16, %v1351_v15  ;;  %v2119_v15 = vmul.f32 %v4320_v59, %v4801_v17  ;;  %v2327_v16 = vrot.slane %v5011_v22, 6  ;;  %v2342_v17 = vmul.f32 %v4946_v26, %v5024_v53 }
 0x248   : > { %2046 = vrot.lane.b32.xlu1 %v2043_v39, %s5435_s8  ;;  %2269 = vrot.lane.b32.xlu0 %v2266_v14, %s5437_s4  ;;  %v5049_v14 = vstv %s2664_s21  ;;  %v2386_v22 = vmul.f32 %v4469_v13, %v5075_v44 }
 0x249   : > { %v2328_v1 = vsel %vm2145_vm9, %v2326_v58, %v2327_v16  ;;  %v5059_v2 = vmul.f32 %v4964_v8, %v5049_v14  ;;  %v2348_v20 = vrot.slane %v2342_v17, 6  ;;  %v2362_v12 = vmul.f32 %v4870_v60, %v5049_v14 }
 0x24a   : > { %v1389_v51 = vpop.permute.xlu1 %1388  ;;  %v4996_v7 = vpop.permute.xlu0 %1611 }
 0x24b   : > { %v1393_v19 = vadd.f32 %v1389_v51, %v1373_v45  ;;  %v2126_v45 = vrot.slane %v2119_v15, 5  ;;  %v2349_v51 = vrot.slane %v5034_v28, 6  ;;  %v2384_v15 = vmul.f32 %v4946_v26, %v5075_v44 }
 0x24c   : > { %2068 = vrot.lane.b32.xlu1 %v2065_v46, %s5433_s26  ;;  %2289 = vrot.lane.b32.xlu0 %v2286_v57, %s5437_s4  ;;  %v2196_v57 = vmul.f32 %v4320_v59, %v4847_v23  ;;  %v2368_v23 = vrot.slane %v2362_v12, 6  ;;  %v2393_v44 = vrot.slane %v2386_v22, 6 }
 0x24d   : > { %v2127_v50 = vsel %vm1858_vm8, %v2124_v48, %v2126_v45  ;;  %v5088_v48 = vstv %s5036_s1  ;;  %v2390_v12 = vrot.slane %v2384_v15, 6 }
 0x24e   : > { %v1411_v9 = vpop.permute.xlu1 %1410  ;;  %v5017_v3 = vpop.permute.xlu0 %1631  ;;  %v5094_v59 = vmul.f32 %v5081_v56, %v5088_v48  ;;  %v2203_v17 = vrot.slane %v2196_v57, 6  ;;  %v1565_v4 = vmul.f32 %v4946_v26, %v5088_v48 }
 0x24f   : > { %v1415_v38 = vadd.f32 %v1411_v9, %v1393_v19  ;;  %v2183_v19 = vrot.slane %v2176_v18, 6  ;;  %v2350_v9 = vsel %vm2145_vm9, %v2348_v20, %v2349_v51 }
 0x250   : > { %2088 = vrot.lane.b32.xlu1 %v2085_v62, %s5433_s26  ;;  %2311 = vrot.lane.b32.xlu0 %v2308_v10, %s5435_s8  ;;  %v2369_v62 = vrot.slane %v5059_v2, 6 }
 0x251   : > { %v2184_v58 = vsel %vm2145_vm9, %v2181_v43, %v2183_v19  ;;  %v5119_v43 = vstv %s5061_s28 }
 0x252   : > { %v1431_v39 = vpop.permute.xlu1 %1430  ;;  %v5042_v40 = vpop.permute.xlu0 %1653  ;;  %v2370_v18 = vsel %vm2145_vm9, %v2368_v23, %v2369_v62  ;;  %v5127_v20 = vmul.f32 %v4964_v8, %v5119_v43  ;;  %v5135_v23 = vld [vmem:[#allocation5 + $0x10] sm:$0x3f]  ;;  %v1582_v21 = vmul.f32 %v4870_v60, %v5119_v43 }
 0x253   : > { %v1435_v32 = vadd.f32 %v1431_v39, %v1415_v38  ;;  %v2218_v39 = vmul.f32 %v4469_v13, %v4877_v42  ;;  %v1540_v42 = vadd.f32 %v4950_v5, %v4937_v63  ;;  %v2238_v63 = vmul.f32 %v5135_v23, %v4903_v31 }
 0x254   : > { %2110 = vrot.lane.b32.xlu1 %v2107_v24, %s5434_s7  ;;  %2331 = vrot.lane.b32.xlu0 %v2328_v1, %s5435_s8  ;;  %v5106_v24 = vstv %s5051_s22  ;;  %v2322_v54 = vmul.f32 %v5135_v23, %v5003_v41  ;;  %v1584_v2 = vmul.f32 %v5135_v23, %v5119_v43 }
 0x255   : > { %v5114_v1 = vmul.f32 %v4964_v8, %v5106_v24  ;;  %v1560_v5 = vadd.f32 %v4974_v49, %v1540_v42  ;;  %v1589_v49 = vrot.slane %v5127_v20, 4 }
 0x256   : > { %v1453_v46 = vpop.permute.xlu1 %1452  ;;  %v5067_v61 = vpop.permute.xlu0 %1673  ;;  %v2329_v27 = vrot.slane %v2322_v54, 6 }
 0x257   : > { %v1457_v30 = vadd.f32 %v1453_v46, %v1435_v32  ;;  %v2391_v32 = vrot.slane %v5085_v47, 6  ;;  %v2404_v46 = vmul.f32 %v4870_v60, %v5106_v24 }
 0x258   : > { %2130 = vrot.lane.b32.xlu1 %v2127_v50, %s5434_s7  ;;  %2353 = vrot.lane.b32.xlu0 %v2350_v9, %s5433_s26  ;;  %v1573_v50 = vrot.slane %v5094_v59, 4  ;;  %v2225_v9 = vrot.slane %v2218_v39, 6 }
 0x25a   : > { %v1473_v38 = vpop.permute.xlu1 %1472  ;;  %v5098_v10 = vpop.permute.xlu0 %1695 }
 0x25b   : > { %v1477_v45 = vadd.f32 %v1473_v38, %v1457_v30  ;;  %v2204_v30 = vsel %vm2145_vm9, %v2201_v33, %v2203_v17  ;;  %v2392_v38 = vsel %vm2145_vm9, %v2390_v12, %v2391_v32  ;;  %v2410_v33 = vrot.slane %v2404_v46, 6 }
 0x25c   : > { %2187 = vrot.lane.b32.xlu1 %v2184_v58, %s5436_s15  ;;  %2373 = vrot.lane.b32.xlu0 %v2370_v18, %s5433_s26  ;;  %v2411_v58 = vrot.slane %v5114_v1, 6  ;;  %v1572_v18 = vrot.slane %v1565_v4, 4  ;;  %v2245_v4 = vrot.slane %v2238_v63, 6 }
 0x25e   : > { %v1495_v19 = vpop.permute.xlu1 %1494  ;;  %v1716_v57 = vpop.permute.xlu0 %1715  ;;  %v1574_v31 = vsel %vm1571_vm7, %v1572_v18, %v1573_v50  ;;  %v2412_v46 = vsel %vm2145_vm9, %v2410_v33, %v2411_v58 }
 0x25f   : > { %v1499_v15 = vadd.f32 %v1495_v19, %v1477_v45  ;;  %v2226_v45 = vsel %vm2145_vm9, %v2223_v11, %v2225_v9  ;;  %v1579_v42 = vadd.f32 %v1574_v31, %v1560_v5  ;;  %v2260_v19 = vmul.f32 %v4469_v13, %v4933_v25 }
 0x260   : > { %2207 = vrot.lane.b32.xlu1 %v2204_v30, %s5436_s15  ;;  %2395 = vrot.lane.b32.xlu0 %v2392_v38, %s5434_s7  ;;  %v1588_v30 = vrot.slane %v1582_v21, 4  ;;  %v2246_v5 = vsel %vm2145_vm9, %v2243_v35, %v2245_v4  ;;  %v2280_v25 = vmul.f32 %v5135_v23, %v4958_v0  ;;  %s2640_s15 = sld [smem:[#allocation10 + $0x54]] }
 0x262   : > { %v1515_v17 = vpop.permute.xlu1 %1514  ;;  %v1738_v39 = vpop.permute.xlu0 %1737  ;;  %v1590_v29 = vsel %vm1571_vm7, %v1588_v30, %v1589_v49  ;;  %v2287_v31 = vrot.slane %v2280_v25, 6  ;;  %v2406_v25 = vmul.f32 %v5135_v23, %v5106_v24 }
 0x263   : > { %v5155_v12 = vadd.f32 %v1515_v17, %v1499_v15  ;;  %v1595_v63 = vadd.f32 %v1590_v29, %v1579_v42  ;;  %v2267_v15 = vrot.slane %v2260_v19, 6 }
 0x264   : > { %2229 = vrot.lane.b32.xlu1 %v2226_v45, %s5432_s24  ;;  %2415 = vrot.lane.b32.xlu0 %v2412_v46, %s5434_s7  ;;  %v2288_v45 = vsel %vm2145_vm9, %v2285_v36, %v2287_v31  ;;  %v2344_v36 = vmul.f32 %v4469_v13, %v5024_v53 }
 0x265   : > { %v1617_v21 = vadd.f32 %v4996_v7, %v1595_v63  ;;  %v2268_v33 = vsel %vm2145_vm9, %v2265_v52, %v2267_v15  ;;  %v2309_v7 = vrot.slane %v2302_v55, 6 }
 0x266   : > { %v1537_v11 = vpop.permute.xlu1 %1536  ;;  %v1758_v9 = vpop.permute.xlu0 %1757  ;;  %v2351_v37 = vrot.slane %v2344_v36, 6 }
 0x267   : > { %v1637_v0 = vadd.f32 %v5017_v3, %v1617_v21  ;;  %v2310_v3 = vsel %vm2145_vm9, %v2307_v34, %v2309_v7  ;;  %v2364_v34 = vmul.f32 %v5135_v23, %v5049_v14 }
 0x268   : > { %2249 = vrot.lane.b32.xlu1 %v2246_v5, %s5432_s24  ;;  %s2639_s24 = sld [smem:[#allocation10 + $0x23]]  ;;  %v5218_v5 = vld [vmem:[#allocation4 + $0x10] sm:$0x3f] }
 0x269   : > { %v1659_v52 = vadd.f32 %v5042_v40, %v1637_v0  ;;  %v2371_v63 = vrot.slane %v2364_v34, 6 }
 0x26a   : > { %v1557_v38 = vpop.permute.xlu1 %1556  ;;  %v1780_v18 = vpop.permute.xlu0 %1779 }
 0x26b   : > { %v1679_v42 = vadd.f32 %v5067_v61, %v1659_v52  ;;  %v2330_v61 = vsel %vm2145_vm9, %v2327_v16, %v2329_v27  ;;  %v2372_v13 = vsel %vm2145_vm9, %v2369_v62, %v2371_v63  ;;  %v1591_v52 = vrot.slane %v1584_v2, 4 }
 0x26c   : > { %2271 = vrot.lane.b32.xlu1 %v2268_v33, %s5437_s4  ;;  %v5235_v33 = vstv %s2640_s15 }
 0x26d   : > { %v1701_v41 = vadd.f32 %v5098_v10, %v1679_v42  ;;  %v5242_v55 = vmul.f32 %v4964_v8, %v5235_v33  ;;  %v1869_v54 = vmul.f32 %v4870_v60, %v5235_v33  ;;  %v1592_v59 = vsel %vm1571_vm7, %v1589_v49, %v1591_v52 }
 0x26e   : > { %v5180_v35 = vpop.permute.xlu1 %1613  ;;  %v1800_v17 = vpop.permute.xlu0 %1799  ;;  %v5216_v14 = vstv %s2639_s24 }
 0x26f   : > { %v1721_v19 = vadd.f32 %v1716_v57, %v1701_v41  ;;  %v2352_v57 = vsel %vm2145_vm9, %v2349_v51, %v2351_v37  ;;  %v1876_v47 = vrot.slane %v5242_v55, 5  ;;  %v1875_v36 = vrot.slane %v1869_v54, 5 }
 0x270   : > { %2291 = vrot.lane.b32.xlu1 %v2288_v45, %s5437_s4 }
 0x271   : > { %v1743_v53 = vadd.f32 %v1738_v39, %v1721_v19  ;;  %v1567_v39 = vmul.f32 %v5218_v5, %v5088_v48  ;;  %v1541_v48 = vadd.f32 %v1537_v11, %v5155_v12  ;;  %v2394_v12 = vsel %vm2145_vm9, %v2391_v32, %v2393_v44 }
 0x272   : > { %v5190_v6 = vpop.permute.xlu1 %1633  ;;  %v1822_v4 = vpop.permute.xlu0 %1821  ;;  %v2413_v11 = vrot.slane %v2406_v25, 6 }
 0x273   : > { %v1763_v29 = vadd.f32 %v1758_v9, %v1743_v53  ;;  %v5224_v9 = vmul.f32 %v5081_v56, %v5216_v14  ;;  %v1575_v31 = vrot.slane %v1567_v39, 4  ;;  %v1561_v0 = vadd.f32 %v1557_v38, %v1541_v48 }
 0x274   : > { %2313 = vrot.lane.b32.xlu1 %v2310_v3, %s5435_s8  ;;  %v2414_v27 = vsel %vm2145_vm9, %v2411_v58, %v2413_v11 }
 0x275   : > { %v1785_v16 = vadd.f32 %v1780_v18, %v1763_v29  ;;  %v1852_v18 = vmul.f32 %v4946_v26, %v5216_v14  ;;  %v1860_v62 = vrot.slane %v5224_v9, 5  ;;  %v1576_v43 = vsel %vm1571_vm7, %v1573_v50, %v1575_v31 }
 0x276   : > { %v5200_v46 = vpop.permute.xlu1 %1655  ;;  %v1842_v40 = vpop.permute.xlu0 %1841  ;;  %v1580_v42 = vadd.f32 %v1576_v43, %v1561_v0  ;;  %v1877_v50 = vsel %vm1858_vm8, %v1875_v36, %v1876_v47 }
 0x277   : > { %v1805_v15 = vadd.f32 %v1800_v17, %v1785_v16  ;;  %v1859_v7 = vrot.slane %v1852_v18, 5 }
 0x278   : > { %2333 = vrot.lane.b32.xlu1 %v2330_v61, %s5435_s8  ;;  %v1596_v19 = vadd.f32 %v1592_v59, %v1580_v42  ;;  %v1871_v42 = vmul.f32 %v5135_v23, %v5235_v33 }
 0x279   : > { %v1827_v21 = vadd.f32 %v1822_v4, %v1805_v15  ;;  %v1861_v38 = vsel %vm1858_vm8, %v1859_v7, %v1860_v62 }
 0x27a   : > { %v5208_v30 = vpop.permute.xlu1 %1675  ;;  %v1899_v10 = vpop.permute.xlu0 %1898  ;;  %v1618_v1 = vadd.f32 %v5180_v35, %v1596_v19 }
 0x27b   : > { %v1847_v45 = vadd.f32 %v1842_v40, %v1827_v21 }
 0x27c   : > { %2355 = vrot.lane.b32.xlu1 %v2352_v57, %s5433_s26  ;;  %v1638_v57 = vadd.f32 %v5190_v6, %v1618_v1 }
 0x27d   : > { %v1866_v3 = vadd.f32 %v1861_v38, %v1847_v45 }
 0x27e   : > { %v1698_v28 = vpop.permute.xlu1 %1697  ;;  %v1919_v51 = vpop.permute.xlu0 %1918  ;;  %v1660_v49 = vadd.f32 %v5200_v46, %v1638_v57 }
 0x27f   : > { %v1882_v61 = vadd.f32 %v1877_v50, %v1866_v3 }
 0x280   : > { %2375 = vrot.lane.b32.xlu1 %v2372_v13, %s5433_s26  ;;  %v1680_v39 = vadd.f32 %v5208_v30, %v1660_v49  ;;  %s2653_s26 = sld [smem:[#allocation10 + $0x2a]] }
 0x281   : > { %v1904_v58 = vadd.f32 %v1899_v10, %v1882_v61 }
 0x282   : > { %v1718_v24 = vpop.permute.xlu1 %1717  ;;  %v1941_v17 = vpop.permute.xlu0 %1940  ;;  %v1702_v13 = vadd.f32 %v1698_v28, %v1680_v39  ;;  %v1854_v28 = vmul.f32 %v5218_v5, %v5216_v14 }
 0x283   : > { %v1924_v20 = vadd.f32 %v1919_v51, %v1904_v58 }
 0x284   : > { %2397 = vrot.lane.b32.xlu1 %v2394_v12, %s5434_s7  ;;  %v1722_v10 = vadd.f32 %v1718_v24, %v1702_v13 }
 0x285   : > { %v1946_v63 = vadd.f32 %v1941_v17, %v1924_v20 }
 0x286   : > { %v1740_v4 = vpop.permute.xlu1 %1739  ;;  %v1961_v32 = vpop.permute.xlu0 %1960  ;;  %v2138_v2 = vstv %s2653_s26 }
 0x287   : > { %v1966_v15 = vadd.f32 %v1961_v32, %v1946_v63  ;;  %v1744_v48 = vadd.f32 %v1740_v4, %v1722_v10  ;;  %v5272_v17 = vmul.f32 %v5081_v56, %v2138_v2  ;;  %v2139_v24 = vmul.f32 %v4946_v26, %v2138_v2 }
 0x288   : > { %2417 = vrot.lane.b32.xlu1 %v2414_v27, %s5434_s7  ;;  %s2654_s7 = sld [smem:[#allocation10 + $0x5b]]  ;;  %v1862_v32 = vrot.slane %v1854_v28, 5 }
 0x289   : > { %v2147_v52 = vrot.slane %v5272_v17, 6  ;;  %v2146_v3 = vrot.slane %v2139_v24, 6 }
 0x28a   : > { %v1760_v41 = vpop.permute.xlu1 %1759  ;;  %v1983_v40 = vpop.permute.xlu0 %1982 }
 0x28b   : > { %v1988_v44 = vadd.f32 %v1983_v40, %v1966_v15  ;;  %v1764_v31 = vadd.f32 %v1760_v41, %v1744_v48  ;;  %v2148_v59 = vsel %vm2145_vm9, %v2146_v3, %v2147_v52  ;;  %v1878_v40 = vrot.slane %v1871_v42, 5 }
 0x28d   : > { %v1879_v1 = vsel %vm1858_vm8, %v1876_v47, %v1878_v40 }
 0x28e   : > { %v1782_v37 = vpop.permute.xlu1 %1781  ;;  %v2003_v34 = vpop.permute.xlu0 %2002  ;;  %v2155_v45 = vstv %s2654_s7 }
 0x28f   : > { %v2008_v18 = vadd.f32 %v2003_v34, %v1988_v44  ;;  %v1786_v30 = vadd.f32 %v1782_v37, %v1764_v31  ;;  %v5278_v7 = vmul.f32 %v4964_v8, %v2155_v45  ;;  %v2156_v56 = vmul.f32 %v4870_v60, %v2155_v45 }
 0x290   : > { %v1863_v60 = vsel %vm1858_vm8, %v1860_v62, %v1862_v32 }
 0x291   : > { %v2163_v26 = vrot.slane %v5278_v7, 6  ;;  %v2162_v50 = vrot.slane %v2156_v56, 6 }
 0x292   : > { %v1802_v53 = vpop.permute.xlu1 %1801  ;;  %v2025_v29 = vpop.permute.xlu0 %2024 }
 0x293   : > { %v2030_v21 = vadd.f32 %v2025_v29, %v2008_v18  ;;  %v1806_v54 = vadd.f32 %v1802_v53, %v1786_v30  ;;  %v2164_v33 = vsel %vm2145_vm9, %v2162_v50, %v2163_v26 }
 0x296   : > { %v1824_v22 = vpop.permute.xlu1 %1823  ;;  %v2045_v16 = vpop.permute.xlu0 %2044 }
 0x297   : > { %v2050_v46 = vadd.f32 %v2045_v16, %v2030_v21  ;;  %v1828_v38 = vadd.f32 %v1824_v22, %v1806_v54 }
 0x29a   : > { %v1844_v25 = vpop.permute.xlu1 %1843  ;;  %v2067_v35 = vpop.permute.xlu0 %2066 }
 0x29b   : > { %v2072_v0 = vadd.f32 %v2067_v35, %v2050_v46  ;;  %v1848_v36 = vadd.f32 %v1844_v25, %v1828_v38 }
 0x29d   : > { %v1867_v37 = vadd.f32 %v1863_v60, %v1848_v36 }
 0x29e   : > { %v1901_v6 = vpop.permute.xlu1 %1900  ;;  %v2087_v51 = vpop.permute.xlu0 %2086 }
 0x29f   : > { %v2092_v43 = vadd.f32 %v2087_v51, %v2072_v0  ;;  %v1883_v29 = vadd.f32 %v1879_v1, %v1867_v37  ;;  %v2141_v51 = vmul.f32 %v5218_v5, %v2138_v2  ;;  %v2158_v0 = vmul.f32 %v5135_v23, %v2155_v45 }
 0x2a1   : > { %v1905_v49 = vadd.f32 %v1901_v6, %v1883_v29  ;;  %v2165_v56 = vrot.slane %v2158_v0, 6 }
 0x2a2   : > { %v1921_v12 = vpop.permute.xlu1 %1920  ;;  %v2109_v11 = vpop.permute.xlu0 %2108 }
 0x2a3   : > { %v2114_v4 = vadd.f32 %v2109_v11, %v2092_v43  ;;  %v1925_v62 = vadd.f32 %v1921_v12, %v1905_v49  ;;  %v2149_v11 = vrot.slane %v2141_v51, 6  ;;  %v2166_v42 = vsel %vm2145_vm9, %v2163_v26, %v2165_v56 }
 0x2a5   : > { %v2150_v5 = vsel %vm2145_vm9, %v2147_v52, %v2149_v11 }
 0x2a6   : > { %v1943_v14 = vpop.permute.xlu1 %1942  ;;  %v2129_v27 = vpop.permute.xlu0 %2128 }
 0x2a7   : > { %v2134_v8 = vadd.f32 %v2129_v27, %v2114_v4  ;;  %v1947_v22 = vadd.f32 %v1943_v14, %v1925_v62 }
 0x2a9   : > { %v2153_v41 = vadd.f32 %v2148_v59, %v2134_v8 }
 0x2aa   : > { %v1963_v19 = vpop.permute.xlu1 %1962  ;;  %v2186_v61 = vpop.permute.xlu0 %2185 }
 0x2ab   : > { %v2169_v34 = vadd.f32 %v2164_v33, %v2153_v41  ;;  %v1967_v15 = vadd.f32 %v1963_v19, %v1947_v22 }
 0x2ad   : > { %v2191_v35 = vadd.f32 %v2186_v61, %v2169_v34 }
 0x2ae   : > { %v1985_v58 = vpop.permute.xlu1 %1984  ;;  %v2206_v53 = vpop.permute.xlu0 %2205 }
 0x2af   : > { %v1989_v13 = vadd.f32 %v1985_v58, %v1967_v15  ;;  %v2211_v48 = vadd.f32 %v2206_v53, %v2191_v35 }
 0x2b2   : > { %v2005_v57 = vpop.permute.xlu1 %2004  ;;  %v2228_v20 = vpop.permute.xlu0 %2227 }
 0x2b3   : > { %v2009_v55 = vadd.f32 %v2005_v57, %v1989_v13  ;;  %v2233_v6 = vadd.f32 %v2228_v20, %v2211_v48 }
 0x2b6   : > { %v2027_v9 = vpop.permute.xlu1 %2026  ;;  %v2248_v63 = vpop.permute.xlu0 %2247 }
 0x2b7   : > { %v2031_v10 = vadd.f32 %v2027_v9, %v2009_v55  ;;  %v2253_v28 = vadd.f32 %v2248_v63, %v2233_v6 }
 0x2ba   : > { %v2047_v16 = vpop.permute.xlu1 %2046  ;;  %v2270_v39 = vpop.permute.xlu0 %2269 }
 0x2bb   : > { %v2051_v21 = vadd.f32 %v2047_v16, %v2031_v10  ;;  %v2275_v24 = vadd.f32 %v2270_v39, %v2253_v28 }
 0x2be   : > { %v2069_v44 = vpop.permute.xlu1 %2068  ;;  %v2290_v25 = vpop.permute.xlu0 %2289 }
 0x2bf   : > { %v2073_v31 = vadd.f32 %v2069_v44, %v2051_v21  ;;  %v2295_v38 = vadd.f32 %v2290_v25, %v2275_v24 }
 0x2c2   : > { %v2089_v47 = vpop.permute.xlu1 %2088  ;;  %v2312_v18 = vpop.permute.xlu0 %2311 }
 0x2c3   : > { %v2093_v12 = vadd.f32 %v2089_v47, %v2073_v31  ;;  %v2317_v2 = vadd.f32 %v2312_v18, %v2295_v38 }
 0x2c6   : > { %v2111_v46 = vpop.permute.xlu1 %2110  ;;  %v2332_v30 = vpop.permute.xlu0 %2331 }
 0x2c7   : > { %v2115_v7 = vadd.f32 %v2111_v46, %v2093_v12  ;;  %v2337_v45 = vadd.f32 %v2332_v30, %v2317_v2 }
 0x2ca   : > { %v2131_v54 = vpop.permute.xlu1 %2130  ;;  %v2354_v43 = vpop.permute.xlu0 %2353 }
 0x2cb   : > { %v2135_v4 = vadd.f32 %v2131_v54, %v2115_v7  ;;  %v2359_v27 = vadd.f32 %v2354_v43, %v2337_v45 }
 0x2cd   : > { %v2154_v32 = vadd.f32 %v2150_v5, %v2135_v4 }
 0x2ce   : > { %v2188_v14 = vpop.permute.xlu1 %2187  ;;  %v2374_v23 = vpop.permute.xlu0 %2373 }
 0x2cf   : > { %v2170_v3 = vadd.f32 %v2166_v42, %v2154_v32  ;;  %v2379_v59 = vadd.f32 %v2374_v23, %v2359_v27 }
 0x2d1   : > { %v2192_v61 = vadd.f32 %v2188_v14, %v2170_v3 }
 0x2d2   : > { %v2208_v36 = vpop.permute.xlu1 %2207  ;;  %v2396_v8 = vpop.permute.xlu0 %2395 }
 0x2d3   : > { %v2401_v50 = vadd.f32 %v2396_v8, %v2379_v59  ;;  %v2212_v1 = vadd.f32 %v2208_v36, %v2192_v61 }
 0x2d6   : > { %v2230_v41 = vpop.permute.xlu1 %2229  ;;  %v2416_v60 = vpop.permute.xlu0 %2415 }
 0x2d7   : > { %v2421_v40 = vadd.f32 %v2416_v60, %v2401_v50  ;;  %v2234_v58 = vadd.f32 %v2230_v41, %v2212_v1 }
 0x2d9   : > { %v2667_v19 = vmul.f32 -1.442695, %v2421_v40 }
 0x2da   : > { %v2250_v17 = vpop.permute.xlu1 %2249 }
 0x2db   : > { %2811 = vpow2.f32 %v2667_v19  ;;  %v2254_v29 = vadd.f32 %v2250_v17, %v2234_v58 }
 0x2de   : > { %v2272_v52 = vpop.permute.xlu1 %2271 }
 0x2df   : > { %v2276_v57 = vadd.f32 %v2272_v52, %v2254_v29 }
 0x2e2   : > { %v2292_v33 = vpop.permute.xlu1 %2291 }
 0x2e3   : > { %v2296_v49 = vadd.f32 %v2292_v33, %v2276_v57 }
 0x2e5   : > { %v2812_v26 = vpop.eup %2811 }
 0x2e6   : > { %v2429_v37 = vadd.f32 1.0, %v2812_v26  ;;  %v2314_v34 = vpop.permute.xlu1 %2313 }
 0x2e7   : > { %v2318_v9 = vadd.f32 %v2314_v34, %v2296_v49 }
 0x2e8   : > { %2813 = vrcp.f32 %v2429_v37 }
 0x2ea   : > { %v2334_v53 = vpop.permute.xlu1 %2333 }
 0x2eb   : > { %v2338_v22 = vadd.f32 %v2334_v53, %v2318_v9 }
 0x2ee   : > { %v2356_v20 = vpop.permute.xlu1 %2355 }
 0x2ef   : > { %v2360_v16 = vadd.f32 %v2356_v20, %v2338_v22 }
 0x2f2   : > { %v2814_v63 = vpop.eup %2813  ;;  %v2376_v62 = vpop.permute.xlu1 %2375 }
 0x2f3   : > { %2436 = vst.msk [vmem:[%s3224_s5] sm:$0xff] %vm2435_vm10, %v2814_v63  ;;  %v2380_v15 = vadd.f32 %v2376_v62, %v2360_v16 }
 0x2f6   : > { %v2398_v39 = vpop.permute.xlu1 %2397 }
 0x2f7   : > { %v2402_v13 = vadd.f32 %v2398_v39, %v2380_v15 }
 0x2fa   : > { %v2418_v44 = vpop.permute.xlu1 %2417 }
 0x2fb   : > { %v2422_v25 = vadd.f32 %v2418_v44, %v2402_v13 }
 0x2fd   : > { %v2668_v35 = vmul.f32 -1.442695, %v2422_v25 }
 0x2ff   : > { %2815 = vpow2.f32 %v2668_v35 }
 0x309   : > { %v2816_v55 = vpop.eup %2815 }
 0x30a   : > { %v2430_v10 = vadd.f32 1.0, %v2816_v55 }
 0x30c   : > { %2817 = vrcp.f32 %v2430_v10 }
 0x316   : > { %v2818_v47 = vpop.eup %2817 }
 0x317   : > { %2437 = vst.msk [vmem:[%s3224_s5 + $0x8] sm:$0xff] %vm2435_vm10, %v2818_v47 }
 0x318 PF: > { %s2675_s8 = sshll.u32 %s2990_s16, 8  ;;  %s2452_s17 = sshll.u32 %s3224_s5, 4  ;;  %s5312_s17 = int_to_ptr.vmem [resolvable:$true] %s2452_s17 }
 0x319   : > { %s5309_s23 = scalar_lea.hbm %s5379_s2, %s2675_s8  ;;  %s5453_s3 = sand.u32 1, %s2966_s10  }
 0x31a   : > { %s5316_s12 = scalar_lea.sflag [#allocation8], %s5453_s3  ;;  %s2876_s20 = scalar_lea.vmem %s5312_s17, 256 }
 0x31b   : > { %p2877_p13 = scmp.ne.s32.totalorder %s5312_s17, %s2876_s20  ;;  %p5454_p4 = scmp.ne.s32.totalorder %s5420_s27, 0 }
 0x31c   : > { %s3026_s16 = smov [#allocation11]  }
 0x31d   : > { %p2878_p6 = pnand %p2877_p13, %p5454_p4  ;;  %s2880_s21 = sshll.u32 %s3026_s16, 4  ;;  %s2881_s21 = int_to_ptr.vmem [resolvable:$false] %s2880_s21 }
 0x31e   : > { %s2882_s25 = scalar_lea.vmem %s2881_s21, 512  ;;  %p2883_p12 = scmp.lt.s32.totalorder %s5312_s17, %s2881_s21 }
 0x31f   : > { %p2879_p10 = pneg %p2878_p6  ;;  %p2884_p0 = scmp.lt.s32.totalorder %s2882_s25, %s2876_s20 }
 0x321   : > { %p2885_p2 = por %p2884_p0, %p2883_p12 }
 0x323   : > { %p2886_p8 = pnand %p2885_p2, %p2879_p10 }
 0x325   : > { %2889 = shalt.err (!%p2886_p8)
}
 0x326   : > { %s2890_s5 = scalar_lea.hbm %s5309_s23, 256  ;;  %s2894_s28 = scalar_lea.hbm %s5379_s2, 512 }
 0x327   : > { %p2891_p9 = scmp.ne.s32.totalorder %s5309_s23, %s2890_s5  ;;  %p2895_p5 = scmp.lt.u32.totalorder %s5309_s23, %s5379_s2 }
 0x328   : > { %p2896_p7 = scmp.lt.u32.totalorder %s2894_s28, %s2890_s5  ;;  %p2898_p13 = scmp.lt.u32.totalorder %s2890_s5, %s5309_s23 }
 0x329   : > { %p2892_p11 = pnand %p2891_p9, %p5454_p4 }
 0x32a   : > { %p2897_p3 = por %p2896_p7, %p2895_p5 }
 0x32b   : > { %p2893_p1 = pneg %p2892_p11 }
 0x32c   : > { %p2899_p6 = por %p2898_p13, %p2897_p3 }
 0x32e   : > { %p2900_p10 = pnand %p2899_p6, %p2893_p1 }
 0x330   : > { %2903 = shalt.err (!%p2900_p10)
}
 0x331   : > { %s3027_s26 = smov 128   ;;  %s3028_s7 = smov 8  }
 0x332   : > { %2682 = dma.vmem_to_hbm [thread:$0]  (%p5454_p4), %s5312_s17, 256, %s5309_s23, %s5316_s12, %s3027_s26, %s3027_s26, %s3028_s7  }
 0x333 PF: > { %s5455_s8 = sld [smem:[#allocation16_spill]]  ;;  %p2699_p12 = scmp.ge.s32.totalorder %s3002_s19, 2 }
 0x334   : > { %s2467_s4 = sand.u32 1, %s2962_s9  }
 0x335   : > { %s2468_s29 = scalar_lea.sflag [#allocation8], %s2467_s4 }
 0x339   : > { %p5456_p0 = scmp.ne.s32.totalorder %s5455_s8, 0 }
 0x33b   : > { %p2693_p2 = pnand %p2699_p12, %p5456_p0 }
 0x33d   : > { %2957 = dma.done.wait (!%p2693_p2), %s2468_s29, 256  }
 0x33e   : > { %2959 = vsyncadd (!%p2693_p2), %s2468_s29, 4294967040  ;;  %s19_s19 = sadd.s32 1, %s3002_s19   ;;  %s5457_s15 = sld [smem:[#allocation15_spill]] }
 0x33f   : > { %p16_p8 = scmp.ge.s32.totalorder %s19_s19, 6   ;;  %s5458_s17 = sld [smem:[#allocation17_spill]] }
 0x340   : > { %s5459_s27 = sld [smem:[#allocation18_spill]]  ;;  %s5460_s9 = smov %s2966_s10 }
 0x341   : > { %s5461_s10 = smov %s2970_s11  ;;  %s5462_s11 = smov %s3175_s6 }
 0x342   : > { %s5463_s12 = smov %s2978_s13  ;;  %s5464_s13 = smov %s2982_s14 }
 0x343   : > { %s5465_s14 = smov %s3180_s30  ;;  %s5466_s16 = smov %s2998_s18 }
 0x344   :  { %18 = sbr.rel (!%p16_p8) target bundleno = 12 (0xc), region = 88 }
 0x346   : > { %s5467_s18 = smov %s5459_s27 }
 0x34b   :  { %2473 = vsyncpa [#allocation7], 1 }
 0x34c   :  { %2475 = vsyncpa [#allocation7 + $0x1], 1 }
 0x34d   :  { %2476 = vsyncpa [#allocation8], 1 }
 0x34e   :  { %2478 = vsyncpa [#allocation8 + $0x1], 1 }
 0x34f   :  { %2479 = vsyncpa [#allocation9], 1 }
 0x350   :  { %2481 = vsyncpa [#allocation9 + $0x1], 1 }

</bundles_post_ra>
